<compile_context>
chip_gen: v7x
topology: tpu7x:2x2x1
jax: 0.10.0
libtpu: 0.0.40
codegen_flags: <defaults>
</compile_context>

<pallas_src>
from functools import partial

import jax
import jax.numpy as jnp
from jax.experimental import pallas as pl
from jax.experimental.pallas import tpu as pltpu

IN_DIM = 784
IN_PAD = 896           # 7 * 128 -> lane-dense input / output feature dim
HID_DIM = 400
HID_PAD = 512          # 4 * 128 -> lane-dense hidden dim
LAT_DIM = 10
LAT_PAD = 128          # latent padded to one full lane tile
DROP_P = 0.2
KEEP = 1.0 - DROP_P
TILE_B = 512           # max batch tile (MXU M dimension)


def _round_up(x, m):
    return ((x + m - 1) // m) * m


def _vae_kernel(x_ref, mask_ref, eps_ref,
                w_e1_ref, b_e1_ref,
                w_e2_ref, b_e2_ref,
                w_ml_ref, b_ml_ref,
                w_d1_ref, b_d1_ref,
                w_d2_ref, b_d2_ref,
                w_fc_ref, b_fc_ref,
                out_ref):
    bf16 = jnp.bfloat16
    x = x_ref[...]              # bf16 [tb, 896]
    masks = mask_ref[...]       # bf16 [tb, 4*512], {0,1} keep masks (or 0.8 in eval)

    def linear_relu_drop(h_bf, w_ref, b_ref, mask):
        # matmul in bf16 with f32 accumulation, epilogue (ReLU + dropout) in bf16.
        acc = jnp.dot(h_bf, w_ref[...], preferred_element_type=jnp.float32) + b_ref[...]
        return jnp.maximum(acc, 0.0).astype(bf16) * mask

    # ---- encoder ----
    h1 = linear_relu_drop(x, w_e1_ref, b_e1_ref, masks[:, 0 * HID_PAD:1 * HID_PAD])
    h2 = linear_relu_drop(h1, w_e2_ref, b_e2_ref, masks[:, 1 * HID_PAD:2 * HID_PAD])

    # ---- fused mu / log_var projection (both ReLU-activated, as in the spec) ----
    mlv = jnp.maximum(
        jnp.dot(h2, w_ml_ref[...], preferred_element_type=jnp.float32) + b_ml_ref[...],
        0.0)
    mu = mlv[:, :LAT_PAD]           # padded lanes are 0
    log_var = mlv[:, LAT_PAD:]      # padded lanes are 0 -> std = 1 there (inert)

    # ---- reparameterize: z = eps * exp(0.5 * log_var) + mu ----
    std = jnp.exp(0.5 * log_var)
    z = (eps_ref[...] * std + mu).astype(jnp.bfloat16)   # padded z lanes hit zero w_d1 rows

    # ---- decoder ----
    d1 = linear_relu_drop(z, w_d1_ref, b_d1_ref, masks[:, 2 * HID_PAD:3 * HID_PAD])
    d2 = linear_relu_drop(d1, w_d2_ref, b_d2_ref, masks[:, 3 * HID_PAD:4 * HID_PAD])

    logits = jnp.dot(d2, w_fc_ref[...], preferred_element_type=jnp.float32) + b_fc_ref[...]
    out_ref[...] = jax.nn.sigmoid(logits).astype(out_ref.dtype)


@partial(jax.jit, static_argnames=("training",))
def vae_forward(x, prepared_params, eps, mask_key, training=True):
    """x: [B, 784] f32, eps: [B, 10] f32 -> [B, 784] f32 in (0, 1)."""
    (w_e1, b_e1, w_e2, b_e2, w_ml, b_ml,
     w_d1, b_d1, w_d2, b_d2, w_fc, b_fc) = prepared_params

    B = x.shape[0]
    tile_b = min(TILE_B, _round_up(B, 8))     # small batches -> small tile
    n_tiles = pl.cdiv(B, tile_b)
    Bp = n_tiles * tile_b

    # pad batch / features and cast to bf16 in one shot (lane-dense input DMA)
    x_p = jnp.pad(x, ((0, Bp - B), (0, IN_PAD - IN_DIM))).astype(jnp.bfloat16)
    eps_p = jnp.pad(eps, ((0, Bp - B), (0, LAT_PAD - LAT_DIM)))

    # dropout keep-masks for the 4 dropout layers, packed along lanes.
    # 1/keep is folded into the downstream weights, so:
    #   train: mask in {0, 1};  eval: mask = keep (undoes the folded 1/keep).
    if training:
        masks = jax.random.bernoulli(mask_key, KEEP, (Bp, 4 * HID_PAD)).astype(jnp.bfloat16)
    else:
        masks = jnp.full((Bp, 4 * HID_PAD), KEEP, jnp.bfloat16)

    weights = (w_e1, b_e1, w_e2, b_e2, w_ml, b_ml,
               w_d1, b_d1, w_d2, b_d2, w_fc, b_fc)

    def tile_spec(feat):
        return pl.BlockSpec((tile_b, feat), lambda i: (i, 0))

    def resident_spec(shape):
        # constant block index -> weights stay resident across grid steps
        return pl.BlockSpec(shape, lambda i: (0, 0))

    in_specs = ([tile_spec(IN_PAD),            # x
                 tile_spec(4 * HID_PAD),       # dropout masks
                 tile_spec(LAT_PAD)]           # eps
                + [resident_spec(w.shape) for w in weights])

    out_p = pl.pallas_call(
        _vae_kernel,
        out_shape=jax.ShapeDtypeStruct((Bp, IN_PAD), jnp.float32),
        grid=(n_tiles,),
        in_specs=in_specs,
        out_specs=tile_spec(IN_PAD),
        compiler_params=pltpu.CompilerParams(
            dimension_semantics=("parallel",),        # batch tiles are independent
            vmem_limit_bytes=48 * 1024 * 1024,        # valid on v5e/v6e/v7x
        ),
    )(x_p, masks, eps_p, *weights)

    return out_p[:B, :IN_DIM]


# ---------------------------------------------------------------------------
# Parameter construction (PyTorch nn.Linear default init, [in, out] layout)
# ---------------------------------------------------------------------------
def init_linear(key, fan_in, fan_out):
    kw, kb = jax.random.split(key)
    bound = 1.0 / jnp.sqrt(jnp.float32(fan_in))
    w = jax.random.uniform(kw, (fan_in, fan_out), jnp.float32, -bound, bound)
    b = jax.random.uniform(kb, (1, fan_out), jnp.float32, -bound, bound)
    return w, b


def make_params(key):
    keys = jax.random.split(key, 7)
    w_e1, b_e1 = init_linear(keys[0], IN_DIM, HID_DIM)
    w_e2, b_e2 = init_linear(keys[1], HID_DIM, HID_DIM)
    w_mu, b_mu = init_linear(keys[2], HID_DIM, LAT_DIM)
    w_lv, b_lv = init_linear(keys[3], HID_DIM, LAT_DIM)
    w_d1, b_d1 = init_linear(keys[4], LAT_DIM, HID_DIM)
    w_d2, b_d2 = init_linear(keys[5], HID_DIM, HID_DIM)
    w_fc, b_fc = init_linear(keys[6], HID_DIM, IN_DIM)
    return (w_e1, b_e1, w_e2, b_e2, w_mu, b_mu, w_lv, b_lv,
            w_d1, b_d1, w_d2, b_d2, w_fc, b_fc)


def prepare_params(params):
    """Pad / fuse / cast weights into the kernel's layout.

    - hidden dim padded 400 -> 512, input/output dim padded 784 -> 896,
      latent padded 10 -> 128 (all zero padding, mathematically inert).
    - mu / log_var heads fused into one [512, 256] projection.
    - inverted-dropout scale 1/keep folded into every layer that consumes a
      dropped activation (e2, mu/log_var, d2, fc).
    - weights bf16, biases f32.
    """
    (w_e1, b_e1, w_e2, b_e2, w_mu, b_mu, w_lv, b_lv,
     w_d1, b_d1, w_d2, b_d2, w_fc, b_fc) = params
    inv_keep = 1.0 / KEEP
    bf16 = jnp.bfloat16

    def pad2(a, rows, cols):
        out = jnp.zeros((rows, cols), jnp.float32)
        return out.at[:a.shape[0], :a.shape[1]].set(a)

    w_e1_p = pad2(w_e1, IN_PAD, HID_PAD)
    b_e1_p = pad2(b_e1, 1, HID_PAD)

    w_e2_p = pad2(w_e2 * inv_keep, HID_PAD, HID_PAD)
    b_e2_p = pad2(b_e2, 1, HID_PAD)

    w_ml = jnp.zeros((HID_PAD, 2 * LAT_PAD), jnp.float32)
    w_ml = w_ml.at[:HID_DIM, :LAT_DIM].set(w_mu * inv_keep)
    w_ml = w_ml.at[:HID_DIM, LAT_PAD:LAT_PAD + LAT_DIM].set(w_lv * inv_keep)
    b_ml = jnp.zeros((1, 2 * LAT_PAD), jnp.float32)
    b_ml = b_ml.at[:, :LAT_DIM].set(b_mu).at[:, LAT_PAD:LAT_PAD + LAT_DIM].set(b_lv)

    w_d1_p = pad2(w_d1, LAT_PAD, HID_PAD)
    b_d1_p = pad2(b_d1, 1, HID_PAD)

    w_d2_p = pad2(w_d2 * inv_keep, HID_PAD, HID_PAD)
    b_d2_p = pad2(b_d2, 1, HID_PAD)

    w_fc_p = pad2(w_fc * inv_keep, HID_PAD, IN_PAD)
    b_fc_p = pad2(b_fc, 1, IN_PAD)

    return (w_e1_p.astype(bf16), b_e1_p,
            w_e2_p.astype(bf16), b_e2_p,
            w_ml.astype(bf16), b_ml,
            w_d1_p.astype(bf16), b_d1_p,
            w_d2_p.astype(bf16), b_d2_p,
            w_fc_p.astype(bf16), b_fc_p)


if __name__ == "__main__":
    key = jax.random.PRNGKey(0)
    k_x, k_params, k_eps, k_drop = jax.random.split(key, 4)

    batch = 2
    # MNIST-style image batch, flattened [B, 1, 28, 28] -> [B, 784]
    x_img = jax.random.uniform(k_x, (batch, 1, 28, 28), jnp.float32)
    x = x_img.reshape(batch, IN_DIM)

    params = make_params(k_params)
    prepared = prepare_params(params)
    eps = jax.random.normal(k_eps, (batch, LAT_DIM), jnp.float32)

    out = vae_forward(x, prepared, eps, k_drop, training=True)
    out = jax.block_until_ready(out)

    assert out.shape == (batch, IN_DIM), out.shape
    assert bool(jnp.all(jnp.isfinite(out)))
    assert bool(jnp.all((out >= 0.0) & (out <= 1.0)))
    print("KERNEL_OK")
</pallas_src>

<mosaic_0001>
module attributes {stable_mosaic.version = 11 : i64} {
  func.func @_vae_kernel(%arg0: i32, %arg1: memref<8x896xbf16, #tpu.memory_space<vmem>>, %arg2: memref<8x2048xbf16, #tpu.memory_space<vmem>>, %arg3: memref<8x128xf32, #tpu.memory_space<vmem>>, %arg4: memref<896x512xbf16, #tpu.memory_space<vmem>>, %arg5: memref<1x512xf32, #tpu.memory_space<vmem>>, %arg6: memref<512x512xbf16, #tpu.memory_space<vmem>>, %arg7: memref<1x512xf32, #tpu.memory_space<vmem>>, %arg8: memref<512x256xbf16, #tpu.memory_space<vmem>>, %arg9: memref<1x256xf32, #tpu.memory_space<vmem>>, %arg10: memref<128x512xbf16, #tpu.memory_space<vmem>>, %arg11: memref<1x512xf32, #tpu.memory_space<vmem>>, %arg12: memref<512x512xbf16, #tpu.memory_space<vmem>>, %arg13: memref<1x512xf32, #tpu.memory_space<vmem>>, %arg14: memref<512x896xbf16, #tpu.memory_space<vmem>>, %arg15: memref<1x896xf32, #tpu.memory_space<vmem>>, %arg16: memref<8x896xf32, #tpu.memory_space<vmem>>) attributes {dimension_semantics = [#tpu.dimension_semantics<parallel>], iteration_bounds = array<i64: 1>, scalar_prefetch = 0 : i64, scratch_operands = 0 : i64, tpu.core_type = #tpu.core_type<tc>, window_params = [{transform_indices = @transform_0, window_bounds = array<i64: 8, 896>}, {transform_indices = @transform_1, window_bounds = array<i64: 8, 2048>}, {transform_indices = @transform_2, window_bounds = array<i64: 8, 128>}, {pipeline_mode = #tpu.pipeline_mode<synchronous>, transform_indices = @transform_3, window_bounds = array<i64: 896, 512>}, {pipeline_mode = #tpu.pipeline_mode<synchronous>, transform_indices = @transform_4, window_bounds = array<i64: 1, 512>}, {pipeline_mode = #tpu.pipeline_mode<synchronous>, transform_indices = @transform_5, window_bounds = array<i64: 512, 512>}, {pipeline_mode = #tpu.pipeline_mode<synchronous>, transform_indices = @transform_6, window_bounds = array<i64: 1, 512>}, {pipeline_mode = #tpu.pipeline_mode<synchronous>, transform_indices = @transform_7, window_bounds = array<i64: 512, 256>}, {pipeline_mode = #tpu.pipeline_mode<synchronous>, transform_indices = @transform_8, window_bounds = array<i64: 1, 256>}, {pipeline_mode = #tpu.pipeline_mode<synchronous>, transform_indices = @transform_9, window_bounds = array<i64: 128, 512>}, {pipeline_mode = #tpu.pipeline_mode<synchronous>, transform_indices = @transform_10, window_bounds = array<i64: 1, 512>}, {pipeline_mode = #tpu.pipeline_mode<synchronous>, transform_indices = @transform_11, window_bounds = array<i64: 512, 512>}, {pipeline_mode = #tpu.pipeline_mode<synchronous>, transform_indices = @transform_12, window_bounds = array<i64: 1, 512>}, {pipeline_mode = #tpu.pipeline_mode<synchronous>, transform_indices = @transform_13, window_bounds = array<i64: 512, 896>}, {pipeline_mode = #tpu.pipeline_mode<synchronous>, transform_indices = @transform_14, window_bounds = array<i64: 1, 896>}, {transform_indices = @transform_15, window_bounds = array<i64: 8, 896>}]} {
    %c0 = arith.constant 0 : index
    %c0_0 = arith.constant 0 : index
    %0 = vector.load %arg1[%c0, %c0_0] : memref<8x896xbf16, #tpu.memory_space<vmem>>, vector<8x896xbf16>
    %c0_1 = arith.constant 0 : index
    %c0_2 = arith.constant 0 : index
    %1 = vector.load %arg2[%c0_1, %c0_2] : memref<8x2048xbf16, #tpu.memory_space<vmem>>, vector<8x2048xbf16>
    %2 = vector.extract_strided_slice %1 {offsets = [0, 0], sizes = [8, 512], strides = [1, 1]} : vector<8x2048xbf16> to vector<8x512xbf16>
    %c0_3 = arith.constant 0 : index
    %c0_4 = arith.constant 0 : index
    %3 = vector.load %arg4[%c0_3, %c0_4] : memref<896x512xbf16, #tpu.memory_space<vmem>>, vector<896x512xbf16>
    %cst = arith.constant dense<0.000000e+00> : vector<8x512xf32>
    %4 = tpu.matmul %0, %3, %cst {dimension_numbers = #tpu.dot_dimension_numbers<[1], [0], [0], [1], [0, 0, 1, 1], [], []>} : vector<8x896xbf16>, vector<896x512xbf16>, vector<8x512xf32> -> vector<8x512xf32>
    %c0_5 = arith.constant 0 : index
    %c0_6 = arith.constant 0 : index
    %5 = vector.load %arg5[%c0_5, %c0_6] : memref<1x512xf32, #tpu.memory_space<vmem>>, vector<1x512xf32>
    %6 = vector.broadcast %5 : vector<1x512xf32> to vector<8x512xf32>
    %7 = arith.addf %4, %6 : vector<8x512xf32>
    %cst_7 = arith.constant 0.000000e+00 : f32
    %8 = vector.broadcast %cst_7 : f32 to vector<8x512xf32>
    %9 = arith.maximumf %7, %8 : vector<8x512xf32>
    %10 = arith.truncf %9 : vector<8x512xf32> to vector<8x512xbf16>
    %11 = arith.mulf %10, %2 : vector<8x512xbf16>
    %12 = vector.extract_strided_slice %1 {offsets = [0, 512], sizes = [8, 512], strides = [1, 1]} : vector<8x2048xbf16> to vector<8x512xbf16>
    %c0_8 = arith.constant 0 : index
    %c0_9 = arith.constant 0 : index
    %13 = vector.load %arg6[%c0_8, %c0_9] : memref<512x512xbf16, #tpu.memory_space<vmem>>, vector<512x512xbf16>
    %cst_10 = arith.constant dense<0.000000e+00> : vector<8x512xf32>
    %14 = tpu.matmul %11, %13, %cst_10 {dimension_numbers = #tpu.dot_dimension_numbers<[1], [0], [0], [1], [0, 0, 1, 1], [], []>} : vector<8x512xbf16>, vector<512x512xbf16>, vector<8x512xf32> -> vector<8x512xf32>
    %c0_11 = arith.constant 0 : index
    %c0_12 = arith.constant 0 : index
    %15 = vector.load %arg7[%c0_11, %c0_12] : memref<1x512xf32, #tpu.memory_space<vmem>>, vector<1x512xf32>
    %16 = vector.broadcast %15 : vector<1x512xf32> to vector<8x512xf32>
    %17 = arith.addf %14, %16 : vector<8x512xf32>
    %cst_13 = arith.constant 0.000000e+00 : f32
    %18 = vector.broadcast %cst_13 : f32 to vector<8x512xf32>
    %19 = arith.maximumf %17, %18 : vector<8x512xf32>
    %20 = arith.truncf %19 : vector<8x512xf32> to vector<8x512xbf16>
    %21 = arith.mulf %20, %12 : vector<8x512xbf16>
    %c0_14 = arith.constant 0 : index
    %c0_15 = arith.constant 0 : index
    %22 = vector.load %arg8[%c0_14, %c0_15] : memref<512x256xbf16, #tpu.memory_space<vmem>>, vector<512x256xbf16>
    %cst_16 = arith.constant dense<0.000000e+00> : vector<8x256xf32>
    %23 = tpu.matmul %21, %22, %cst_16 {dimension_numbers = #tpu.dot_dimension_numbers<[1], [0], [0], [1], [0, 0, 1, 1], [], []>} : vector<8x512xbf16>, vector<512x256xbf16>, vector<8x256xf32> -> vector<8x256xf32>
    %c0_17 = arith.constant 0 : index
    %c0_18 = arith.constant 0 : index
    %24 = vector.load %arg9[%c0_17, %c0_18] : memref<1x256xf32, #tpu.memory_space<vmem>>, vector<1x256xf32>
    %25 = vector.broadcast %24 : vector<1x256xf32> to vector<8x256xf32>
    %26 = arith.addf %23, %25 : vector<8x256xf32>
    %cst_19 = arith.constant 0.000000e+00 : f32
    %27 = vector.broadcast %cst_19 : f32 to vector<8x256xf32>
    %28 = arith.maximumf %26, %27 : vector<8x256xf32>
    %29 = vector.extract_strided_slice %28 {offsets = [0, 0], sizes = [8, 128], strides = [1, 1]} : vector<8x256xf32> to vector<8x128xf32>
    %30 = vector.extract_strided_slice %28 {offsets = [0, 128], sizes = [8, 128], strides = [1, 1]} : vector<8x256xf32> to vector<8x128xf32>
    %cst_20 = arith.constant 5.000000e-01 : f32
    %31 = vector.broadcast %cst_20 : f32 to vector<8x128xf32>
    %32 = arith.mulf %31, %30 : vector<8x128xf32>
    %33 = math.exp %32 : vector<8x128xf32>
    %c0_21 = arith.constant 0 : index
    %c0_22 = arith.constant 0 : index
    %34 = vector.load %arg3[%c0_21, %c0_22] : memref<8x128xf32, #tpu.memory_space<vmem>>, vector<8x128xf32>
    %35 = arith.mulf %34, %33 : vector<8x128xf32>
    %36 = arith.addf %35, %29 : vector<8x128xf32>
    %37 = arith.truncf %36 : vector<8x128xf32> to vector<8x128xbf16>
    %38 = vector.extract_strided_slice %1 {offsets = [0, 1024], sizes = [8, 512], strides = [1, 1]} : vector<8x2048xbf16> to vector<8x512xbf16>
    %c0_23 = arith.constant 0 : index
    %c0_24 = arith.constant 0 : index
    %39 = vector.load %arg10[%c0_23, %c0_24] : memref<128x512xbf16, #tpu.memory_space<vmem>>, vector<128x512xbf16>
    %cst_25 = arith.constant dense<0.000000e+00> : vector<8x512xf32>
    %40 = tpu.matmul %37, %39, %cst_25 {dimension_numbers = #tpu.dot_dimension_numbers<[1], [0], [0], [1], [0, 0, 1, 1], [], []>} : vector<8x128xbf16>, vector<128x512xbf16>, vector<8x512xf32> -> vector<8x512xf32>
    %c0_26 = arith.constant 0 : index
    %c0_27 = arith.constant 0 : index
    %41 = vector.load %arg11[%c0_26, %c0_27] : memref<1x512xf32, #tpu.memory_space<vmem>>, vector<1x512xf32>
    %42 = vector.broadcast %41 : vector<1x512xf32> to vector<8x512xf32>
    %43 = arith.addf %40, %42 : vector<8x512xf32>
    %cst_28 = arith.constant 0.000000e+00 : f32
    %44 = vector.broadcast %cst_28 : f32 to vector<8x512xf32>
    %45 = arith.maximumf %43, %44 : vector<8x512xf32>
    %46 = arith.truncf %45 : vector<8x512xf32> to vector<8x512xbf16>
    %47 = arith.mulf %46, %38 : vector<8x512xbf16>
    %48 = vector.extract_strided_slice %1 {offsets = [0, 1536], sizes = [8, 512], strides = [1, 1]} : vector<8x2048xbf16> to vector<8x512xbf16>
    %c0_29 = arith.constant 0 : index
    %c0_30 = arith.constant 0 : index
    %49 = vector.load %arg12[%c0_29, %c0_30] : memref<512x512xbf16, #tpu.memory_space<vmem>>, vector<512x512xbf16>
    %cst_31 = arith.constant dense<0.000000e+00> : vector<8x512xf32>
    %50 = tpu.matmul %47, %49, %cst_31 {dimension_numbers = #tpu.dot_dimension_numbers<[1], [0], [0], [1], [0, 0, 1, 1], [], []>} : vector<8x512xbf16>, vector<512x512xbf16>, vector<8x512xf32> -> vector<8x512xf32>
    %c0_32 = arith.constant 0 : index
    %c0_33 = arith.constant 0 : index
    %51 = vector.load %arg13[%c0_32, %c0_33] : memref<1x512xf32, #tpu.memory_space<vmem>>, vector<1x512xf32>
    %52 = vector.broadcast %51 : vector<1x512xf32> to vector<8x512xf32>
    %53 = arith.addf %50, %52 : vector<8x512xf32>
    %cst_34 = arith.constant 0.000000e+00 : f32
    %54 = vector.broadcast %cst_34 : f32 to vector<8x512xf32>
    %55 = arith.maximumf %53, %54 : vector<8x512xf32>
    %56 = arith.truncf %55 : vector<8x512xf32> to vector<8x512xbf16>
    %57 = arith.mulf %56, %48 : vector<8x512xbf16>
    %c0_35 = arith.constant 0 : index
    %c0_36 = arith.constant 0 : index
    %58 = vector.load %arg14[%c0_35, %c0_36] : memref<512x896xbf16, #tpu.memory_space<vmem>>, vector<512x896xbf16>
    %cst_37 = arith.constant dense<0.000000e+00> : vector<8x896xf32>
    %59 = tpu.matmul %57, %58, %cst_37 {dimension_numbers = #tpu.dot_dimension_numbers<[1], [0], [0], [1], [0, 0, 1, 1], [], []>} : vector<8x512xbf16>, vector<512x896xbf16>, vector<8x896xf32> -> vector<8x896xf32>
    %c0_38 = arith.constant 0 : index
    %c0_39 = arith.constant 0 : index
    %60 = vector.load %arg15[%c0_38, %c0_39] : memref<1x896xf32, #tpu.memory_space<vmem>>, vector<1x896xf32>
    %61 = vector.broadcast %60 : vector<1x896xf32> to vector<8x896xf32>
    %62 = arith.addf %59, %61 : vector<8x896xf32>
    %63 = arith.negf %62 : vector<8x896xf32>
    %64 = math.exp %63 : vector<8x896xf32>
    %cst_40 = arith.constant 1.000000e+00 : f32
    %65 = vector.broadcast %cst_40 : f32 to vector<8x896xf32>
    %66 = arith.addf %65, %64 : vector<8x896xf32>
    %67 = arith.divf %65, %66 : vector<8x896xf32>
    %c0_41 = arith.constant 0 : index
    %c0_42 = arith.constant 0 : index
    %68 = vector.load %arg16[%c0_41, %c0_42] : memref<8x896xf32, #tpu.memory_space<vmem>>, vector<8x896xf32>
    tpu.vector_store %arg16[%c0_41, %c0_42], %67 {strides = array<i32>} : memref<8x896xf32, #tpu.memory_space<vmem>>, vector<8x896xf32>,
    return
  }
  func.func @transform_0(%arg0: i32) -> (i32, i32) {
    %c0_i32 = arith.constant 0 : i32
    %c0_i32_0 = arith.constant 0 : i32
    return %arg0, %c0_i32 : i32, i32
  }
  func.func @transform_1(%arg0: i32) -> (i32, i32) {
    %c0_i32 = arith.constant 0 : i32
    %c0_i32_0 = arith.constant 0 : i32
    return %arg0, %c0_i32 : i32, i32
  }
  func.func @transform_2(%arg0: i32) -> (i32, i32) {
    %c0_i32 = arith.constant 0 : i32
    %c0_i32_0 = arith.constant 0 : i32
    return %arg0, %c0_i32 : i32, i32
  }
  func.func @transform_3(%arg0: i32) -> (i32, i32) {
    %c0_i32 = arith.constant 0 : i32
    %c0_i32_0 = arith.constant 0 : i32
    %c0_i32_1 = arith.constant 0 : i32
    return %c0_i32, %c0_i32_0 : i32, i32
  }
  func.func @transform_4(%arg0: i32) -> (i32, i32) {
    %c0_i32 = arith.constant 0 : i32
    %c0_i32_0 = arith.constant 0 : i32
    %c0_i32_1 = arith.constant 0 : i32
    return %c0_i32, %c0_i32_0 : i32, i32
  }
  func.func @transform_5(%arg0: i32) -> (i32, i32) {
    %c0_i32 = arith.constant 0 : i32
    %c0_i32_0 = arith.constant 0 : i32
    %c0_i32_1 = arith.constant 0 : i32
    return %c0_i32, %c0_i32_0 : i32, i32
  }
  func.func @transform_6(%arg0: i32) -> (i32, i32) {
    %c0_i32 = arith.constant 0 : i32
    %c0_i32_0 = arith.constant 0 : i32
    %c0_i32_1 = arith.constant 0 : i32
    return %c0_i32, %c0_i32_0 : i32, i32
  }
  func.func @transform_7(%arg0: i32) -> (i32, i32) {
    %c0_i32 = arith.constant 0 : i32
    %c0_i32_0 = arith.constant 0 : i32
    %c0_i32_1 = arith.constant 0 : i32
    return %c0_i32, %c0_i32_0 : i32, i32
  }
  func.func @transform_8(%arg0: i32) -> (i32, i32) {
    %c0_i32 = arith.constant 0 : i32
    %c0_i32_0 = arith.constant 0 : i32
    %c0_i32_1 = arith.constant 0 : i32
    return %c0_i32, %c0_i32_0 : i32, i32
  }
  func.func @transform_9(%arg0: i32) -> (i32, i32) {
    %c0_i32 = arith.constant 0 : i32
    %c0_i32_0 = arith.constant 0 : i32
    %c0_i32_1 = arith.constant 0 : i32
    return %c0_i32, %c0_i32_0 : i32, i32
  }
  func.func @transform_10(%arg0: i32) -> (i32, i32) {
    %c0_i32 = arith.constant 0 : i32
    %c0_i32_0 = arith.constant 0 : i32
    %c0_i32_1 = arith.constant 0 : i32
    return %c0_i32, %c0_i32_0 : i32, i32
  }
  func.func @transform_11(%arg0: i32) -> (i32, i32) {
    %c0_i32 = arith.constant 0 : i32
    %c0_i32_0 = arith.constant 0 : i32
    %c0_i32_1 = arith.constant 0 : i32
    return %c0_i32, %c0_i32_0 : i32, i32
  }
  func.func @transform_12(%arg0: i32) -> (i32, i32) {
    %c0_i32 = arith.constant 0 : i32
    %c0_i32_0 = arith.constant 0 : i32
    %c0_i32_1 = arith.constant 0 : i32
    return %c0_i32, %c0_i32_0 : i32, i32
  }
  func.func @transform_13(%arg0: i32) -> (i32, i32) {
    %c0_i32 = arith.constant 0 : i32
    %c0_i32_0 = arith.constant 0 : i32
    %c0_i32_1 = arith.constant 0 : i32
    return %c0_i32, %c0_i32_0 : i32, i32
  }
  func.func @transform_14(%arg0: i32) -> (i32, i32) {
    %c0_i32 = arith.constant 0 : i32
    %c0_i32_0 = arith.constant 0 : i32
    %c0_i32_1 = arith.constant 0 : i32
    return %c0_i32, %c0_i32_0 : i32, i32
  }
  func.func @transform_15(%arg0: i32) -> (i32, i32) {
    %c0_i32 = arith.constant 0 : i32
    %c0_i32_0 = arith.constant 0 : i32
    return %arg0, %c0_i32 : i32, i32
  }
}

</mosaic_0001>

<bundles_post_ra>
// kernel: vae_forward.1
= control target key start
LH: loop header
LB: loop body
LE: loop exit
PB: predicated region body
PF: predicated region fallthrough
CT: control target
= control target key end

     0   :  { %20 = vsyncpa [#allocation3], 0  ;;  %s9251_s0 = inlined_call_operand.vmem [shape: bf16[8,896], index: 0, kind: input, shape index: {}]   ;;  %s9252_s1 = inlined_call_operand.vmem [shape: bf16[8,2048], index: 1, kind: input, shape index: {}]   ;;  %s9253_s2 = inlined_call_operand.vmem [shape: f32[8,128], index: 2, kind: input, shape index: {}]   ;;  %s9254_s3 = inlined_call_operand.hbm [shape: bf16[896,512], index: 3, kind: input, shape index: {}]   ;;  %s9255_s4 = inlined_call_operand.vmem [shape: f32[1,512], index: 4, kind: input, shape index: {}]   ;;  %s9256_s5 = inlined_call_operand.hbm [shape: bf16[512,512], index: 5, kind: input, shape index: {}]   ;;  %s9257_s6 = inlined_call_operand.vmem [shape: f32[1,512], index: 6, kind: input, shape index: {}]   ;;  %s9258_s7 = inlined_call_operand.hbm [shape: bf16[512,256], index: 7, kind: input, shape index: {}]   ;;  %s9259_s8 = inlined_call_operand.vmem [shape: f32[1,256], index: 8, kind: input, shape index: {}]   ;;  %s9260_s9 = inlined_call_operand.hbm [shape: bf16[128,512], index: 9, kind: input, shape index: {}]   ;;  %s9261_s10 = inlined_call_operand.vmem [shape: f32[1,512], index: 10, kind: input, shape index: {}]   ;;  %s9262_s11 = inlined_call_operand.hbm [shape: bf16[512,512], index: 11, kind: input, shape index: {}]   ;;  %s9263_s12 = inlined_call_operand.vmem [shape: f32[1,512], index: 12, kind: input, shape index: {}]   ;;  %s9264_s13 = inlined_call_operand.hbm [shape: bf16[512,896], index: 13, kind: input, shape index: {}]   ;;  %s9265_s14 = inlined_call_operand.vmem [shape: f32[1,896], index: 14, kind: input, shape index: {}]   ;;  %s9266_s15 = inlined_call_operand.vmem [shape: f32[8,896], index: 15, kind: output, shape index: {}]  }
   0x1   :  { %21 = vsyncpa [#allocation5], 0 }
   0x2   :  { %22 = vsyncpa [#allocation8], 0 }
   0x3   :  { %23 = vsyncpa [#allocation11], 0  ;;  %s8827_s18 = smov [#allocation4]   ;;  %s8828_s20 = smov [#allocation7]  }
   0x4   :  { %s49_s19 = sshll.u32 %s8827_s18, 4  ;;  %s77_s21 = sshll.u32 %s8828_s20, 4  ;;  %s50_s19 = int_to_ptr.vmem [resolvable:$true] %s49_s19  ;;  %s8920_s21 = int_to_ptr.vmem [resolvable:$true] %s77_s21 }
   0x5   :  { %s8687_s24 = scalar_lea.hbm %s9256_s5, 16384 }
   0x6   :  { %p8688_p0 = scmp.ne.s32.totalorder %s9256_s5, %s8687_s24  ;;  %p8691_p1 = scmp.lt.u32.totalorder %s8687_s24, %s9256_s5 }
   0x8   :  { %p8693_p2 = pnand %p8691_p1, %p8688_p0 }
   0xa   :  { %8696 = shalt.err (!%p8693_p2)
}
   0xb   :  { %s8697_s29 = scalar_lea.vmem %s50_s19, 16384  ;;  %p8702_p4 = scmp.lt.s32.totalorder %s50_s19, %s50_s19 }
   0xc   :  { %p8698_p3 = scmp.ne.s32.totalorder %s50_s19, %s8697_s29  ;;  %p8703_p5 = scmp.lt.s32.totalorder %s8697_s29, %s8697_s29 }
   0xe   :  { %p8704_p6 = por %p8703_p5, %p8702_p4 }
  0x10   :  { %p8705_p7 = pnand %p8704_p6, %p8698_p3 }
  0x12   :  { %8708 = shalt.err (!%p8705_p7)
}
  0x13   :  { %s8829_s30 = smov 256   ;;  %s8830_s16 = smov 16  }
  0x14   :  { %55 = dma.hbm_to_vmem [thread:$0]  %s9256_s5, 16384, %s50_s19, [#allocation5], %s8829_s30, %s8829_s30, %s8830_s16  }
  0x15   :  { %s8709_s23 = scalar_lea.hbm %s9260_s9, 4096 }
  0x16   :  { %p8710_p8 = scmp.ne.s32.totalorder %s9260_s9, %s8709_s23  ;;  %p8713_p9 = scmp.lt.u32.totalorder %s8709_s23, %s9260_s9 }
  0x18   :  { %p8715_p10 = pnand %p8713_p9, %p8710_p8 }
  0x1a   :  { %8718 = shalt.err (!%p8715_p10)
}
  0x1b   :  { %s8719_s28 = scalar_lea.vmem %s8920_s21, 4096  ;;  %p8724_p12 = scmp.lt.s32.totalorder %s8920_s21, %s8920_s21 }
  0x1c   :  { %p8720_p11 = scmp.ne.s32.totalorder %s8920_s21, %s8719_s28  ;;  %p8725_p13 = scmp.lt.s32.totalorder %s8719_s28, %s8719_s28 }
  0x1e   :  { %p8726_p0 = por %p8725_p13, %p8724_p12 }
  0x20   :  { %p8727_p1 = pnand %p8726_p0, %p8720_p11 }
  0x22   :  { %8730 = shalt.err (!%p8727_p1)
}
  0x23   :  { %83 = dma.hbm_to_vmem [thread:$0]  %s9260_s9, 4096, %s8920_s21, [#allocation8], %s8829_s30, %s8829_s30, %s8830_s16  }
  0x24   :  { %s8831_s29 = smov [#allocation2]   ;;  %s8832_s18 = smov [#allocation6]  }
  0x25   :  { %s35_s17 = sshll.u32 %s8831_s29, 4  ;;  %s63_s20 = sshll.u32 %s8832_s18, 4  ;;  %s36_s17 = int_to_ptr.vmem [resolvable:$true] %s35_s17  ;;  %s8957_s20 = int_to_ptr.vmem [resolvable:$true] %s63_s20 }
  0x26   :  { %s8731_s24 = scalar_lea.hbm %s9254_s3, 28672 }
  0x27   :  { %p8732_p2 = scmp.ne.s32.totalorder %s9254_s3, %s8731_s24  ;;  %p8735_p3 = scmp.lt.u32.totalorder %s8731_s24, %s9254_s3 }
  0x29   :  { %p8737_p4 = pnand %p8735_p3, %p8732_p2 }
  0x2b   :  { %8740 = shalt.err (!%p8737_p4)
}
  0x2c   :  { %s8741_s9 = scalar_lea.vmem %s36_s17, 28672  ;;  %p8746_p6 = scmp.lt.s32.totalorder %s36_s17, %s36_s17 }
  0x2d   :  { %p8742_p5 = scmp.ne.s32.totalorder %s36_s17, %s8741_s9  ;;  %p8747_p7 = scmp.lt.s32.totalorder %s8741_s9, %s8741_s9 }
  0x2f   :  { %p8748_p8 = por %p8747_p7, %p8746_p6 }
  0x31   :  { %p8749_p9 = pnand %p8748_p8, %p8742_p5 }
  0x33   :  { %8752 = shalt.err (!%p8749_p9)
}
  0x34   :  { %41 = dma.hbm_to_vmem [thread:$0]  %s9254_s3, 28672, %s36_s17, [#allocation3], %s8829_s30, %s8829_s30, %s8830_s16  }
  0x35   :  { %s8753_s18 = scalar_lea.hbm %s9258_s7, 8192 }
  0x36   :  { %p8754_p10 = scmp.ne.s32.totalorder %s9258_s7, %s8753_s18  ;;  %p8757_p11 = scmp.lt.u32.totalorder %s8753_s18, %s9258_s7 }
  0x38   :  { %p8759_p12 = pnand %p8757_p11, %p8754_p10 }
  0x3a   :  { %8762 = shalt.err (!%p8759_p12)
}
  0x3b   :  { %s8763_s26 = scalar_lea.vmem %s8957_s20, 8192  ;;  %p8768_p0 = scmp.lt.s32.totalorder %s8957_s20, %s8957_s20 }
  0x3c   :  { %p8764_p13 = scmp.ne.s32.totalorder %s8957_s20, %s8763_s26  ;;  %p8769_p1 = scmp.lt.s32.totalorder %s8763_s26, %s8763_s26 }
  0x3e   :  { %p8770_p2 = por %p8769_p1, %p8768_p0 }
  0x40   :  { %p8771_p3 = pnand %p8770_p2, %p8764_p13 }
  0x42   :  { %8774 = shalt.err (!%p8771_p3)
}
  0x43   :  { %s8833_s3 = smov 128   ;;  %s8834_s17 = smov 8  }
  0x44   :  { %69 = dma.hbm_to_vmem [thread:$0]  %s9258_s7, 8192, %s8957_s20, [#allocation5], %s8833_s3, %s8833_s3, %s8834_s17  }
  0x45   :  { %s8835_s9 = smov [#allocation9]   ;;  %s8836_s5 = smov [#allocation10]  }
  0x46   :  { %s91_s21 = sshll.u32 %s8835_s9, 4  ;;  %s105_s19 = sshll.u32 %s8836_s5, 4  ;;  %s92_s21 = int_to_ptr.vmem [resolvable:$true] %s91_s21  ;;  %s8991_s19 = int_to_ptr.vmem [resolvable:$true] %s105_s19 }
  0x47   :  { %s8775_s22 = scalar_lea.hbm %s9262_s11, 16384 }
  0x48   :  { %p8776_p4 = scmp.ne.s32.totalorder %s9262_s11, %s8775_s22  ;;  %p8779_p5 = scmp.lt.u32.totalorder %s8775_s22, %s9262_s11 }
  0x4a   :  { %p8781_p6 = pnand %p8779_p5, %p8776_p4 }
  0x4c   :  { %8784 = shalt.err (!%p8781_p6)
}
  0x4d   :  { %s8785_s7 = scalar_lea.vmem %s92_s21, 16384  ;;  %p8790_p8 = scmp.lt.s32.totalorder %s92_s21, %s92_s21 }
  0x4e   :  { %p8786_p7 = scmp.ne.s32.totalorder %s92_s21, %s8785_s7  ;;  %p8791_p9 = scmp.lt.s32.totalorder %s8785_s7, %s8785_s7 }
  0x50   :  { %p8792_p10 = por %p8791_p9, %p8790_p8 }
  0x52   :  { %p8793_p11 = pnand %p8792_p10, %p8786_p7 }
  0x54   :  { %8796 = shalt.err (!%p8793_p11)
}
  0x55   :  { %97 = dma.hbm_to_vmem [thread:$0]  %s9262_s11, 16384, %s92_s21, [#allocation8], %s8829_s30, %s8829_s30, %s8830_s16  }
  0x56   :  { %s8797_s28 = scalar_lea.hbm %s9264_s13, 28672 }
  0x57   :  { %p8798_p12 = scmp.ne.s32.totalorder %s9264_s13, %s8797_s28  ;;  %p8801_p13 = scmp.lt.u32.totalorder %s8797_s28, %s9264_s13 }
  0x59   :  { %p8803_p0 = pnand %p8801_p13, %p8798_p12 }
  0x5b   :  { %8806 = shalt.err (!%p8803_p0)
}
  0x5c   :  { %s8807_s22 = scalar_lea.vmem %s8991_s19, 28672  ;;  %p8812_p2 = scmp.lt.s32.totalorder %s8991_s19, %s8991_s19 }
  0x5d   :  { %p8808_p1 = scmp.ne.s32.totalorder %s8991_s19, %s8807_s22  ;;  %p8813_p3 = scmp.lt.s32.totalorder %s8807_s22, %s8807_s22 }
  0x5f   :  { %p8814_p4 = por %p8813_p3, %p8812_p2 }
  0x61   :  { %p8815_p5 = pnand %p8814_p4, %p8808_p1 }
  0x63   :  { %8818 = shalt.err (!%p8815_p5)
}
  0x64   :  { %s8837_s11 = smov 448   ;;  %s8838_s30 = smov 28  }
  0x65   :  { %111 = dma.hbm_to_vmem [thread:$0]  %s9264_s13, 28672, %s8991_s19, [#allocation11], %s8837_s11, %s8837_s11, %s8838_s30  }
  0x66   :  { %8819 = dma.done.wait [#allocation3], 28672  }
  0x67   :  { %8820 = vsyncadd [#allocation3], 4294938624 }
  0x68   :  { %8821 = dma.done.wait [#allocation5], 24576  }
  0x69   :  { %8822 = vsyncadd [#allocation5], 4294942720 }
  0x6a   :  { %8823 = dma.done.wait [#allocation8], 20480  }
  0x6b   :  { %8824 = vsyncadd [#allocation8], 4294946816 }
  0x6c   :  { %8825 = dma.done.wait [#allocation11], 28672  }
  0x6d   :  { %8826 = vsyncadd [#allocation11], 4294938624  ;;  %v7450_v0 = vld [vmem:[#allocation2 + $0x4] ss:$16 sps:$4 sm:$0xff]   ;;  %v7452_v1 = vld [vmem:[#allocation2 + $0xc] ss:$16 sps:$4 sm:$0xff]  }
  0x6e   :  { %1536 = vmatprep.subr.bf16.mxu0 %v7450_v0  ;;  %v7454_v2 = vld [vmem:[#allocation2] ss:$16 sps:$4 sm:$0xff]   ;;  %v7455_v3 = vld [vmem:[#allocation2 + $0x8] ss:$16 sps:$4 sm:$0xff]   ;;  %1700 = vmatprep.subr.bf16.mxu1 %v7452_v1  ;;  %v7456_v4 = vld [vmem:[#allocation2 + $0x24] ss:$16 sps:$4 sm:$0xff]  }
  0x6f   :  { %1537 = vmatpush1.bf16.msra.mxu0 %v7454_v2  ;;  %1701 = vmatpush1.bf16.msra.mxu1 %v7455_v3  ;;  %v7458_v5 = vld [vmem:[#allocation2 + $0x2c] ss:$16 sps:$4 sm:$0xff]   ;;  %v7460_v6 = vld [vmem:[#allocation2 + $0x20] ss:$16 sps:$4 sm:$0xff]   ;;  %v7461_v7 = vld [vmem:[#allocation2 + $0x28] ss:$16 sps:$4 sm:$0xff]  }
  0x70   :  { %1538 = vmatprep.subr.bf16.mxu0 %v7456_v4  ;;  %1702 = vmatprep.subr.bf16.mxu1 %v7458_v5  ;;  %v7462_v8 = vld [vmem:[#allocation2 + $0x44] ss:$16 sps:$4 sm:$0xff]   ;;  %v7464_v9 = vld [vmem:[#allocation2 + $0x4c] ss:$16 sps:$4 sm:$0xff]   ;;  %v7466_v10 = vld [vmem:[#allocation2 + $0x40] ss:$16 sps:$4 sm:$0xff]  }
  0x71   :  { %v7467_v11 = vld [vmem:[#allocation2 + $0x48] ss:$16 sps:$4 sm:$0xff]   ;;  %v7468_v12 = vld [vmem:[#allocation2 + $0x64] ss:$16 sps:$4 sm:$0xff]   ;;  %v7470_v13 = vld [vmem:[#allocation2 + $0x6c] ss:$16 sps:$4 sm:$0xff]  }
  0x72   :  { %v7472_v14 = vld [vmem:[#allocation2 + $0x60] ss:$16 sps:$4 sm:$0xff]   ;;  %v7473_v15 = vld [vmem:[#allocation2 + $0x68] ss:$16 sps:$4 sm:$0xff]   ;;  %v7474_v16 = vld [vmem:[#allocation2 + $0x84] ss:$16 sps:$4 sm:$0xff]  }
  0x73   :  { %1539 = vmatpush1.bf16.msra.mxu0 %v7460_v6  ;;  %1703 = vmatpush1.bf16.msra.mxu1 %v7461_v7  ;;  %v7476_v17 = vld [vmem:[#allocation2 + $0x8c] ss:$16 sps:$4 sm:$0xff]   ;;  %v7478_v18 = vld [vmem:[#allocation2 + $0x80] ss:$16 sps:$4 sm:$0xff]   ;;  %v7479_v19 = vld [vmem:[#allocation2 + $0x88] ss:$16 sps:$4 sm:$0xff]  }
  0x74   :  { %1540 = vmatprep.subr.bf16.mxu0 %v7462_v8  ;;  %1704 = vmatprep.subr.bf16.mxu1 %v7464_v9  ;;  %v7480_v20 = vld [vmem:[#allocation2 + $0xa4] ss:$16 sps:$4 sm:$0xff]   ;;  %v7482_v21 = vld [vmem:[#allocation2 + $0xac] ss:$16 sps:$4 sm:$0xff]   ;;  %v7484_v22 = vld [vmem:[#allocation2 + $0xa0] ss:$16 sps:$4 sm:$0xff]  }
  0x75   :  { %v7485_v23 = vld [vmem:[#allocation2 + $0xa8] ss:$16 sps:$4 sm:$0xff]   ;;  %v7486_v24 = vld [vmem:[#allocation2 + $0xc4] ss:$16 sps:$4 sm:$0xff]   ;;  %v7488_v25 = vld [vmem:[#allocation2 + $0xcc] ss:$16 sps:$4 sm:$0xff]  }
  0x76   :  { %v7490_v26 = vld [vmem:[#allocation2 + $0xc0] ss:$16 sps:$4 sm:$0xff]   ;;  %v7491_v27 = vld [vmem:[#allocation2 + $0xc8] ss:$16 sps:$4 sm:$0xff]   ;;  %v7492_v28 = vld [vmem:[#allocation2 + $0xe4] ss:$16 sps:$4 sm:$0xff]  }
  0x77   :  { %1541 = vmatpush1.bf16.msra.mxu0 %v7466_v10  ;;  %1705 = vmatpush1.bf16.msra.mxu1 %v7467_v11  ;;  %v7494_v29 = vld [vmem:[#allocation2 + $0xec] ss:$16 sps:$4 sm:$0xff]   ;;  %v7496_v30 = vld [vmem:[#allocation2 + $0xe0] ss:$16 sps:$4 sm:$0xff]   ;;  %v7497_v31 = vld [vmem:[#allocation2 + $0xe8] ss:$16 sps:$4 sm:$0xff]  }
  0x78   :  { %1542 = vmatprep.subr.bf16.mxu0 %v7468_v12  ;;  %1706 = vmatprep.subr.bf16.mxu1 %v7470_v13  ;;  %v7498_v32 = vld [vmem:[#allocation2 + $0x104] ss:$16 sps:$4 sm:$0xff]   ;;  %v7500_v33 = vld [vmem:[#allocation2 + $0x10c] ss:$16 sps:$4 sm:$0xff]   ;;  %v7502_v34 = vld [vmem:[#allocation2 + $0x100] ss:$16 sps:$4 sm:$0xff]  }
  0x79   :  { %v7503_v35 = vld [vmem:[#allocation2 + $0x108] ss:$16 sps:$4 sm:$0xff]   ;;  %v7504_v36 = vld [vmem:[#allocation2 + $0x124] ss:$16 sps:$4 sm:$0xff]   ;;  %v7506_v37 = vld [vmem:[#allocation2 + $0x12c] ss:$16 sps:$4 sm:$0xff]  }
  0x7a   :  { %v7508_v38 = vld [vmem:[#allocation2 + $0x120] ss:$16 sps:$4 sm:$0xff]   ;;  %v7509_v39 = vld [vmem:[#allocation2 + $0x128] ss:$16 sps:$4 sm:$0xff]   ;;  %v7510_v40 = vld [vmem:[#allocation2 + $0x144] ss:$16 sps:$4 sm:$0xff]  }
  0x7b   :  { %1543 = vmatpush1.bf16.msra.mxu0 %v7472_v14  ;;  %1707 = vmatpush1.bf16.msra.mxu1 %v7473_v15  ;;  %v7512_v41 = vld [vmem:[#allocation2 + $0x14c] ss:$16 sps:$4 sm:$0xff]   ;;  %v7514_v42 = vld [vmem:[#allocation2 + $0x140] ss:$16 sps:$4 sm:$0xff]   ;;  %v7515_v43 = vld [vmem:[#allocation2 + $0x148] ss:$16 sps:$4 sm:$0xff]  }
  0x7c   :  { %1544 = vmatprep.subr.bf16.mxu0 %v7474_v16  ;;  %1708 = vmatprep.subr.bf16.mxu1 %v7476_v17  ;;  %v7516_v44 = vld [vmem:[#allocation2 + $0x164] ss:$16 sps:$4 sm:$0xff]   ;;  %v7518_v45 = vld [vmem:[#allocation2 + $0x16c] ss:$16 sps:$4 sm:$0xff]   ;;  %v7520_v47 = vld [vmem:[#allocation2 + $0x160] ss:$16 sps:$4 sm:$0xff]  }
  0x7d   :  { %v133_v46 = vld [vmem:[%s9251_s0] sm:$0xff]  ;;  %v7521_v49 = vld [vmem:[#allocation2 + $0x168] ss:$16 sps:$4 sm:$0xff]   ;;  %v7524_v51 = vld [vmem:[#allocation2 + $0x18c] ss:$16 sps:$4 sm:$0xff]  }
  0x7e   :  { %v6488_v48 = vcombine.high %v133_v46, %v133_v46  ;;  %v7522_v50 = vld [vmem:[#allocation2 + $0x184] ss:$16 sps:$4 sm:$0xff]   ;;  %v7526_v52 = vld [vmem:[#allocation2 + $0x180] ss:$16 sps:$4 sm:$0xff]   ;;  %v7527_v53 = vld [vmem:[#allocation2 + $0x188] ss:$16 sps:$4 sm:$0xff]   ;;  %v6487_v4 = vcombine.low %v133_v46, %v133_v46 }
  0x7f   :  { %1545 = vmatpush1.bf16.msra.mxu0 %v7478_v18  ;;  %1709 = vmatpush1.bf16.msra.mxu1 %v7479_v19  ;;  %v7528_v54 = vld [vmem:[#allocation2 + $0x1a4] ss:$16 sps:$4 sm:$0xff]   ;;  %v7530_v55 = vld [vmem:[#allocation2 + $0x1ac] ss:$16 sps:$4 sm:$0xff]   ;;  %v7532_v56 = vld [vmem:[#allocation2 + $0x1a0] ss:$16 sps:$4 sm:$0xff]  }
  0x80   :  { %1546 = vmatprep.subr.bf16.mxu0 %v7480_v20  ;;  %1710 = vmatprep.subr.bf16.mxu1 %v7482_v21  ;;  %v7533_v57 = vld [vmem:[#allocation2 + $0x1a8] ss:$16 sps:$4 sm:$0xff]   ;;  %v7534_v58 = vld [vmem:[#allocation2 + $0x1c4] ss:$16 sps:$4 sm:$0xff]   ;;  %v7536_v59 = vld [vmem:[#allocation2 + $0x1cc] ss:$16 sps:$4 sm:$0xff]  }
  0x81   :  { %1568 = vmatprep.mubr.bf16.mxu0 %v6488_v48  ;;  %1732 = vmatprep.mubr.bf16.mxu1 %v6488_v48  ;;  %v7538_v60 = vld [vmem:[#allocation2 + $0x1c0] ss:$16 sps:$4 sm:$0xff]   ;;  %v7539_v61 = vld [vmem:[#allocation2 + $0x1c8] ss:$16 sps:$4 sm:$0xff]   ;;  %v7540_v62 = vld [vmem:[#allocation2 + $0x1e4] ss:$16 sps:$4 sm:$0xff]  }
  0x82   :  { %v7542_v63 = vld [vmem:[#allocation2 + $0x1ec] ss:$16 sps:$4 sm:$0xff]   ;;  %v7544_v0 = vld [vmem:[#allocation2 + $0x1e0] ss:$16 sps:$4 sm:$0xff]   ;;  %v7545_v1 = vld [vmem:[#allocation2 + $0x1e8] ss:$16 sps:$4 sm:$0xff]  }
  0x83   :  { %1547 = vmatpush1.bf16.msra.mxu0 %v7484_v22  ;;  %1711 = vmatpush1.bf16.msra.mxu1 %v7485_v23  ;;  %v7550_v2 = vld [vmem:[#allocation2 + $0x204] ss:$16 sps:$4 sm:$0xff]   ;;  %v7553_v3 = vld [vmem:[#allocation2 + $0x20c] ss:$16 sps:$4 sm:$0xff]   ;;  %v7548_v5 = vld [vmem:[#allocation2 + $0x200] ss:$16 sps:$4 sm:$0xff]  }
  0x84   :  { %1548 = vmatprep.subr.bf16.mxu0 %v7486_v24  ;;  %1712 = vmatprep.subr.bf16.mxu1 %v7488_v25  ;;  %v7551_v6 = vld [vmem:[#allocation2 + $0x208] ss:$16 sps:$4 sm:$0xff]   ;;  %v7556_v7 = vld [vmem:[#allocation2 + $0x224] ss:$16 sps:$4 sm:$0xff]   ;;  %v7559_v8 = vld [vmem:[#allocation2 + $0x22c] ss:$16 sps:$4 sm:$0xff]  }
  0x85   :  { %v7554_v9 = vld [vmem:[#allocation2 + $0x220] ss:$16 sps:$4 sm:$0xff]   ;;  %v7557_v10 = vld [vmem:[#allocation2 + $0x228] ss:$16 sps:$4 sm:$0xff]   ;;  %v7562_v11 = vld [vmem:[#allocation2 + $0x244] ss:$16 sps:$4 sm:$0xff]  }
  0x86   :  { %v7565_v12 = vld [vmem:[#allocation2 + $0x24c] ss:$16 sps:$4 sm:$0xff]   ;;  %v7560_v13 = vld [vmem:[#allocation2 + $0x240] ss:$16 sps:$4 sm:$0xff]   ;;  %v7563_v14 = vld [vmem:[#allocation2 + $0x248] ss:$16 sps:$4 sm:$0xff]  }
  0x87   :  { %1549 = vmatpush1.bf16.msra.mxu0 %v7490_v26  ;;  %1713 = vmatpush1.bf16.msra.mxu1 %v7491_v27  ;;  %v7568_v15 = vld [vmem:[#allocation2 + $0x264] ss:$16 sps:$4 sm:$0xff]   ;;  %v7571_v16 = vld [vmem:[#allocation2 + $0x26c] ss:$16 sps:$4 sm:$0xff]   ;;  %v7566_v17 = vld [vmem:[#allocation2 + $0x260] ss:$16 sps:$4 sm:$0xff]  }
  0x88   :  { %1550 = vmatprep.subr.bf16.mxu0 %v7492_v28  ;;  %1714 = vmatprep.subr.bf16.mxu1 %v7494_v29  ;;  %v7569_v18 = vld [vmem:[#allocation2 + $0x268] ss:$16 sps:$4 sm:$0xff]   ;;  %v7574_v19 = vld [vmem:[#allocation2 + $0x284] ss:$16 sps:$4 sm:$0xff]   ;;  %v7577_v20 = vld [vmem:[#allocation2 + $0x28c] ss:$16 sps:$4 sm:$0xff]  }
  0x89   :  { %v7572_v21 = vld [vmem:[#allocation2 + $0x280] ss:$16 sps:$4 sm:$0xff]   ;;  %v7575_v22 = vld [vmem:[#allocation2 + $0x288] ss:$16 sps:$4 sm:$0xff]   ;;  %v7580_v23 = vld [vmem:[#allocation2 + $0x2a4] ss:$16 sps:$4 sm:$0xff]  }
  0x8a   :  { %v7583_v24 = vld [vmem:[#allocation2 + $0x2ac] ss:$16 sps:$4 sm:$0xff]   ;;  %v7578_v25 = vld [vmem:[#allocation2 + $0x2a0] ss:$16 sps:$4 sm:$0xff]   ;;  %v7581_v26 = vld [vmem:[#allocation2 + $0x2a8] ss:$16 sps:$4 sm:$0xff]  }
  0x8b   :  { %1551 = vmatpush1.bf16.msra.mxu0 %v7496_v30  ;;  %1715 = vmatpush1.bf16.msra.mxu1 %v7497_v31  ;;  %v7586_v27 = vld [vmem:[#allocation2 + $0x2c4] ss:$16 sps:$4 sm:$0xff]   ;;  %v7589_v28 = vld [vmem:[#allocation2 + $0x2cc] ss:$16 sps:$4 sm:$0xff]   ;;  %v7584_v31 = vld [vmem:[#allocation2 + $0x2c0] ss:$16 sps:$4 sm:$0xff]  }
  0x8c   :  { %1552 = vmatprep.subr.bf16.mxu0 %v7498_v32  ;;  %1716 = vmatprep.subr.bf16.mxu1 %v7500_v33  ;;  %v9031_v29 = vld [vmem:[%s9251_s0 + $0x8] sm:$0xff]  ;;  %v7592_v33 = vld [vmem:[#allocation2 + $0x2e4] ss:$16 sps:$4 sm:$0xff]  }
  0x8d   :  { %v6490_v30 = vcombine.high %v9031_v29, %v9031_v29  ;;  %v7587_v32 = vld [vmem:[#allocation2 + $0x2c8] ss:$16 sps:$4 sm:$0xff]   ;;  %v7613_v46 = vld [vmem:[#allocation2 + $0x34c] ss:$16 sps:$4 sm:$0xff]  }
  0x8e   :  { %v7611_v48 = vld [vmem:[#allocation2 + $0x348] ss:$16 sps:$4 sm:$0xff]  }
  0x8f   :  { %1553 = vmatpush1.bf16.msra.mxu0 %v7502_v34  ;;  %1717 = vmatpush1.bf16.msra.mxu1 %v7503_v35  ;;  %v7595_v34 = vld [vmem:[#allocation2 + $0x2ec] ss:$16 sps:$4 sm:$0xff]   ;;  %v7590_v35 = vld [vmem:[#allocation2 + $0x2e0] ss:$16 sps:$4 sm:$0xff]  }
  0x90   :  { %1554 = vmatprep.subr.bf16.mxu0 %v7504_v36  ;;  %1718 = vmatprep.subr.bf16.mxu1 %v7506_v37  ;;  %v7593_v36 = vld [vmem:[#allocation2 + $0x2e8] ss:$16 sps:$4 sm:$0xff]   ;;  %v7598_v37 = vld [vmem:[#allocation2 + $0x304] ss:$16 sps:$4 sm:$0xff]  }
  0x93   :  { %1555 = vmatpush1.bf16.msra.mxu0 %v7508_v38  ;;  %1719 = vmatpush1.bf16.msra.mxu1 %v7509_v39  ;;  %v7601_v38 = vld [vmem:[#allocation2 + $0x30c] ss:$16 sps:$4 sm:$0xff]   ;;  %v7596_v39 = vld [vmem:[#allocation2 + $0x300] ss:$16 sps:$4 sm:$0xff]  }
  0x94   :  { %1556 = vmatprep.subr.bf16.mxu0 %v7510_v40  ;;  %1720 = vmatprep.subr.bf16.mxu1 %v7512_v41  ;;  %v7599_v40 = vld [vmem:[#allocation2 + $0x308] ss:$16 sps:$4 sm:$0xff]   ;;  %v7604_v41 = vld [vmem:[#allocation2 + $0x324] ss:$16 sps:$4 sm:$0xff]  }
  0x97   :  { %1557 = vmatpush1.bf16.msra.mxu0 %v7514_v42  ;;  %1721 = vmatpush1.bf16.msra.mxu1 %v7515_v43  ;;  %v7607_v42 = vld [vmem:[#allocation2 + $0x32c] ss:$16 sps:$4 sm:$0xff]   ;;  %v7602_v43 = vld [vmem:[#allocation2 + $0x320] ss:$16 sps:$4 sm:$0xff]  }
  0x98   :  { %1558 = vmatprep.subr.bf16.mxu0 %v7516_v44  ;;  %1722 = vmatprep.subr.bf16.mxu1 %v7518_v45  ;;  %v7605_v44 = vld [vmem:[#allocation2 + $0x328] ss:$16 sps:$4 sm:$0xff]   ;;  %v7610_v45 = vld [vmem:[#allocation2 + $0x344] ss:$16 sps:$4 sm:$0xff]  }
  0x9b   :  { %1559 = vmatpush1.bf16.msra.mxu0 %v7520_v47  ;;  %1723 = vmatpush1.bf16.msra.mxu1 %v7521_v49  ;;  %v7608_v47 = vld [vmem:[#allocation2 + $0x340] ss:$16 sps:$4 sm:$0xff]   ;;  %v7616_v49 = vld [vmem:[#allocation2 + $0x364] ss:$16 sps:$4 sm:$0xff]  }
  0x9c   :  { %1560 = vmatprep.subr.bf16.mxu0 %v7522_v50  ;;  %1724 = vmatprep.subr.bf16.mxu1 %v7524_v51  ;;  %v7619_v50 = vld [vmem:[#allocation2 + $0x36c] ss:$16 sps:$4 sm:$0xff]   ;;  %v7614_v51 = vld [vmem:[#allocation2 + $0x360] ss:$16 sps:$4 sm:$0xff]  }
  0x9f   :  { %1561 = vmatpush1.bf16.msra.mxu0 %v7526_v52  ;;  %1725 = vmatpush1.bf16.msra.mxu1 %v7527_v53  ;;  %v7617_v52 = vld [vmem:[#allocation2 + $0x368] ss:$16 sps:$4 sm:$0xff]   ;;  %v7622_v53 = vld [vmem:[#allocation2 + $0x384] ss:$16 sps:$4 sm:$0xff]  }
  0xa0   :  { %1562 = vmatprep.subr.bf16.mxu0 %v7528_v54  ;;  %1726 = vmatprep.subr.bf16.mxu1 %v7530_v55  ;;  %v7625_v54 = vld [vmem:[#allocation2 + $0x38c] ss:$16 sps:$4 sm:$0xff]   ;;  %v7620_v55 = vld [vmem:[#allocation2 + $0x380] ss:$16 sps:$4 sm:$0xff]  }
  0xa3   :  { %1563 = vmatpush1.bf16.msra.mxu0 %v7532_v56  ;;  %1727 = vmatpush1.bf16.msra.mxu1 %v7533_v57  ;;  %v7623_v56 = vld [vmem:[#allocation2 + $0x388] ss:$16 sps:$4 sm:$0xff]   ;;  %v7628_v57 = vld [vmem:[#allocation2 + $0x3a4] ss:$16 sps:$4 sm:$0xff]  }
  0xa4   :  { %1564 = vmatprep.subr.bf16.mxu0 %v7534_v58  ;;  %1728 = vmatprep.subr.bf16.mxu1 %v7536_v59  ;;  %v7631_v58 = vld [vmem:[#allocation2 + $0x3ac] ss:$16 sps:$4 sm:$0xff]   ;;  %v7626_v59 = vld [vmem:[#allocation2 + $0x3a0] ss:$16 sps:$4 sm:$0xff]  }
  0xa7   :  { %1565 = vmatpush1.bf16.msra.mxu0 %v7538_v60  ;;  %1729 = vmatpush1.bf16.msra.mxu1 %v7539_v61  ;;  %v7629_v60 = vld [vmem:[#allocation2 + $0x3a8] ss:$16 sps:$4 sm:$0xff]   ;;  %v7634_v61 = vld [vmem:[#allocation2 + $0x3c4] ss:$16 sps:$4 sm:$0xff]  }
  0xa8   :  { %1566 = vmatprep.subr.bf16.mxu0 %v7540_v62  ;;  %1730 = vmatprep.subr.bf16.mxu1 %v7542_v63  ;;  %v7637_v62 = vld [vmem:[#allocation2 + $0x3cc] ss:$16 sps:$4 sm:$0xff]   ;;  %v7632_v63 = vld [vmem:[#allocation2 + $0x3c0] ss:$16 sps:$4 sm:$0xff]  }
  0xab   :  { %1567 = vmatpush1.bf16.msra.mxu0 %v7544_v0  ;;  %1731 = vmatpush1.bf16.msra.mxu1 %v7545_v1  ;;  %v7635_v0 = vld [vmem:[#allocation2 + $0x3c8] ss:$16 sps:$4 sm:$0xff]   ;;  %v7640_v1 = vld [vmem:[#allocation2 + $0x3e4] ss:$16 sps:$4 sm:$0xff]  }
  0xac   :  { %1577 = vmatprep.subr.bf16.mxu0 %v7550_v2  ;;  %1741 = vmatprep.subr.bf16.mxu1 %v7553_v3  ;;  %v7643_v2 = vld [vmem:[#allocation2 + $0x3ec] ss:$16 sps:$4 sm:$0xff]   ;;  %v7638_v3 = vld [vmem:[#allocation2 + $0x3e0] ss:$16 sps:$4 sm:$0xff]  }
  0xae   :  { %1569 = vmatmul.mubr.bf16.vlgmr.msra.gmra.mrb[0].mxu0 %v6487_v4  ;;  %1733 = vmatmul.mubr.bf16.vlgmr.msra.gmra.mrb[0].mxu1 %v6487_v4  ;;  %v7641_v4 = vld [vmem:[#allocation2 + $0x3e8] ss:$16 sps:$4 sm:$0xff]  }
  0xaf   :  { %1578 = vmatpush1.bf16.msra.mxu0 %v7548_v5  ;;  %1742 = vmatpush1.bf16.msra.mxu1 %v7551_v6  ;;  %v7648_v5 = vld [vmem:[#allocation2 + $0x404] ss:$16 sps:$4 sm:$0xff]   ;;  %v7651_v6 = vld [vmem:[#allocation2 + $0x40c] ss:$16 sps:$4 sm:$0xff]  }
  0xb0   :  { %1579 = vmatprep.subr.bf16.mxu0 %v7556_v7  ;;  %1743 = vmatprep.subr.bf16.mxu1 %v7559_v8  ;;  %v6489_v7 = vcombine.low %v9031_v29, %v9031_v29  ;;  %v7646_v8 = vld [vmem:[#allocation2 + $0x400] ss:$16 sps:$4 sm:$0xff]   ;;  %v7681_v29 = vld [vmem:[#allocation2 + $0x4ac] ss:$16 sps:$4 sm:$0xff]  }
  0xb1   :  { %1609 = vmatprep.mubr.bf16.mxu0 %v6490_v30  ;;  %1773 = vmatprep.mubr.bf16.mxu1 %v6490_v30  ;;  %v7676_v30 = vld [vmem:[#allocation2 + $0x4a0] ss:$16 sps:$4 sm:$0xff]  }
  0xb3   :  { %1580 = vmatpush1.bf16.msra.mxu0 %v7554_v9  ;;  %1744 = vmatpush1.bf16.msra.mxu1 %v7557_v10  ;;  %v7649_v9 = vld [vmem:[#allocation2 + $0x408] ss:$16 sps:$4 sm:$0xff]   ;;  %v7654_v10 = vld [vmem:[#allocation2 + $0x424] ss:$16 sps:$4 sm:$0xff]  }
  0xb4   :  { %1581 = vmatprep.subr.bf16.mxu0 %v7562_v11  ;;  %1745 = vmatprep.subr.bf16.mxu1 %v7565_v12  ;;  %v9040_v11 = vld [vmem:[%s9251_s0 + $0x10] sm:$0xff]  ;;  %v7657_v12 = vld [vmem:[#allocation2 + $0x42c] ss:$16 sps:$4 sm:$0xff]  }
  0xb7   :  { %1582 = vmatpush1.bf16.msra.mxu0 %v7560_v13  ;;  %1746 = vmatpush1.bf16.msra.mxu1 %v7563_v14  ;;  %v6492_v13 = vcombine.high %v9040_v11, %v9040_v11  ;;  %v7652_v14 = vld [vmem:[#allocation2 + $0x420] ss:$16 sps:$4 sm:$0xff]  }
  0xb8   :  { %1583 = vmatprep.subr.bf16.mxu0 %v7568_v15  ;;  %1747 = vmatprep.subr.bf16.mxu1 %v7571_v16  ;;  %v7655_v15 = vld [vmem:[#allocation2 + $0x428] ss:$16 sps:$4 sm:$0xff]   ;;  %v7660_v16 = vld [vmem:[#allocation2 + $0x444] ss:$16 sps:$4 sm:$0xff]  }
  0xbb   :  { %1584 = vmatpush1.bf16.msra.mxu0 %v7566_v17  ;;  %1748 = vmatpush1.bf16.msra.mxu1 %v7569_v18  ;;  %v7663_v17 = vld [vmem:[#allocation2 + $0x44c] ss:$16 sps:$4 sm:$0xff]   ;;  %v7658_v18 = vld [vmem:[#allocation2 + $0x440] ss:$16 sps:$4 sm:$0xff]  }
  0xbc   :  { %1585 = vmatprep.subr.bf16.mxu0 %v7574_v19  ;;  %1749 = vmatprep.subr.bf16.mxu1 %v7577_v20  ;;  %v7661_v19 = vld [vmem:[#allocation2 + $0x448] ss:$16 sps:$4 sm:$0xff]   ;;  %v7666_v20 = vld [vmem:[#allocation2 + $0x464] ss:$16 sps:$4 sm:$0xff]  }
  0xbf   :  { %1586 = vmatpush1.bf16.msra.mxu0 %v7572_v21  ;;  %1750 = vmatpush1.bf16.msra.mxu1 %v7575_v22  ;;  %v7669_v21 = vld [vmem:[#allocation2 + $0x46c] ss:$16 sps:$4 sm:$0xff]   ;;  %v7664_v22 = vld [vmem:[#allocation2 + $0x460] ss:$16 sps:$4 sm:$0xff]  }
  0xc0   :  { %1587 = vmatprep.subr.bf16.mxu0 %v7580_v23  ;;  %1751 = vmatprep.subr.bf16.mxu1 %v7583_v24  ;;  %v7667_v23 = vld [vmem:[#allocation2 + $0x468] ss:$16 sps:$4 sm:$0xff]   ;;  %v7672_v24 = vld [vmem:[#allocation2 + $0x484] ss:$16 sps:$4 sm:$0xff]  }
  0xc3   :  { %1588 = vmatpush1.bf16.msra.mxu0 %v7578_v25  ;;  %1752 = vmatpush1.bf16.msra.mxu1 %v7581_v26  ;;  %v7675_v25 = vld [vmem:[#allocation2 + $0x48c] ss:$16 sps:$4 sm:$0xff]   ;;  %v7670_v26 = vld [vmem:[#allocation2 + $0x480] ss:$16 sps:$4 sm:$0xff]  }
  0xc4   :  { %1589 = vmatprep.subr.bf16.mxu0 %v7586_v27  ;;  %1753 = vmatprep.subr.bf16.mxu1 %v7589_v28  ;;  %v7673_v27 = vld [vmem:[#allocation2 + $0x488] ss:$16 sps:$4 sm:$0xff]   ;;  %v7678_v28 = vld [vmem:[#allocation2 + $0x4a4] ss:$16 sps:$4 sm:$0xff]  }
  0xc7   :  { %1590 = vmatpush1.bf16.msra.mxu0 %v7584_v31  ;;  %1754 = vmatpush1.bf16.msra.mxu1 %v7587_v32  ;;  %v7679_v31 = vld [vmem:[#allocation2 + $0x4a8] ss:$16 sps:$4 sm:$0xff]   ;;  %v7684_v32 = vld [vmem:[#allocation2 + $0x4c4] ss:$16 sps:$4 sm:$0xff]  }
  0xc8   :  { %1591 = vmatprep.subr.bf16.mxu0 %v7592_v33  ;;  %1755 = vmatprep.subr.bf16.mxu1 %v7595_v34  ;;  %v7687_v33 = vld [vmem:[#allocation2 + $0x4cc] ss:$16 sps:$4 sm:$0xff]   ;;  %v7682_v34 = vld [vmem:[#allocation2 + $0x4c0] ss:$16 sps:$4 sm:$0xff]  }
  0xcb   :  { %1592 = vmatpush1.bf16.msra.mxu0 %v7590_v35  ;;  %1756 = vmatpush1.bf16.msra.mxu1 %v7593_v36  ;;  %v7685_v35 = vld [vmem:[#allocation2 + $0x4c8] ss:$16 sps:$4 sm:$0xff]   ;;  %v7690_v36 = vld [vmem:[#allocation2 + $0x4e4] ss:$16 sps:$4 sm:$0xff]  }
  0xcc   :  { %1593 = vmatprep.subr.bf16.mxu0 %v7598_v37  ;;  %1757 = vmatprep.subr.bf16.mxu1 %v7601_v38  ;;  %v7693_v37 = vld [vmem:[#allocation2 + $0x4ec] ss:$16 sps:$4 sm:$0xff]   ;;  %v7688_v38 = vld [vmem:[#allocation2 + $0x4e0] ss:$16 sps:$4 sm:$0xff]  }
  0xcf   :  { %1594 = vmatpush1.bf16.msra.mxu0 %v7596_v39  ;;  %1758 = vmatpush1.bf16.msra.mxu1 %v7599_v40  ;;  %v7691_v39 = vld [vmem:[#allocation2 + $0x4e8] ss:$16 sps:$4 sm:$0xff]   ;;  %v7696_v40 = vld [vmem:[#allocation2 + $0x504] ss:$16 sps:$4 sm:$0xff]  }
  0xd0   :  { %1595 = vmatprep.subr.bf16.mxu0 %v7604_v41  ;;  %1759 = vmatprep.subr.bf16.mxu1 %v7607_v42  ;;  %v7699_v41 = vld [vmem:[#allocation2 + $0x50c] ss:$16 sps:$4 sm:$0xff]   ;;  %v7694_v42 = vld [vmem:[#allocation2 + $0x500] ss:$16 sps:$4 sm:$0xff]  }
  0xd3   :  { %1596 = vmatpush1.bf16.msra.mxu0 %v7602_v43  ;;  %1760 = vmatpush1.bf16.msra.mxu1 %v7605_v44  ;;  %v7697_v43 = vld [vmem:[#allocation2 + $0x508] ss:$16 sps:$4 sm:$0xff]   ;;  %v7702_v44 = vld [vmem:[#allocation2 + $0x524] ss:$16 sps:$4 sm:$0xff]  }
  0xd4   :  { %1597 = vmatprep.subr.bf16.mxu0 %v7610_v45  ;;  %1761 = vmatprep.subr.bf16.mxu1 %v7613_v46  ;;  %v7705_v45 = vld [vmem:[#allocation2 + $0x52c] ss:$16 sps:$4 sm:$0xff]   ;;  %v7700_v46 = vld [vmem:[#allocation2 + $0x520] ss:$16 sps:$4 sm:$0xff]  }
  0xd7   :  { %1598 = vmatpush1.bf16.msra.mxu0 %v7608_v47  ;;  %1762 = vmatpush1.bf16.msra.mxu1 %v7611_v48  ;;  %v7703_v47 = vld [vmem:[#allocation2 + $0x528] ss:$16 sps:$4 sm:$0xff]   ;;  %v7708_v48 = vld [vmem:[#allocation2 + $0x544] ss:$16 sps:$4 sm:$0xff]  }
  0xd8   :  { %1599 = vmatprep.subr.bf16.mxu0 %v7616_v49  ;;  %1763 = vmatprep.subr.bf16.mxu1 %v7619_v50  ;;  %v7711_v49 = vld [vmem:[#allocation2 + $0x54c] ss:$16 sps:$4 sm:$0xff]   ;;  %v7706_v50 = vld [vmem:[#allocation2 + $0x540] ss:$16 sps:$4 sm:$0xff]  }
  0xdb   :  { %1600 = vmatpush1.bf16.msra.mxu0 %v7614_v51  ;;  %1764 = vmatpush1.bf16.msra.mxu1 %v7617_v52  ;;  %v7709_v51 = vld [vmem:[#allocation2 + $0x548] ss:$16 sps:$4 sm:$0xff]   ;;  %v7714_v52 = vld [vmem:[#allocation2 + $0x564] ss:$16 sps:$4 sm:$0xff]  }
  0xdc   :  { %1601 = vmatprep.subr.bf16.mxu0 %v7622_v53  ;;  %1765 = vmatprep.subr.bf16.mxu1 %v7625_v54  ;;  %v7717_v53 = vld [vmem:[#allocation2 + $0x56c] ss:$16 sps:$4 sm:$0xff]   ;;  %v7712_v54 = vld [vmem:[#allocation2 + $0x560] ss:$16 sps:$4 sm:$0xff]  }
  0xdf   :  { %1602 = vmatpush1.bf16.msra.mxu0 %v7620_v55  ;;  %1766 = vmatpush1.bf16.msra.mxu1 %v7623_v56  ;;  %v7715_v55 = vld [vmem:[#allocation2 + $0x568] ss:$16 sps:$4 sm:$0xff]   ;;  %v7720_v56 = vld [vmem:[#allocation2 + $0x584] ss:$16 sps:$4 sm:$0xff]  }
  0xe0   :  { %1603 = vmatprep.subr.bf16.mxu0 %v7628_v57  ;;  %1767 = vmatprep.subr.bf16.mxu1 %v7631_v58  ;;  %v7723_v57 = vld [vmem:[#allocation2 + $0x58c] ss:$16 sps:$4 sm:$0xff]   ;;  %v7718_v58 = vld [vmem:[#allocation2 + $0x580] ss:$16 sps:$4 sm:$0xff]  }
  0xe3   :  { %1604 = vmatpush1.bf16.msra.mxu0 %v7626_v59  ;;  %1768 = vmatpush1.bf16.msra.mxu1 %v7629_v60  ;;  %v7721_v59 = vld [vmem:[#allocation2 + $0x588] ss:$16 sps:$4 sm:$0xff]   ;;  %v7726_v60 = vld [vmem:[#allocation2 + $0x5a4] ss:$16 sps:$4 sm:$0xff]  }
  0xe4   :  { %1605 = vmatprep.subr.bf16.mxu0 %v7634_v61  ;;  %1769 = vmatprep.subr.bf16.mxu1 %v7637_v62  ;;  %v7729_v61 = vld [vmem:[#allocation2 + $0x5ac] ss:$16 sps:$4 sm:$0xff]   ;;  %v7724_v62 = vld [vmem:[#allocation2 + $0x5a0] ss:$16 sps:$4 sm:$0xff]  }
  0xe7   :  { %1606 = vmatpush1.bf16.msra.mxu0 %v7632_v63  ;;  %1770 = vmatpush1.bf16.msra.mxu1 %v7635_v0  ;;  %v7727_v63 = vld [vmem:[#allocation2 + $0x5a8] ss:$16 sps:$4 sm:$0xff]   ;;  %v7732_v0 = vld [vmem:[#allocation2 + $0x5c4] ss:$16 sps:$4 sm:$0xff]  }
  0xe8   :  { %1607 = vmatprep.subr.bf16.mxu0 %v7640_v1  ;;  %1771 = vmatprep.subr.bf16.mxu1 %v7643_v2  ;;  %v7735_v1 = vld [vmem:[#allocation2 + $0x5cc] ss:$16 sps:$4 sm:$0xff]   ;;  %v7730_v2 = vld [vmem:[#allocation2 + $0x5c0] ss:$16 sps:$4 sm:$0xff]  }
  0xeb   :  { %1608 = vmatpush1.bf16.msra.mxu0 %v7638_v3  ;;  %1772 = vmatpush1.bf16.msra.mxu1 %v7641_v4  ;;  %v7733_v3 = vld [vmem:[#allocation2 + $0x5c8] ss:$16 sps:$4 sm:$0xff]   ;;  %v7738_v4 = vld [vmem:[#allocation2 + $0x5e4] ss:$16 sps:$4 sm:$0xff]  }
  0xec   :  { %1618 = vmatprep.subr.bf16.mxu0 %v7648_v5  ;;  %1782 = vmatprep.subr.bf16.mxu1 %v7651_v6  ;;  %v7741_v5 = vld [vmem:[#allocation2 + $0x5ec] ss:$16 sps:$4 sm:$0xff]   ;;  %v7736_v6 = vld [vmem:[#allocation2 + $0x5e0] ss:$16 sps:$4 sm:$0xff]  }
  0xee   :  { %1610 = vmatmul.mubr.bf16.vlgmr.msra.gmra.mrb[0].mxu0 %v6489_v7  ;;  %1774 = vmatmul.mubr.bf16.vlgmr.msra.gmra.mrb[0].mxu1 %v6489_v7  ;;  %v7739_v7 = vld [vmem:[#allocation2 + $0x5e8] ss:$16 sps:$4 sm:$0xff]  }
  0xef   :  { %1619 = vmatpush1.bf16.msra.mxu0 %v7646_v8  ;;  %1783 = vmatpush1.bf16.msra.mxu1 %v7649_v9  ;;  %v7746_v8 = vld [vmem:[#allocation2 + $0x604] ss:$16 sps:$4 sm:$0xff]   ;;  %v7749_v9 = vld [vmem:[#allocation2 + $0x60c] ss:$16 sps:$4 sm:$0xff]  }
  0xf0   :  { %1620 = vmatprep.subr.bf16.mxu0 %v7654_v10  ;;  %1784 = vmatprep.subr.bf16.mxu1 %v7657_v12  ;;  %v7744_v10 = vld [vmem:[#allocation2 + $0x600] ss:$16 sps:$4 sm:$0xff]   ;;  %v7747_v12 = vld [vmem:[#allocation2 + $0x608] ss:$16 sps:$4 sm:$0xff]  }
  0xf1   :  { %1650 = vmatprep.mubr.bf16.mxu0 %v6492_v13  ;;  %1814 = vmatprep.mubr.bf16.mxu1 %v6492_v13  ;;  %v6491_v13 = vcombine.low %v9040_v11, %v9040_v11  ;;  %v7764_v11 = vld [vmem:[#allocation2 + $0x664] ss:$16 sps:$4 sm:$0xff]  }
  0xf3   :  { %1621 = vmatpush1.bf16.msra.mxu0 %v7652_v14  ;;  %1785 = vmatpush1.bf16.msra.mxu1 %v7655_v15  ;;  %v7752_v14 = vld [vmem:[#allocation2 + $0x624] ss:$16 sps:$4 sm:$0xff]   ;;  %v7755_v15 = vld [vmem:[#allocation2 + $0x62c] ss:$16 sps:$4 sm:$0xff]  }
  0xf4   :  { %1622 = vmatprep.subr.bf16.mxu0 %v7660_v16  ;;  %1786 = vmatprep.subr.bf16.mxu1 %v7663_v17  ;;  %v7750_v16 = vld [vmem:[#allocation2 + $0x620] ss:$16 sps:$4 sm:$0xff]   ;;  %v7753_v17 = vld [vmem:[#allocation2 + $0x628] ss:$16 sps:$4 sm:$0xff]  }
  0xf7   :  { %1623 = vmatpush1.bf16.msra.mxu0 %v7658_v18  ;;  %1787 = vmatpush1.bf16.msra.mxu1 %v7661_v19  ;;  %v7758_v18 = vld [vmem:[#allocation2 + $0x644] ss:$16 sps:$4 sm:$0xff]   ;;  %v7761_v19 = vld [vmem:[#allocation2 + $0x64c] ss:$16 sps:$4 sm:$0xff]  }
  0xf8   :  { %1624 = vmatprep.subr.bf16.mxu0 %v7666_v20  ;;  %1788 = vmatprep.subr.bf16.mxu1 %v7669_v21  ;;  %v7756_v20 = vld [vmem:[#allocation2 + $0x640] ss:$16 sps:$4 sm:$0xff]   ;;  %v7759_v21 = vld [vmem:[#allocation2 + $0x648] ss:$16 sps:$4 sm:$0xff]  }
  0xfb   :  { %1625 = vmatpush1.bf16.msra.mxu0 %v7664_v22  ;;  %1789 = vmatpush1.bf16.msra.mxu1 %v7667_v23  ;;  %v8839_v22 = vmov 0   ;;  %v7767_v23 = vld [vmem:[#allocation2 + $0x66c] ss:$16 sps:$4 sm:$0xff]  }
  0xfc   :  { %1626 = vmatprep.subr.bf16.mxu0 %v7672_v24  ;;  %1790 = vmatprep.subr.bf16.mxu1 %v7675_v25  ;;  %v7762_v24 = vld [vmem:[#allocation2 + $0x660] ss:$16 sps:$4 sm:$0xff]   ;;  %v7765_v25 = vld [vmem:[#allocation2 + $0x668] ss:$16 sps:$4 sm:$0xff]  }
  0xff   :  { %1627 = vmatpush1.bf16.msra.mxu0 %v7670_v26  ;;  %1791 = vmatpush1.bf16.msra.mxu1 %v7673_v27  ;;  %v7770_v26 = vld [vmem:[#allocation2 + $0x684] ss:$16 sps:$4 sm:$0xff]   ;;  %v7773_v27 = vld [vmem:[#allocation2 + $0x68c] ss:$16 sps:$4 sm:$0xff]  }
 0x100   :  { %1628 = vmatprep.subr.bf16.mxu0 %v7678_v28  ;;  %1792 = vmatprep.subr.bf16.mxu1 %v7681_v29  ;;  %v7768_v28 = vld [vmem:[#allocation2 + $0x680] ss:$16 sps:$4 sm:$0xff]   ;;  %v7771_v29 = vld [vmem:[#allocation2 + $0x688] ss:$16 sps:$4 sm:$0xff]  }
 0x103   :  { %1629 = vmatpush1.bf16.msra.mxu0 %v7676_v30  ;;  %1793 = vmatpush1.bf16.msra.mxu1 %v7679_v31  ;;  %v7776_v30 = vld [vmem:[#allocation2 + $0x6a4] ss:$16 sps:$4 sm:$0xff]   ;;  %v7779_v31 = vld [vmem:[#allocation2 + $0x6ac] ss:$16 sps:$4 sm:$0xff]  }
 0x104   :  { %1630 = vmatprep.subr.bf16.mxu0 %v7684_v32  ;;  %1794 = vmatprep.subr.bf16.mxu1 %v7687_v33  ;;  %v7774_v32 = vld [vmem:[#allocation2 + $0x6a0] ss:$16 sps:$4 sm:$0xff]   ;;  %v7777_v33 = vld [vmem:[#allocation2 + $0x6a8] ss:$16 sps:$4 sm:$0xff]  }
 0x107   :  { %1631 = vmatpush1.bf16.msra.mxu0 %v7682_v34  ;;  %1795 = vmatpush1.bf16.msra.mxu1 %v7685_v35  ;;  %v7782_v34 = vld [vmem:[#allocation2 + $0x6c4] ss:$16 sps:$4 sm:$0xff]   ;;  %v7785_v35 = vld [vmem:[#allocation2 + $0x6cc] ss:$16 sps:$4 sm:$0xff]  }
 0x108   :  { %1632 = vmatprep.subr.bf16.mxu0 %v7690_v36  ;;  %1796 = vmatprep.subr.bf16.mxu1 %v7693_v37  ;;  %v7780_v36 = vld [vmem:[#allocation2 + $0x6c0] ss:$16 sps:$4 sm:$0xff]   ;;  %v7783_v37 = vld [vmem:[#allocation2 + $0x6c8] ss:$16 sps:$4 sm:$0xff]  }
 0x10b   :  { %1633 = vmatpush1.bf16.msra.mxu0 %v7688_v38  ;;  %1797 = vmatpush1.bf16.msra.mxu1 %v7691_v39  ;;  %v7788_v38 = vld [vmem:[#allocation2 + $0x6e4] ss:$16 sps:$4 sm:$0xff]   ;;  %v7791_v39 = vld [vmem:[#allocation2 + $0x6ec] ss:$16 sps:$4 sm:$0xff]  }
 0x10c   :  { %1634 = vmatprep.subr.bf16.mxu0 %v7696_v40  ;;  %1798 = vmatprep.subr.bf16.mxu1 %v7699_v41  ;;  %v7786_v40 = vld [vmem:[#allocation2 + $0x6e0] ss:$16 sps:$4 sm:$0xff]   ;;  %v7789_v41 = vld [vmem:[#allocation2 + $0x6e8] ss:$16 sps:$4 sm:$0xff]  }
 0x10f   :  { %1635 = vmatpush1.bf16.msra.mxu0 %v7694_v42  ;;  %1799 = vmatpush1.bf16.msra.mxu1 %v7697_v43  ;;  %v7795_v42 = vld [vmem:[#allocation4 + $0x4] ss:$16 sps:$4 sm:$0xff]   ;;  %v7798_v43 = vld [vmem:[#allocation4 + $0xc] ss:$16 sps:$4 sm:$0xff]  }
 0x110   :  { %1636 = vmatprep.subr.bf16.mxu0 %v7702_v44  ;;  %1800 = vmatprep.subr.bf16.mxu1 %v7705_v45  ;;  %v7792_v44 = vld [vmem:[%s9251_s0 + $0x18] ss:$0 sps:$4 sm:$0xff]   ;;  %v7793_v45 = vld [vmem:[#allocation4] ss:$16 sps:$4 sm:$0xff]  }
 0x113   :  { %1637 = vmatpush1.bf16.msra.mxu0 %v7700_v46  ;;  %1801 = vmatpush1.bf16.msra.mxu1 %v7703_v47  ;;  %v7796_v46 = vld [vmem:[#allocation4 + $0x8] ss:$16 sps:$4 sm:$0xff]   ;;  %v7801_v47 = vld [vmem:[#allocation4 + $0x24] ss:$16 sps:$4 sm:$0xff]  }
 0x114   :  { %1638 = vmatprep.subr.bf16.mxu0 %v7708_v48  ;;  %1802 = vmatprep.subr.bf16.mxu1 %v7711_v49  ;;  %v7804_v48 = vld [vmem:[#allocation4 + $0x2c] ss:$16 sps:$4 sm:$0xff]   ;;  %v7799_v49 = vld [vmem:[#allocation4 + $0x20] ss:$16 sps:$4 sm:$0xff]  }
 0x117   :  { %1639 = vmatpush1.bf16.msra.mxu0 %v7706_v50  ;;  %1803 = vmatpush1.bf16.msra.mxu1 %v7709_v51  ;;  %v7802_v50 = vld [vmem:[#allocation4 + $0x28] ss:$16 sps:$4 sm:$0xff]   ;;  %v7807_v51 = vld [vmem:[#allocation4 + $0x44] ss:$16 sps:$4 sm:$0xff]  }
 0x118   :  { %1640 = vmatprep.subr.bf16.mxu0 %v7714_v52  ;;  %1804 = vmatprep.subr.bf16.mxu1 %v7717_v53  ;;  %v7810_v52 = vld [vmem:[#allocation4 + $0x4c] ss:$16 sps:$4 sm:$0xff]   ;;  %v7805_v53 = vld [vmem:[#allocation4 + $0x40] ss:$16 sps:$4 sm:$0xff]  }
 0x11b   :  { %1641 = vmatpush1.bf16.msra.mxu0 %v7712_v54  ;;  %1805 = vmatpush1.bf16.msra.mxu1 %v7715_v55  ;;  %v7808_v54 = vld [vmem:[#allocation4 + $0x48] ss:$16 sps:$4 sm:$0xff]   ;;  %v7813_v55 = vld [vmem:[#allocation4 + $0x64] ss:$16 sps:$4 sm:$0xff]  }
 0x11c   :  { %1642 = vmatprep.subr.bf16.mxu0 %v7720_v56  ;;  %1806 = vmatprep.subr.bf16.mxu1 %v7723_v57  ;;  %v7816_v56 = vld [vmem:[#allocation4 + $0x6c] ss:$16 sps:$4 sm:$0xff]   ;;  %v7811_v57 = vld [vmem:[#allocation4 + $0x60] ss:$16 sps:$4 sm:$0xff]  }
 0x11f   :  { %1643 = vmatpush1.bf16.msra.mxu0 %v7718_v58  ;;  %1807 = vmatpush1.bf16.msra.mxu1 %v7721_v59  ;;  %v7814_v58 = vld [vmem:[#allocation4 + $0x68] ss:$16 sps:$4 sm:$0xff]   ;;  %v7819_v59 = vld [vmem:[#allocation4 + $0x84] ss:$16 sps:$4 sm:$0xff]  }
 0x120   :  { %1644 = vmatprep.subr.bf16.mxu0 %v7726_v60  ;;  %1808 = vmatprep.subr.bf16.mxu1 %v7729_v61  ;;  %v7822_v60 = vld [vmem:[#allocation4 + $0x8c] ss:$16 sps:$4 sm:$0xff]   ;;  %v7817_v61 = vld [vmem:[#allocation4 + $0x80] ss:$16 sps:$4 sm:$0xff]  }
 0x123   :  { %1645 = vmatpush1.bf16.msra.mxu0 %v7724_v62  ;;  %1809 = vmatpush1.bf16.msra.mxu1 %v7727_v63  ;;  %v7820_v62 = vld [vmem:[#allocation4 + $0x88] ss:$16 sps:$4 sm:$0xff]   ;;  %v7825_v63 = vld [vmem:[#allocation4 + $0xa4] ss:$16 sps:$4 sm:$0xff]  }
 0x124   :  { %1646 = vmatprep.subr.bf16.mxu0 %v7732_v0  ;;  %1810 = vmatprep.subr.bf16.mxu1 %v7735_v1  ;;  %v7828_v0 = vld [vmem:[#allocation4 + $0xac] ss:$16 sps:$4 sm:$0xff]   ;;  %v7823_v1 = vld [vmem:[#allocation4 + $0xa0] ss:$16 sps:$4 sm:$0xff]  }
 0x127   :  { %1647 = vmatpush1.bf16.msra.mxu0 %v7730_v2  ;;  %1811 = vmatpush1.bf16.msra.mxu1 %v7733_v3  ;;  %v7826_v2 = vld [vmem:[#allocation4 + $0xa8] ss:$16 sps:$4 sm:$0xff]   ;;  %v7831_v3 = vld [vmem:[#allocation4 + $0xc4] ss:$16 sps:$4 sm:$0xff]  }
 0x128   :  { %1648 = vmatprep.subr.bf16.mxu0 %v7738_v4  ;;  %1812 = vmatprep.subr.bf16.mxu1 %v7741_v5  ;;  %v7834_v4 = vld [vmem:[#allocation4 + $0xcc] ss:$16 sps:$4 sm:$0xff]   ;;  %v7829_v5 = vld [vmem:[#allocation4 + $0xc0] ss:$16 sps:$4 sm:$0xff]  }
 0x12b   :  { %1649 = vmatpush1.bf16.msra.mxu0 %v7736_v6  ;;  %1813 = vmatpush1.bf16.msra.mxu1 %v7739_v7  ;;  %v7832_v6 = vld [vmem:[#allocation4 + $0xc8] ss:$16 sps:$4 sm:$0xff]   ;;  %v7837_v7 = vld [vmem:[#allocation4 + $0xe4] ss:$16 sps:$4 sm:$0xff]  }
 0x12c   :  { %1659 = vmatprep.subr.bf16.mxu0 %v7746_v8  ;;  %1823 = vmatprep.subr.bf16.mxu1 %v7749_v9  ;;  %v7840_v8 = vld [vmem:[#allocation4 + $0xec] ss:$16 sps:$4 sm:$0xff]   ;;  %v7835_v9 = vld [vmem:[#allocation4 + $0xe0] ss:$16 sps:$4 sm:$0xff]  }
 0x12e   :  { %1651 = vmatmul.mubr.bf16.vlgmr.msra.gmra.mrb[0].mxu0 %v6491_v13  ;;  %1815 = vmatmul.mubr.bf16.vlgmr.msra.gmra.mrb[0].mxu1 %v6491_v13  ;;  %v7846_v13 = vld [vmem:[#allocation4 + $0x10c] ss:$16 sps:$4 sm:$0xff]  }
 0x12f   :  { %1660 = vmatpush1.bf16.msra.mxu0 %v7744_v10  ;;  %1824 = vmatpush1.bf16.msra.mxu1 %v7747_v12  ;;  %v7838_v10 = vld [vmem:[#allocation4 + $0xe8] ss:$16 sps:$4 sm:$0xff]   ;;  %v7843_v12 = vld [vmem:[#allocation4 + $0x104] ss:$16 sps:$4 sm:$0xff]  }
 0x130   :  { %1661 = vmatprep.subr.bf16.mxu0 %v7752_v14  ;;  %1825 = vmatprep.subr.bf16.mxu1 %v7755_v15  ;;  %v7841_v14 = vld [vmem:[#allocation4 + $0x100] ss:$16 sps:$4 sm:$0xff]   ;;  %v7844_v15 = vld [vmem:[#allocation4 + $0x108] ss:$16 sps:$4 sm:$0xff]  }
 0x131   :  { %1691 = vmatprep.mubr.bf16.mxu0 %v8839_v22  ;;  %1855 = vmatprep.mubr.bf16.mxu1 %v8839_v22 }
 0x133   :  { %1662 = vmatpush1.bf16.msra.mxu0 %v7750_v16  ;;  %1826 = vmatpush1.bf16.msra.mxu1 %v7753_v17  ;;  %v7849_v16 = vld [vmem:[#allocation4 + $0x124] ss:$16 sps:$4 sm:$0xff]   ;;  %v7852_v17 = vld [vmem:[#allocation4 + $0x12c] ss:$16 sps:$4 sm:$0xff]  }
 0x134   :  { %1663 = vmatprep.subr.bf16.mxu0 %v7758_v18  ;;  %1827 = vmatprep.subr.bf16.mxu1 %v7761_v19  ;;  %v7847_v18 = vld [vmem:[#allocation4 + $0x120] ss:$16 sps:$4 sm:$0xff]   ;;  %v7850_v19 = vld [vmem:[#allocation4 + $0x128] ss:$16 sps:$4 sm:$0xff]  }
 0x137   :  { %1664 = vmatpush1.bf16.msra.mxu0 %v7756_v20  ;;  %1828 = vmatpush1.bf16.msra.mxu1 %v7759_v21  ;;  %v7855_v20 = vld [vmem:[#allocation4 + $0x144] ss:$16 sps:$4 sm:$0xff]   ;;  %v7858_v21 = vld [vmem:[#allocation4 + $0x14c] ss:$16 sps:$4 sm:$0xff]  }
 0x138   :  { %1665 = vmatprep.subr.bf16.mxu0 %v7764_v11  ;;  %1829 = vmatprep.subr.bf16.mxu1 %v7767_v23  ;;  %v7853_v11 = vld [vmem:[#allocation4 + $0x140] ss:$16 sps:$4 sm:$0xff]   ;;  %v7856_v23 = vld [vmem:[#allocation4 + $0x148] ss:$16 sps:$4 sm:$0xff]  }
 0x13b   :  { %1666 = vmatpush1.bf16.msra.mxu0 %v7762_v24  ;;  %1830 = vmatpush1.bf16.msra.mxu1 %v7765_v25  ;;  %v7861_v24 = vld [vmem:[#allocation4 + $0x164] ss:$16 sps:$4 sm:$0xff]   ;;  %v7864_v25 = vld [vmem:[#allocation4 + $0x16c] ss:$16 sps:$4 sm:$0xff]  }
 0x13c   :  { %1667 = vmatprep.subr.bf16.mxu0 %v7770_v26  ;;  %1831 = vmatprep.subr.bf16.mxu1 %v7773_v27  ;;  %v7859_v26 = vld [vmem:[#allocation4 + $0x160] ss:$16 sps:$4 sm:$0xff]   ;;  %v7862_v27 = vld [vmem:[#allocation4 + $0x168] ss:$16 sps:$4 sm:$0xff]  }
 0x13f   :  { %1668 = vmatpush1.bf16.msra.mxu0 %v7768_v28  ;;  %1832 = vmatpush1.bf16.msra.mxu1 %v7771_v29  ;;  %v7867_v28 = vld [vmem:[#allocation4 + $0x184] ss:$16 sps:$4 sm:$0xff]   ;;  %v7870_v29 = vld [vmem:[#allocation4 + $0x18c] ss:$16 sps:$4 sm:$0xff]  }
 0x140   :  { %1669 = vmatprep.subr.bf16.mxu0 %v7776_v30  ;;  %1833 = vmatprep.subr.bf16.mxu1 %v7779_v31  ;;  %v7865_v30 = vld [vmem:[#allocation4 + $0x180] ss:$16 sps:$4 sm:$0xff]   ;;  %v7868_v31 = vld [vmem:[#allocation4 + $0x188] ss:$16 sps:$4 sm:$0xff]  }
 0x143   :  { %1670 = vmatpush1.bf16.msra.mxu0 %v7774_v32  ;;  %1834 = vmatpush1.bf16.msra.mxu1 %v7777_v33  ;;  %v7873_v32 = vld [vmem:[#allocation4 + $0x1a4] ss:$16 sps:$4 sm:$0xff]   ;;  %v7876_v33 = vld [vmem:[#allocation4 + $0x1ac] ss:$16 sps:$4 sm:$0xff]  }
 0x144   :  { %1671 = vmatprep.subr.bf16.mxu0 %v7782_v34  ;;  %1835 = vmatprep.subr.bf16.mxu1 %v7785_v35  ;;  %v7871_v34 = vld [vmem:[#allocation4 + $0x1a0] ss:$16 sps:$4 sm:$0xff]   ;;  %v7874_v35 = vld [vmem:[#allocation4 + $0x1a8] ss:$16 sps:$4 sm:$0xff]  }
 0x147   :  { %1672 = vmatpush1.bf16.msra.mxu0 %v7780_v36  ;;  %1836 = vmatpush1.bf16.msra.mxu1 %v7783_v37  ;;  %v7883_v36 = vld [vmem:[#allocation4 + $0x1c4] ss:$16 sps:$4 sm:$0xff]   ;;  %v7886_v37 = vld [vmem:[#allocation4 + $0x1cc] ss:$16 sps:$4 sm:$0xff]  }
 0x148   :  { %1673 = vmatprep.subr.bf16.mxu0 %v7788_v38  ;;  %1837 = vmatprep.subr.bf16.mxu1 %v7791_v39  ;;  %v7881_v38 = vld [vmem:[#allocation4 + $0x1c0] ss:$16 sps:$4 sm:$0xff]   ;;  %v7884_v39 = vld [vmem:[#allocation4 + $0x1c8] ss:$16 sps:$4 sm:$0xff]  }
 0x14b   :  { %1674 = vmatpush1.bf16.msra.mxu0 %v7786_v40  ;;  %1838 = vmatpush1.bf16.msra.mxu1 %v7789_v41  ;;  %v7889_v40 = vld [vmem:[#allocation4 + $0x1e4] ss:$16 sps:$4 sm:$0xff]   ;;  %v7892_v41 = vld [vmem:[#allocation4 + $0x1ec] ss:$16 sps:$4 sm:$0xff]  }
 0x14c   :  { %2680 = vmatprep.subr.bf16.mxu0 %v7795_v42  ;;  %2762 = vmatprep.subr.bf16.mxu1 %v7798_v43  ;;  %v7887_v42 = vld [vmem:[#allocation4 + $0x1e0] ss:$16 sps:$4 sm:$0xff]   ;;  %v7890_v43 = vld [vmem:[#allocation4 + $0x1e8] ss:$16 sps:$4 sm:$0xff]  }
 0x14e   :  { %1692 = vmatmul.mubr.bf16.vlgmr.msra.gmra.mrb[0].mxu0 %v7792_v44  ;;  %1856 = vmatmul.mubr.bf16.vlgmr.msra.gmra.mrb[0].mxu1 %v7792_v44  ;;  %v7895_v44 = vld [vmem:[#allocation4 + $0x204] ss:$16 sps:$4 sm:$0xff]  }
 0x14f   :  { %2681 = vmatpush1.bf16.msra.mxu0 %v7793_v45  ;;  %2763 = vmatpush1.bf16.msra.mxu1 %v7796_v46  ;;  %v7898_v45 = vld [vmem:[#allocation4 + $0x20c] ss:$16 sps:$4 sm:$0xff]   ;;  %v371_v46 = vlaneseq }
 0x150   :  { %2682 = vmatprep.subr.bf16.mxu0 %v7801_v47  ;;  %2764 = vmatprep.subr.bf16.mxu1 %v7804_v48 }
 0x151   :  { %v9051_v47 = vshrl.u32 %v371_v46, 7  ;;  %v7938_v46 = vld [vmem:[#allocation4 + $0x2e8] ss:$16 sps:$4 sm:$0xff]  }
 0x153   :  { %2683 = vmatpush1.bf16.msra.mxu0 %v7799_v49  ;;  %2765 = vmatpush1.bf16.msra.mxu1 %v7802_v50  ;;  %v9054_v48 = vsub.s32 0, %v9051_v47  ;;  %v9059_v49 = vld [vmem:[%s9255_s4] sm:$0xf]  ;;  %v9062_v50 = vsub.s32 1, %v9051_v47 }
 0x154   :  { %2684 = vmatprep.subr.bf16.mxu0 %v7807_v51  ;;  %2766 = vmatprep.subr.bf16.mxu1 %v7810_v52  ;;  %v9065_v51 = vsub.s32 3, %v9051_v47 }
 0x155   :  { %v374_v52 = vrot.slane %v9059_v49, %v9054_v48 }
 0x157   :  { %2685 = vmatpush1.bf16.msra.mxu0 %v7805_v53  ;;  %2767 = vmatpush1.bf16.msra.mxu1 %v7808_v54  ;;  %v378_v53 = vrot.slane %v9059_v49, %v9062_v50  ;;  %v386_v54 = vrot.slane %v9059_v49, %v9065_v51 }
 0x158   :  { %2686 = vmatprep.subr.bf16.mxu0 %v7813_v55  ;;  %2768 = vmatprep.subr.bf16.mxu1 %v7816_v56 }
 0x15b   :  { %2687 = vmatpush1.bf16.msra.mxu0 %v7811_v57  ;;  %2769 = vmatpush1.bf16.msra.mxu1 %v7814_v58  ;;  %v137_v57 = vld [vmem:[%s9252_s1] sm:$0xff] }
 0x15c   :  { %2688 = vmatprep.subr.bf16.mxu0 %v7819_v59  ;;  %2770 = vmatprep.subr.bf16.mxu1 %v7822_v60 }
 0x15f   :  { %2689 = vmatpush1.bf16.msra.mxu0 %v7817_v61  ;;  %2771 = vmatpush1.bf16.msra.mxu1 %v7820_v62 }
 0x160   :  { %2690 = vmatprep.subr.bf16.mxu0 %v7825_v63  ;;  %2772 = vmatprep.subr.bf16.mxu1 %v7828_v0 }
 0x163   :  { %2691 = vmatpush1.bf16.msra.mxu0 %v7823_v1  ;;  %2773 = vmatpush1.bf16.msra.mxu1 %v7826_v2 }
 0x164   :  { %2692 = vmatprep.subr.bf16.mxu0 %v7831_v3  ;;  %2774 = vmatprep.subr.bf16.mxu1 %v7834_v4  ;;  %v9081_v4 = vld [vmem:[%s9252_s1 + $0x8] sm:$0xff] }
 0x167   :  { %2693 = vmatpush1.bf16.msra.mxu0 %v7829_v5  ;;  %2775 = vmatpush1.bf16.msra.mxu1 %v7832_v6  ;;  %v6719_v6 = vcombine.high %v137_v57, %v137_v57 }
 0x168   :  { %2694 = vmatprep.subr.bf16.mxu0 %v7837_v7  ;;  %2776 = vmatprep.subr.bf16.mxu1 %v7840_v8 }
 0x16b   :  { %2695 = vmatpush1.bf16.msra.mxu0 %v7835_v9  ;;  %2777 = vmatpush1.bf16.msra.mxu1 %v7838_v10  ;;  %v6718_v9 = vcombine.low %v137_v57, %v137_v57  ;;  %v7949_v57 = vld [vmem:[#allocation4 + $0x324] ss:$16 sps:$4 sm:$0xff]  }
 0x16c   :  { %2696 = vmatprep.subr.bf16.mxu0 %v7843_v12  ;;  %2778 = vmatprep.subr.bf16.mxu1 %v7846_v13  ;;  %v6721_v13 = vcombine.high %v9081_v4, %v9081_v4 }
 0x16f   :  { %2697 = vmatpush1.bf16.msra.mxu0 %v7841_v14  ;;  %2779 = vmatpush1.bf16.msra.mxu1 %v7844_v15  ;;  %v7893_v15 = vld [vmem:[#allocation4 + $0x200] ss:$16 sps:$4 sm:$0xff]  }
 0x170   :  { %2698 = vmatprep.subr.bf16.mxu0 %v7849_v16  ;;  %2780 = vmatprep.subr.bf16.mxu1 %v7852_v17  ;;  %v7896_v16 = vld [vmem:[#allocation4 + $0x208] ss:$16 sps:$4 sm:$0xff]  }
 0x173   :  { %2699 = vmatpush1.bf16.msra.mxu0 %v7847_v18  ;;  %2781 = vmatpush1.bf16.msra.mxu1 %v7850_v19  ;;  %v7901_v18 = vld [vmem:[#allocation4 + $0x224] ss:$16 sps:$4 sm:$0xff]   ;;  %v7904_v19 = vld [vmem:[#allocation4 + $0x22c] ss:$16 sps:$4 sm:$0xff]  }
 0x174   :  { %2700 = vmatprep.subr.bf16.mxu0 %v7855_v20  ;;  %2782 = vmatprep.subr.bf16.mxu1 %v7858_v21  ;;  %v7899_v21 = vld [vmem:[#allocation4 + $0x220] ss:$16 sps:$4 sm:$0xff]  }
 0x177   :  { %2701 = vmatpush1.bf16.msra.mxu0 %v7853_v11  ;;  %2783 = vmatpush1.bf16.msra.mxu1 %v7856_v23  ;;  %v7902_v11 = vld [vmem:[#allocation4 + $0x228] ss:$16 sps:$4 sm:$0xff]   ;;  %v7907_v23 = vld [vmem:[#allocation4 + $0x244] ss:$16 sps:$4 sm:$0xff]  }
 0x178   :  { %2702 = vmatprep.subr.bf16.mxu0 %v7861_v24  ;;  %2784 = vmatprep.subr.bf16.mxu1 %v7864_v25  ;;  %v7910_v24 = vld [vmem:[#allocation4 + $0x24c] ss:$16 sps:$4 sm:$0xff]   ;;  %v7905_v25 = vld [vmem:[#allocation4 + $0x240] ss:$16 sps:$4 sm:$0xff]  }
 0x17b   :  { %2703 = vmatpush1.bf16.msra.mxu0 %v7859_v26  ;;  %2785 = vmatpush1.bf16.msra.mxu1 %v7862_v27  ;;  %v7908_v26 = vld [vmem:[#allocation4 + $0x248] ss:$16 sps:$4 sm:$0xff]   ;;  %v7913_v27 = vld [vmem:[#allocation4 + $0x264] ss:$16 sps:$4 sm:$0xff]  }
 0x17c   :  { %2704 = vmatprep.subr.bf16.mxu0 %v7867_v28  ;;  %2786 = vmatprep.subr.bf16.mxu1 %v7870_v29  ;;  %v7916_v28 = vld [vmem:[#allocation4 + $0x26c] ss:$16 sps:$4 sm:$0xff]   ;;  %v7911_v29 = vld [vmem:[#allocation4 + $0x260] ss:$16 sps:$4 sm:$0xff]  }
 0x17f   :  { %2705 = vmatpush1.bf16.msra.mxu0 %v7865_v30  ;;  %2787 = vmatpush1.bf16.msra.mxu1 %v7868_v31  ;;  %v7914_v30 = vld [vmem:[#allocation4 + $0x268] ss:$16 sps:$4 sm:$0xff]   ;;  %v7919_v31 = vld [vmem:[#allocation4 + $0x284] ss:$16 sps:$4 sm:$0xff]  }
 0x180   :  { %2706 = vmatprep.subr.bf16.mxu0 %v7873_v32  ;;  %2788 = vmatprep.subr.bf16.mxu1 %v7876_v33  ;;  %v7922_v32 = vld [vmem:[#allocation4 + $0x28c] ss:$16 sps:$4 sm:$0xff]   ;;  %v7917_v33 = vld [vmem:[#allocation4 + $0x280] ss:$16 sps:$4 sm:$0xff]  }
 0x183   :  { %2707 = vmatpush1.bf16.msra.mxu0 %v7871_v34  ;;  %2789 = vmatpush1.bf16.msra.mxu1 %v7874_v35  ;;  %v7920_v34 = vld [vmem:[#allocation4 + $0x288] ss:$16 sps:$4 sm:$0xff]   ;;  %v7925_v35 = vld [vmem:[#allocation4 + $0x2a4] ss:$16 sps:$4 sm:$0xff]  }
 0x184   :  { %2708 = vmatprep.subr.bf16.mxu0 %v7883_v36  ;;  %2790 = vmatprep.subr.bf16.mxu1 %v7886_v37  ;;  %v7928_v36 = vld [vmem:[#allocation4 + $0x2ac] ss:$16 sps:$4 sm:$0xff]   ;;  %v7923_v37 = vld [vmem:[#allocation4 + $0x2a0] ss:$16 sps:$4 sm:$0xff]  }
 0x187   :  { %2709 = vmatpush1.bf16.msra.mxu0 %v7881_v38  ;;  %2791 = vmatpush1.bf16.msra.mxu1 %v7884_v39  ;;  %v7926_v38 = vld [vmem:[#allocation4 + $0x2a8] ss:$16 sps:$4 sm:$0xff]   ;;  %v7931_v39 = vld [vmem:[#allocation4 + $0x2c4] ss:$16 sps:$4 sm:$0xff]  }
 0x188   :  { %2710 = vmatprep.subr.bf16.mxu0 %v7889_v40  ;;  %2792 = vmatprep.subr.bf16.mxu1 %v7892_v41  ;;  %v7934_v40 = vld [vmem:[#allocation4 + $0x2cc] ss:$16 sps:$4 sm:$0xff]   ;;  %v7929_v41 = vld [vmem:[#allocation4 + $0x2c0] ss:$16 sps:$4 sm:$0xff]  }
 0x18b   :  { %2711 = vmatpush1.bf16.msra.mxu0 %v7887_v42  ;;  %2793 = vmatpush1.bf16.msra.mxu1 %v7890_v43  ;;  %v7932_v42 = vld [vmem:[#allocation4 + $0x2c8] ss:$16 sps:$4 sm:$0xff]   ;;  %v7937_v43 = vld [vmem:[#allocation4 + $0x2e4] ss:$16 sps:$4 sm:$0xff]  }
 0x18c   :  { %2721 = vmatprep.subr.bf16.mxu0 %v7895_v44  ;;  %2803 = vmatprep.subr.bf16.mxu1 %v7898_v45  ;;  %v7940_v44 = vld [vmem:[#allocation4 + $0x2ec] ss:$16 sps:$4 sm:$0xff]   ;;  %v7935_v45 = vld [vmem:[#allocation4 + $0x2e0] ss:$16 sps:$4 sm:$0xff]  }
 0x221   :  { %v1693_v55 = vpop.f32.mrb[0].mxu0  ;;  %v9073_v56 = vpop.f32.mrb[0].mxu1 }
 0x222   :  { %v7361_v58 = vadd.f32 %v1693_v55, %v374_v52  ;;  %v1695_v59 = vpop.f32.mrb[1].mxu0  ;;  %v1859_v60 = vpop.f32.mrb[1].mxu1  ;;  %v7943_v52 = vld [vmem:[#allocation4 + $0x304] ss:$16 sps:$4 sm:$0xff]   ;;  %v7944_v55 = vld [vmem:[#allocation4 + $0x308] ss:$16 sps:$4 sm:$0xff]  }
 0x223   :  { %v7362_v61 = vadd.f32 %v1695_v59, %v378_v53  ;;  %v7364_v62 = vadd.f32 %v1859_v60, %v386_v54  ;;  %v1697_v63 = vpop.f32.mrb[2].mxu0  ;;  %v1861_v0 = vpop.f32.mrb[2].mxu1  ;;  %v7946_v53 = vld [vmem:[#allocation4 + $0x30c] ss:$16 sps:$4 sm:$0xff]   ;;  %v7941_v54 = vld [vmem:[#allocation4 + $0x300] ss:$16 sps:$4 sm:$0xff]  }
 0x224   :  { %v1864_v1 = vmax.f32 %v7361_v58, 0.0  ;;  %v1698_v2 = vpop.f32.mrb[3].mxu0  ;;  %v1862_v3 = vpop.f32.mrb[3].mxu1  ;;  %v7952_v58 = vld [vmem:[#allocation4 + $0x32c] ss:$16 sps:$4 sm:$0xff]  }
 0x225   :  { %v1865_v5 = vmax.f32 %v7362_v61, 0.0  ;;  %v1867_v7 = vmax.f32 %v7364_v62, 0.0  ;;  %v7947_v59 = vld [vmem:[#allocation4 + $0x320] ss:$16 sps:$4 sm:$0xff]   ;;  %v7950_v60 = vld [vmem:[#allocation4 + $0x328] ss:$16 sps:$4 sm:$0xff]  }
 0x226   :  { %v1868_v8 = vpack.c.bf16 %v1864_v1, %v1864_v1  ;;  %v7955_v61 = vld [vmem:[#allocation4 + $0x344] ss:$16 sps:$4 sm:$0xff]   ;;  %v7958_v62 = vld [vmem:[#allocation4 + $0x34c] ss:$16 sps:$4 sm:$0xff]   ;;  %v7953_v63 = vld [vmem:[#allocation4 + $0x340] ss:$16 sps:$4 sm:$0xff]  }
 0x227   :  { %v1869_v10 = vpack.c.bf16 %v1865_v5, %v1865_v5  ;;  %v1871_v12 = vpack.c.bf16 %v1867_v7, %v1867_v7  ;;  %v7956_v0 = vld [vmem:[#allocation4 + $0x348] ss:$16 sps:$4 sm:$0xff]   ;;  %v7961_v1 = vld [vmem:[#allocation4 + $0x364] ss:$16 sps:$4 sm:$0xff]   ;;  %v7964_v2 = vld [vmem:[#allocation4 + $0x36c] ss:$16 sps:$4 sm:$0xff]  }
 0x228   :  { %v1886_v17 = vmul.bf16 %v6718_v9, %v1868_v8  ;;  %v7959_v3 = vld [vmem:[#allocation4 + $0x360] ss:$16 sps:$4 sm:$0xff]   ;;  %v7962_v5 = vld [vmem:[#allocation4 + $0x368] ss:$16 sps:$4 sm:$0xff]   ;;  %v7967_v7 = vld [vmem:[#allocation4 + $0x384] ss:$16 sps:$4 sm:$0xff]  }
 0x229   :  { %v1887_v14 = vmul.bf16 %v6719_v6, %v1869_v10  ;;  %v1889_v20 = vmul.bf16 %v6721_v13, %v1871_v12  ;;  %v9086_v6 = vsub.s32 2, %v9051_v47  ;;  %v7970_v8 = vld [vmem:[#allocation4 + $0x38c] ss:$16 sps:$4 sm:$0xff]   ;;  %v7965_v9 = vld [vmem:[#allocation4 + $0x380] ss:$16 sps:$4 sm:$0xff]  }
 0x22a   :  { %v7968_v10 = vld [vmem:[#allocation4 + $0x388] ss:$16 sps:$4 sm:$0xff]   ;;  %v7973_v13 = vld [vmem:[#allocation4 + $0x3a4] ss:$16 sps:$4 sm:$0xff]  }
 0x22b   :  { %2712 = vmatprep.mubr.bf16.mxu0 %v1887_v14  ;;  %2794 = vmatprep.mubr.bf16.mxu1 %v1887_v14  ;;  %v382_v12 = vrot.slane %v9059_v49, %v9086_v6  ;;  %v7976_v14 = vld [vmem:[#allocation4 + $0x3ac] ss:$16 sps:$4 sm:$0xff]   ;;  %v7985_v49 = vld [vmem:[#allocation4 + $0x3e4] ss:$16 sps:$4 sm:$0xff]  }
 0x22c   :  { %2713 = vmatmul.mubr.bf16.vlgmr.msra.gmra.mrb[4].mxu0 %v1886_v17  ;;  %2795 = vmatmul.mubr.bf16.vlgmr.msra.gmra.mrb[4].mxu1 %v1886_v17 }
 0x22d   :  { %2722 = vmatpush1.bf16.msra.mxu0 %v7893_v15  ;;  %2804 = vmatpush1.bf16.msra.mxu1 %v7896_v16  ;;  %v7971_v15 = vld [vmem:[#allocation4 + $0x3a0] ss:$16 sps:$4 sm:$0xff]   ;;  %v7974_v16 = vld [vmem:[#allocation4 + $0x3a8] ss:$16 sps:$4 sm:$0xff]   ;;  %v7363_v17 = vadd.f32 %v9073_v56, %v382_v12  ;;  %v6720_v56 = vcombine.low %v9081_v4, %v9081_v4  ;;  %v8000_v4 = vld [vmem:[#allocation6 + $0x34] ss:$8 sps:$4 sm:$0xff]  }
 0x22e   :  { %2753 = vmatprep.mubr.bf16.mxu0 %v1889_v20  ;;  %2835 = vmatprep.mubr.bf16.mxu1 %v1889_v20  ;;  %v7977_v20 = vld [vmem:[#allocation4 + $0x3c0] ss:$16 sps:$4 sm:$0xff]  }
 0x22f   :  { %2723 = vmatprep.subr.bf16.mxu0 %v7901_v18  ;;  %2805 = vmatprep.subr.bf16.mxu1 %v7904_v19  ;;  %v7979_v18 = vld [vmem:[#allocation4 + $0x3c4] ss:$16 sps:$4 sm:$0xff]   ;;  %v7982_v19 = vld [vmem:[#allocation4 + $0x3cc] ss:$16 sps:$4 sm:$0xff]  }
 0x231   :  { %2724 = vmatpush1.bf16.msra.mxu0 %v7899_v21  ;;  %2806 = vmatpush1.bf16.msra.mxu1 %v7902_v11  ;;  %v7980_v21 = vld [vmem:[#allocation4 + $0x3c8] ss:$16 sps:$4 sm:$0xff]   ;;  %v1866_v11 = vmax.f32 %v7363_v17, 0.0 }
 0x232   :  { %2725 = vmatprep.subr.bf16.mxu0 %v7907_v23  ;;  %2807 = vmatprep.subr.bf16.mxu1 %v7910_v24  ;;  %v7988_v23 = vld [vmem:[#allocation4 + $0x3ec] ss:$16 sps:$4 sm:$0xff]   ;;  %v7983_v24 = vld [vmem:[#allocation4 + $0x3e0] ss:$16 sps:$4 sm:$0xff]  }
 0x235   :  { %2726 = vmatpush1.bf16.msra.mxu0 %v7905_v25  ;;  %2808 = vmatpush1.bf16.msra.mxu1 %v7908_v26  ;;  %v7986_v25 = vld [vmem:[#allocation4 + $0x3e8] ss:$16 sps:$4 sm:$0xff]   ;;  %v1870_v26 = vpack.c.bf16 %v1866_v11, %v1866_v11 }
 0x236   :  { %2727 = vmatprep.subr.bf16.mxu0 %v7913_v27  ;;  %2809 = vmatprep.subr.bf16.mxu1 %v7916_v28  ;;  %v7991_v27 = vld [vmem:[#allocation6 + $0x4] ss:$8 sps:$4 sm:$0xff]   ;;  %v7989_v28 = vld [vmem:[#allocation6] ss:$8 sps:$4 sm:$0xff]  }
 0x239   :  { %2728 = vmatpush1.bf16.msra.mxu0 %v7911_v29  ;;  %2810 = vmatpush1.bf16.msra.mxu1 %v7914_v30  ;;  %v1888_v29 = vmul.bf16 %v6720_v56, %v1870_v26  ;;  %v7994_v30 = vld [vmem:[#allocation6 + $0x14] ss:$8 sps:$4 sm:$0xff]  }
 0x23a   :  { %2729 = vmatprep.subr.bf16.mxu0 %v7919_v31  ;;  %2811 = vmatprep.subr.bf16.mxu1 %v7922_v32  ;;  %v7992_v31 = vld [vmem:[#allocation6 + $0x10] ss:$8 sps:$4 sm:$0xff]   ;;  %v7997_v32 = vld [vmem:[#allocation6 + $0x24] ss:$8 sps:$4 sm:$0xff]  }
 0x23d   :  { %2730 = vmatpush1.bf16.msra.mxu0 %v7917_v33  ;;  %2812 = vmatpush1.bf16.msra.mxu1 %v7920_v34  ;;  %v7995_v33 = vld [vmem:[#allocation6 + $0x20] ss:$8 sps:$4 sm:$0xff]   ;;  %v7998_v34 = vld [vmem:[#allocation6 + $0x30] ss:$8 sps:$4 sm:$0xff]  }
 0x23e   :  { %2731 = vmatprep.subr.bf16.mxu0 %v7925_v35  ;;  %2813 = vmatprep.subr.bf16.mxu1 %v7928_v36  ;;  %v8003_v35 = vld [vmem:[#allocation6 + $0x44] ss:$8 sps:$4 sm:$0xff]   ;;  %v8001_v36 = vld [vmem:[#allocation6 + $0x40] ss:$8 sps:$4 sm:$0xff]  }
 0x241   :  { %2732 = vmatpush1.bf16.msra.mxu0 %v7923_v37  ;;  %2814 = vmatpush1.bf16.msra.mxu1 %v7926_v38  ;;  %v8006_v37 = vld [vmem:[#allocation6 + $0x54] ss:$8 sps:$4 sm:$0xff]   ;;  %v8004_v38 = vld [vmem:[#allocation6 + $0x50] ss:$8 sps:$4 sm:$0xff]  }
 0x242   :  { %2733 = vmatprep.subr.bf16.mxu0 %v7931_v39  ;;  %2815 = vmatprep.subr.bf16.mxu1 %v7934_v40  ;;  %v8009_v39 = vld [vmem:[#allocation6 + $0x64] ss:$8 sps:$4 sm:$0xff]   ;;  %v8007_v40 = vld [vmem:[#allocation6 + $0x60] ss:$8 sps:$4 sm:$0xff]  }
 0x245   :  { %2734 = vmatpush1.bf16.msra.mxu0 %v7929_v41  ;;  %2816 = vmatpush1.bf16.msra.mxu1 %v7932_v42  ;;  %v8012_v41 = vld [vmem:[#allocation6 + $0x74] ss:$8 sps:$4 sm:$0xff]   ;;  %v8010_v42 = vld [vmem:[#allocation6 + $0x70] ss:$8 sps:$4 sm:$0xff]  }
 0x246   :  { %2735 = vmatprep.subr.bf16.mxu0 %v7937_v43  ;;  %2817 = vmatprep.subr.bf16.mxu1 %v7940_v44  ;;  %v8015_v43 = vld [vmem:[#allocation6 + $0x84] ss:$8 sps:$4 sm:$0xff]   ;;  %v8013_v44 = vld [vmem:[#allocation6 + $0x80] ss:$8 sps:$4 sm:$0xff]  }
 0x249   :  { %2736 = vmatpush1.bf16.msra.mxu0 %v7935_v45  ;;  %2818 = vmatpush1.bf16.msra.mxu1 %v7938_v46  ;;  %v8018_v45 = vld [vmem:[#allocation6 + $0x94] ss:$8 sps:$4 sm:$0xff]   ;;  %v8016_v46 = vld [vmem:[#allocation6 + $0x90] ss:$8 sps:$4 sm:$0xff]  }
 0x24a   :  { %2737 = vmatprep.subr.bf16.mxu0 %v7943_v52  ;;  %2819 = vmatprep.subr.bf16.mxu1 %v7946_v53  ;;  %v8021_v52 = vld [vmem:[#allocation6 + $0xa4] ss:$8 sps:$4 sm:$0xff]   ;;  %v8019_v53 = vld [vmem:[#allocation6 + $0xa0] ss:$8 sps:$4 sm:$0xff]  }
 0x24d   :  { %2738 = vmatpush1.bf16.msra.mxu0 %v7941_v54  ;;  %2820 = vmatpush1.bf16.msra.mxu1 %v7944_v55  ;;  %v8024_v54 = vld [vmem:[#allocation6 + $0xb4] ss:$8 sps:$4 sm:$0xff]   ;;  %v8022_v55 = vld [vmem:[#allocation6 + $0xb0] ss:$8 sps:$4 sm:$0xff]  }
 0x24e   :  { %2739 = vmatprep.subr.bf16.mxu0 %v7949_v57  ;;  %2821 = vmatprep.subr.bf16.mxu1 %v7952_v58  ;;  %v8027_v57 = vld [vmem:[#allocation6 + $0xc4] ss:$8 sps:$4 sm:$0xff]   ;;  %v8025_v58 = vld [vmem:[#allocation6 + $0xc0] ss:$8 sps:$4 sm:$0xff]  }
 0x251   :  { %2740 = vmatpush1.bf16.msra.mxu0 %v7947_v59  ;;  %2822 = vmatpush1.bf16.msra.mxu1 %v7950_v60  ;;  %v8030_v59 = vld [vmem:[#allocation6 + $0xd4] ss:$8 sps:$4 sm:$0xff]   ;;  %v8028_v60 = vld [vmem:[#allocation6 + $0xd0] ss:$8 sps:$4 sm:$0xff]  }
 0x252   :  { %2741 = vmatprep.subr.bf16.mxu0 %v7955_v61  ;;  %2823 = vmatprep.subr.bf16.mxu1 %v7958_v62  ;;  %v8037_v61 = vld [vmem:[#allocation6 + $0xe4] ss:$8 sps:$4 sm:$0xff]   ;;  %v8035_v62 = vld [vmem:[#allocation6 + $0xe0] ss:$8 sps:$4 sm:$0xff]  }
 0x255   :  { %2742 = vmatpush1.bf16.msra.mxu0 %v7953_v63  ;;  %2824 = vmatpush1.bf16.msra.mxu1 %v7956_v0  ;;  %v8040_v63 = vld [vmem:[#allocation6 + $0xf4] ss:$8 sps:$4 sm:$0xff]   ;;  %v8038_v0 = vld [vmem:[#allocation6 + $0xf0] ss:$8 sps:$4 sm:$0xff]  }
 0x256   :  { %2743 = vmatprep.subr.bf16.mxu0 %v7961_v1  ;;  %2825 = vmatprep.subr.bf16.mxu1 %v7964_v2  ;;  %v8043_v1 = vld [vmem:[#allocation6 + $0x104] ss:$8 sps:$4 sm:$0xff]   ;;  %v8089_v2 = vld [vmem:[#allocation7] ss:$16 sps:$4 sm:$0xff]  }
 0x259   :  { %2744 = vmatpush1.bf16.msra.mxu0 %v7959_v3  ;;  %2826 = vmatpush1.bf16.msra.mxu1 %v7962_v5  ;;  %v8091_v3 = vld [vmem:[#allocation7 + $0x4] ss:$16 sps:$4 sm:$0xff]  }
 0x25a   :  { %2745 = vmatprep.subr.bf16.mxu0 %v7967_v7  ;;  %2827 = vmatprep.subr.bf16.mxu1 %v7970_v8  ;;  %v8094_v5 = vld [vmem:[#allocation7 + $0x24] ss:$16 sps:$4 sm:$0xff]   ;;  %v8092_v7 = vld [vmem:[#allocation7 + $0x20] ss:$16 sps:$4 sm:$0xff]  }
 0x25b   :  { %v9097_v8 = vld [vmem:[%s9257_s6] sm:$0xf] }
 0x25c   :  { %v2035_v12 = vrot.slane %v9097_v8, %v9065_v51 }
 0x25d   :  { %2746 = vmatpush1.bf16.msra.mxu0 %v7965_v9  ;;  %2828 = vmatpush1.bf16.msra.mxu1 %v7968_v10  ;;  %v2023_v9 = vrot.slane %v9097_v8, %v9054_v48  ;;  %v2027_v10 = vrot.slane %v9097_v8, %v9062_v50 }
 0x25e   :  { %2747 = vmatprep.subr.bf16.mxu0 %v7973_v13  ;;  %2829 = vmatprep.subr.bf16.mxu1 %v7976_v14 }
 0x261   :  { %2748 = vmatpush1.bf16.msra.mxu0 %v7971_v15  ;;  %2830 = vmatpush1.bf16.msra.mxu1 %v7974_v16  ;;  %v139_v15 = vld [vmem:[%s9252_s1 + $0x10] sm:$0xff] }
 0x262   :  { %2749 = vmatprep.subr.bf16.mxu0 %v7979_v18  ;;  %2831 = vmatprep.subr.bf16.mxu1 %v7982_v19  ;;  %v6851_v56 = vcombine.high %v139_v15, %v139_v15 }
 0x265   :  { %2750 = vmatpush1.bf16.msra.mxu0 %v7977_v20  ;;  %2832 = vmatpush1.bf16.msra.mxu1 %v7980_v21 }
 0x266   :  { %2751 = vmatprep.subr.bf16.mxu0 %v7985_v49  ;;  %2833 = vmatprep.subr.bf16.mxu1 %v7988_v23  ;;  %v9113_v23 = vld [vmem:[%s9252_s1 + $0x18] sm:$0xff] }
 0x269   :  { %2752 = vmatpush1.bf16.msra.mxu0 %v7983_v24  ;;  %2834 = vmatpush1.bf16.msra.mxu1 %v7986_v25 }
 0x26a   :  { %3266 = vmatprep.subr.bf16.mxu0 %v7991_v27  ;;  %3571 = vmatprep.subr.bf16.mxu1 %v8091_v3  ;;  %v8082_v3 = vld [vmem:[#allocation6 + $0x1d4] ss:$8 sps:$4 sm:$0xff]  }
 0x26c   :  { %2754 = vmatmul.mubr.bf16.vlgmr.msra.gmra.mrb[4].mxu0 %v1888_v29  ;;  %2836 = vmatmul.mubr.bf16.vlgmr.msra.gmra.mrb[4].mxu1 %v1888_v29  ;;  %v6850_v29 = vcombine.low %v139_v15, %v139_v15  ;;  %v8086_v15 = vld [vmem:[#allocation6 + $0x1f0] ss:$8 sps:$4 sm:$0xff]  }
 0x26d   :  { %3267 = vmatpush1.bf16.msra.mxu0 %v7989_v28  ;;  %3603 = vmatprep.mubr.bf16.mxu1 %v8839_v22 }
 0x26e   :  { %3268 = vmatprep.subr.bf16.mxu0 %v7994_v30  ;;  %3572 = vmatpush1.bf16.msra.mxu1 %v8089_v2  ;;  %v2031_v2 = vrot.slane %v9097_v8, %v9086_v6 }
 0x26f   :  { %3573 = vmatprep.subr.bf16.mxu1 %v8094_v5  ;;  %v8080_v5 = vld [vmem:[#allocation6 + $0x1d0] ss:$8 sps:$4 sm:$0xff]  }
 0x271   :  { %3269 = vmatpush1.bf16.msra.mxu0 %v7992_v31 }
 0x272   :  { %3270 = vmatprep.subr.bf16.mxu0 %v7997_v32  ;;  %3574 = vmatpush1.bf16.msra.mxu1 %v8092_v7  ;;  %v6853_v32 = vcombine.high %v9113_v23, %v9113_v23 }
 0x275   :  { %3271 = vmatpush1.bf16.msra.mxu0 %v7995_v33 }
 0x276   :  { %3272 = vmatprep.subr.bf16.mxu0 %v8000_v4  ;;  %v8041_v4 = vld [vmem:[#allocation6 + $0x100] ss:$8 sps:$4 sm:$0xff]  }
 0x279   :  { %3273 = vmatpush1.bf16.msra.mxu0 %v7998_v34 }
 0x27a   :  { %3274 = vmatprep.subr.bf16.mxu0 %v8003_v35  ;;  %v8046_v35 = vld [vmem:[#allocation6 + $0x114] ss:$8 sps:$4 sm:$0xff]  }
 0x27d   :  { %3275 = vmatpush1.bf16.msra.mxu0 %v8001_v36 }
 0x27e   :  { %3276 = vmatprep.subr.bf16.mxu0 %v8006_v37  ;;  %v8044_v37 = vld [vmem:[#allocation6 + $0x110] ss:$8 sps:$4 sm:$0xff]  }
 0x281   :  { %3277 = vmatpush1.bf16.msra.mxu0 %v8004_v38  ;;  %v8049_v38 = vld [vmem:[#allocation6 + $0x124] ss:$8 sps:$4 sm:$0xff]  }
 0x282   :  { %3278 = vmatprep.subr.bf16.mxu0 %v8009_v39  ;;  %v8047_v39 = vld [vmem:[#allocation6 + $0x120] ss:$8 sps:$4 sm:$0xff]  }
 0x285   :  { %3279 = vmatpush1.bf16.msra.mxu0 %v8007_v40  ;;  %v8052_v40 = vld [vmem:[#allocation6 + $0x134] ss:$8 sps:$4 sm:$0xff]  }
 0x286   :  { %3280 = vmatprep.subr.bf16.mxu0 %v8012_v41  ;;  %v8050_v41 = vld [vmem:[#allocation6 + $0x130] ss:$8 sps:$4 sm:$0xff]  }
 0x289   :  { %3281 = vmatpush1.bf16.msra.mxu0 %v8010_v42  ;;  %v8055_v42 = vld [vmem:[#allocation6 + $0x144] ss:$8 sps:$4 sm:$0xff]  }
 0x28a   :  { %3282 = vmatprep.subr.bf16.mxu0 %v8015_v43  ;;  %v8053_v43 = vld [vmem:[#allocation6 + $0x140] ss:$8 sps:$4 sm:$0xff]  }
 0x28d   :  { %3283 = vmatpush1.bf16.msra.mxu0 %v8013_v44  ;;  %v8058_v44 = vld [vmem:[#allocation6 + $0x154] ss:$8 sps:$4 sm:$0xff]  }
 0x28e   :  { %3284 = vmatprep.subr.bf16.mxu0 %v8018_v45  ;;  %v8056_v45 = vld [vmem:[#allocation6 + $0x150] ss:$8 sps:$4 sm:$0xff]  }
 0x291   :  { %3285 = vmatpush1.bf16.msra.mxu0 %v8016_v46  ;;  %v8061_v46 = vld [vmem:[#allocation6 + $0x164] ss:$8 sps:$4 sm:$0xff]  }
 0x292   :  { %3286 = vmatprep.subr.bf16.mxu0 %v8021_v52  ;;  %v8059_v52 = vld [vmem:[#allocation6 + $0x160] ss:$8 sps:$4 sm:$0xff]  }
 0x295   :  { %3287 = vmatpush1.bf16.msra.mxu0 %v8019_v53  ;;  %v8064_v53 = vld [vmem:[#allocation6 + $0x174] ss:$8 sps:$4 sm:$0xff]  }
 0x296   :  { %3288 = vmatprep.subr.bf16.mxu0 %v8024_v54  ;;  %v8062_v54 = vld [vmem:[#allocation6 + $0x170] ss:$8 sps:$4 sm:$0xff]  }
 0x299   :  { %3289 = vmatpush1.bf16.msra.mxu0 %v8022_v55  ;;  %v8067_v55 = vld [vmem:[#allocation6 + $0x184] ss:$8 sps:$4 sm:$0xff]  }
 0x29a   :  { %3290 = vmatprep.subr.bf16.mxu0 %v8027_v57  ;;  %v8065_v57 = vld [vmem:[#allocation6 + $0x180] ss:$8 sps:$4 sm:$0xff]  }
 0x29d   :  { %3291 = vmatpush1.bf16.msra.mxu0 %v8025_v58  ;;  %v8070_v58 = vld [vmem:[#allocation6 + $0x194] ss:$8 sps:$4 sm:$0xff]  }
 0x29e   :  { %3292 = vmatprep.subr.bf16.mxu0 %v8030_v59  ;;  %v8068_v59 = vld [vmem:[#allocation6 + $0x190] ss:$8 sps:$4 sm:$0xff]  }
 0x2a1   :  { %3293 = vmatpush1.bf16.msra.mxu0 %v8028_v60  ;;  %v8073_v60 = vld [vmem:[#allocation6 + $0x1a4] ss:$8 sps:$4 sm:$0xff]  }
 0x2a2   :  { %3294 = vmatprep.subr.bf16.mxu0 %v8037_v61  ;;  %v8071_v61 = vld [vmem:[#allocation6 + $0x1a0] ss:$8 sps:$4 sm:$0xff]  }
 0x2a5   :  { %3295 = vmatpush1.bf16.msra.mxu0 %v8035_v62  ;;  %v8076_v62 = vld [vmem:[#allocation6 + $0x1b4] ss:$8 sps:$4 sm:$0xff]  }
 0x2a6   :  { %3296 = vmatprep.subr.bf16.mxu0 %v8040_v63  ;;  %v8074_v63 = vld [vmem:[#allocation6 + $0x1b0] ss:$8 sps:$4 sm:$0xff]  }
 0x2a9   :  { %3297 = vmatpush1.bf16.msra.mxu0 %v8038_v0  ;;  %v8079_v0 = vld [vmem:[#allocation6 + $0x1c4] ss:$8 sps:$4 sm:$0xff]  }
 0x2aa   :  { %3307 = vmatprep.subr.bf16.mxu0 %v8043_v1  ;;  %v8077_v1 = vld [vmem:[#allocation6 + $0x1c0] ss:$8 sps:$4 sm:$0xff]  }
 0x33f   :  { %v2755_v13 = vpop.f32.mrb[4].mxu0  ;;  %v9105_v14 = vpop.f32.mrb[4].mxu1 }
 0x340   :  { %v7365_v16 = vadd.f32 %v2755_v13, %v2023_v9  ;;  %v2757_v17 = vpop.f32.mrb[5].mxu0  ;;  %v2839_v18 = vpop.f32.mrb[5].mxu1  ;;  %v7367_v7 = vadd.f32 %v9105_v14, %v2031_v2  ;;  %v8085_v9 = vld [vmem:[#allocation6 + $0x1e4] ss:$8 sps:$4 sm:$0xff]   ;;  %v8088_v13 = vld [vmem:[#allocation6 + $0x1f4] ss:$8 sps:$4 sm:$0xff]  }
 0x341   :  { %v7366_v19 = vadd.f32 %v2757_v17, %v2027_v10  ;;  %v7368_v20 = vadd.f32 %v2839_v18, %v2035_v12  ;;  %v2759_v21 = vpop.f32.mrb[6].mxu0  ;;  %v2841_v11 = vpop.f32.mrb[6].mxu1  ;;  %v8083_v10 = vld [vmem:[#allocation6 + $0x1e0] ss:$8 sps:$4 sm:$0xff]   ;;  %v6852_v17 = vcombine.low %v9113_v23, %v9113_v23  ;;  %v8097_v18 = vld [vmem:[#allocation7 + $0x44] ss:$16 sps:$4 sm:$0xff]  }
 0x342   :  { %v2844_v49 = vmax.f32 %v7365_v16, 0.0  ;;  %v2760_v24 = vpop.f32.mrb[7].mxu0  ;;  %v2842_v25 = vpop.f32.mrb[7].mxu1  ;;  %v2846_v12 = vmax.f32 %v7367_v7, 0.0  ;;  %3575 = vmatprep.subr.bf16.mxu1 %v8097_v18  ;;  %v8100_v14 = vld [vmem:[#allocation7 + $0x64] ss:$16 sps:$4 sm:$0xff]  }
 0x343   :  { %v2845_v26 = vmax.f32 %v7366_v19, 0.0  ;;  %v2847_v27 = vmax.f32 %v7368_v20, 0.0  ;;  %v8095_v19 = vld [vmem:[#allocation7 + $0x40] ss:$16 sps:$4 sm:$0xff]   ;;  %v8103_v21 = vld [vmem:[#allocation7 + $0x84] ss:$16 sps:$4 sm:$0xff]  }
 0x344   :  { %v2848_v28 = vpack.c.bf16 %v2844_v49, %v2844_v49  ;;  %v2850_v16 = vpack.c.bf16 %v2846_v12, %v2846_v12  ;;  %3576 = vmatpush1.bf16.msra.mxu1 %v8095_v19  ;;  %v8098_v20 = vld [vmem:[#allocation7 + $0x60] ss:$16 sps:$4 sm:$0xff]   ;;  %v8106_v49 = vld [vmem:[#allocation7 + $0xa4] ss:$16 sps:$4 sm:$0xff]   ;;  %v8113_v18 = vld [vmem:[#allocation7 + $0x8] ss:$16 sps:$4 sm:$0xff]  }
 0x345   :  { %v2849_v30 = vpack.c.bf16 %v2845_v26, %v2845_v26  ;;  %v2851_v31 = vpack.c.bf16 %v2847_v27, %v2847_v27  ;;  %3577 = vmatprep.subr.bf16.mxu1 %v8100_v14  ;;  %v8101_v11 = vld [vmem:[#allocation7 + $0x80] ss:$16 sps:$4 sm:$0xff]   ;;  %v8109_v23 = vld [vmem:[#allocation7 + $0xc4] ss:$16 sps:$4 sm:$0xff]   ;;  %v8115_v27 = vld [vmem:[#allocation7 + $0xc] ss:$16 sps:$4 sm:$0xff]  }
 0x346   :  { %v2866_v34 = vmul.bf16 %v6850_v29, %v2848_v28  ;;  %v2868_v8 = vmul.bf16 %v6852_v17, %v2850_v16  ;;  %v8104_v24 = vld [vmem:[#allocation7 + $0xa0] ss:$16 sps:$4 sm:$0xff]   ;;  %v8112_v26 = vld [vmem:[#allocation7 + $0xe4] ss:$16 sps:$4 sm:$0xff]   ;;  %v8140_v28 = vld [vmem:[#allocation9 + $0x8] ss:$16 sps:$4 sm:$0xff]  }
 0x347   :  { %v2867_v33 = vmul.bf16 %v6851_v56, %v2849_v30  ;;  %v2869_v36 = vmul.bf16 %v6853_v32, %v2851_v31  ;;  %v8107_v25 = vld [vmem:[#allocation7 + $0xc0] ss:$16 sps:$4 sm:$0xff]   ;;  %v8142_v29 = vld [vmem:[#allocation9 + $0xc] ss:$16 sps:$4 sm:$0xff]   ;;  %v8146_v31 = vld [vmem:[#allocation9 + $0x28] ss:$16 sps:$4 sm:$0xff]  }
 0x348   :  { %3578 = vmatpush1.bf16.msra.mxu1 %v8098_v20  ;;  %v8110_v56 = vld [vmem:[#allocation7 + $0xe0] ss:$16 sps:$4 sm:$0xff]   ;;  %v8148_v30 = vld [vmem:[#allocation9 + $0x2c] ss:$16 sps:$4 sm:$0xff]   ;;  %v8116_v20 = vld [vmem:[#allocation7 + $0x28] ss:$16 sps:$4 sm:$0xff]  }
 0x349   :  { %3298 = vmatprep.mubr.bf16.mxu0 %v2867_v33  ;;  %3579 = vmatprep.subr.bf16.mxu1 %v8103_v21  ;;  %v8154_v32 = vld [vmem:[#allocation9 + $0x4c] ss:$16 sps:$4 sm:$0xff]   ;;  %v8152_v33 = vld [vmem:[#allocation9 + $0x48] ss:$16 sps:$4 sm:$0xff]  }
 0x34a   :  { %3299 = vmatmul.mubr.bf16.vlgmr.msra.gmra.mrb[8].mxu0 %v2866_v34  ;;  %v8158_v34 = vld [vmem:[#allocation9 + $0x68] ss:$16 sps:$4 sm:$0xff]   ;;  %v8118_v14 = vld [vmem:[#allocation7 + $0x2c] ss:$16 sps:$4 sm:$0xff]  }
 0x34b   :  { %3308 = vmatpush1.bf16.msra.mxu0 %v8041_v4  ;;  %3339 = vmatprep.mubr.bf16.mxu0 %v2869_v36  ;;  %v8160_v4 = vld [vmem:[#allocation9 + $0x6c] ss:$16 sps:$4 sm:$0xff]   ;;  %v8164_v36 = vld [vmem:[#allocation9 + $0x88] ss:$16 sps:$4 sm:$0xff]  }
 0x34c   :  { %3309 = vmatprep.subr.bf16.mxu0 %v8046_v35  ;;  %3580 = vmatpush1.bf16.msra.mxu1 %v8101_v11  ;;  %v8166_v35 = vld [vmem:[#allocation9 + $0x8c] ss:$16 sps:$4 sm:$0xff]   ;;  %v8119_v11 = vld [vmem:[#allocation7 + $0x48] ss:$16 sps:$4 sm:$0xff]  }
 0x34d   :  { %3581 = vmatprep.subr.bf16.mxu1 %v8106_v49  ;;  %v8121_v21 = vld [vmem:[#allocation7 + $0x4c] ss:$16 sps:$4 sm:$0xff]  }
 0x34e   :  { %v8124_v49 = vld [vmem:[#allocation7 + $0x6c] ss:$16 sps:$4 sm:$0xff]  }
 0x34f   :  { %3310 = vmatpush1.bf16.msra.mxu0 %v8044_v37  ;;  %v8172_v37 = vld [vmem:[#allocation9 + $0xac] ss:$16 sps:$4 sm:$0xff]  }
 0x350   :  { %3311 = vmatprep.subr.bf16.mxu0 %v8049_v38  ;;  %3582 = vmatpush1.bf16.msra.mxu1 %v8104_v24  ;;  %v8170_v38 = vld [vmem:[#allocation9 + $0xa8] ss:$16 sps:$4 sm:$0xff]  }
 0x351   :  { %3583 = vmatprep.subr.bf16.mxu1 %v8109_v23  ;;  %v8122_v24 = vld [vmem:[#allocation7 + $0x68] ss:$16 sps:$4 sm:$0xff]   ;;  %v8127_v23 = vld [vmem:[#allocation7 + $0x8c] ss:$16 sps:$4 sm:$0xff]  }
 0x353   :  { %3312 = vmatpush1.bf16.msra.mxu0 %v8047_v39  ;;  %v8178_v39 = vld [vmem:[#allocation9 + $0xcc] ss:$16 sps:$4 sm:$0xff]  }
 0x354   :  { %3313 = vmatprep.subr.bf16.mxu0 %v8052_v40  ;;  %3584 = vmatpush1.bf16.msra.mxu1 %v8107_v25  ;;  %v8176_v40 = vld [vmem:[#allocation9 + $0xc8] ss:$16 sps:$4 sm:$0xff]  }
 0x355   :  { %3585 = vmatprep.subr.bf16.mxu1 %v8112_v26  ;;  %v8125_v25 = vld [vmem:[#allocation7 + $0x88] ss:$16 sps:$4 sm:$0xff]   ;;  %v8130_v26 = vld [vmem:[#allocation7 + $0xac] ss:$16 sps:$4 sm:$0xff]  }
 0x357   :  { %3314 = vmatpush1.bf16.msra.mxu0 %v8050_v41  ;;  %v8184_v41 = vld [vmem:[#allocation9 + $0xec] ss:$16 sps:$4 sm:$0xff]  }
 0x358   :  { %3315 = vmatprep.subr.bf16.mxu0 %v8055_v42  ;;  %3586 = vmatpush1.bf16.msra.mxu1 %v8110_v56  ;;  %v8182_v42 = vld [vmem:[#allocation9 + $0xe8] ss:$16 sps:$4 sm:$0xff]  }
 0x359   :  { %3612 = vmatprep.subr.bf16.mxu1 %v8115_v27  ;;  %v8128_v56 = vld [vmem:[#allocation7 + $0xa8] ss:$16 sps:$4 sm:$0xff]   ;;  %v8133_v27 = vld [vmem:[#allocation7 + $0xcc] ss:$16 sps:$4 sm:$0xff]  }
 0x35b   :  { %3316 = vmatpush1.bf16.msra.mxu0 %v8053_v43  ;;  %v8190_v43 = vld [vmem:[#allocation9 + $0x10c] ss:$16 sps:$4 sm:$0xff]  }
 0x35c   :  { %3317 = vmatprep.subr.bf16.mxu0 %v8058_v44  ;;  %v8188_v44 = vld [vmem:[#allocation9 + $0x108] ss:$16 sps:$4 sm:$0xff]  }
 0x35f   :  { %3318 = vmatpush1.bf16.msra.mxu0 %v8056_v45  ;;  %v8196_v45 = vld [vmem:[#allocation9 + $0x12c] ss:$16 sps:$4 sm:$0xff]  }
 0x360   :  { %3319 = vmatprep.subr.bf16.mxu0 %v8061_v46  ;;  %v8194_v46 = vld [vmem:[#allocation9 + $0x128] ss:$16 sps:$4 sm:$0xff]  }
 0x363   :  { %3320 = vmatpush1.bf16.msra.mxu0 %v8059_v52  ;;  %v8202_v52 = vld [vmem:[#allocation9 + $0x14c] ss:$16 sps:$4 sm:$0xff]  }
 0x364   :  { %3321 = vmatprep.subr.bf16.mxu0 %v8064_v53  ;;  %v8200_v53 = vld [vmem:[#allocation9 + $0x148] ss:$16 sps:$4 sm:$0xff]  }
 0x367   :  { %3322 = vmatpush1.bf16.msra.mxu0 %v8062_v54  ;;  %v8208_v54 = vld [vmem:[#allocation9 + $0x16c] ss:$16 sps:$4 sm:$0xff]  }
 0x368   :  { %3323 = vmatprep.subr.bf16.mxu0 %v8067_v55  ;;  %v8206_v55 = vld [vmem:[#allocation9 + $0x168] ss:$16 sps:$4 sm:$0xff]  }
 0x36b   :  { %3324 = vmatpush1.bf16.msra.mxu0 %v8065_v57  ;;  %v8214_v57 = vld [vmem:[#allocation9 + $0x18c] ss:$16 sps:$4 sm:$0xff]  }
 0x36c   :  { %3325 = vmatprep.subr.bf16.mxu0 %v8070_v58  ;;  %v8212_v58 = vld [vmem:[#allocation9 + $0x188] ss:$16 sps:$4 sm:$0xff]  }
 0x36f   :  { %3326 = vmatpush1.bf16.msra.mxu0 %v8068_v59  ;;  %v8220_v59 = vld [vmem:[#allocation9 + $0x1ac] ss:$16 sps:$4 sm:$0xff]  }
 0x370   :  { %3327 = vmatprep.subr.bf16.mxu0 %v8073_v60  ;;  %v8218_v60 = vld [vmem:[#allocation9 + $0x1a8] ss:$16 sps:$4 sm:$0xff]  }
 0x373   :  { %3328 = vmatpush1.bf16.msra.mxu0 %v8071_v61  ;;  %v2934_v61 = vld [vmem:[%s9259_s8] sm:$0x3] }
 0x374   :  { %3329 = vmatprep.subr.bf16.mxu0 %v8076_v62  ;;  %v2943_v62 = vrot.slane %v2934_v61, %v9062_v50 }
 0x377   :  { %3330 = vmatpush1.bf16.msra.mxu0 %v8074_v63 }
 0x378   :  { %3331 = vmatprep.subr.bf16.mxu0 %v8079_v0 }
 0x37b   :  { %3332 = vmatpush1.bf16.msra.mxu0 %v8077_v1 }
 0x37c   :  { %3333 = vmatprep.subr.bf16.mxu0 %v8082_v3 }
 0x37f   :  { %3334 = vmatpush1.bf16.msra.mxu0 %v8080_v5 }
 0x380   :  { %3335 = vmatprep.subr.bf16.mxu0 %v8085_v9 }
 0x383   :  { %3336 = vmatpush1.bf16.msra.mxu0 %v8083_v10  ;;  %v2939_v10 = vrot.slane %v2934_v61, %v9054_v48  ;;  %v8217_v61 = vld [vmem:[#allocation9 + $0x1a4] ss:$16 sps:$4 sm:$0xff]  }
 0x384   :  { %3337 = vmatprep.subr.bf16.mxu0 %v8088_v13  ;;  %v3353_v13 = vld [vmem:[%s9253_s2] sm:$0xff] }
 0x387   :  { %3338 = vmatpush1.bf16.msra.mxu0 %v8086_v15 }
 0x388   :  { %4551 = vmatprep.subr.bf16.mxu0 %v8142_v29  ;;  %v8134_v29 = vld [vmem:[#allocation7 + $0xe8] ss:$16 sps:$4 sm:$0xff]  }
 0x38a   :  { %3340 = vmatmul.mubr.bf16.vlgmr.msra.gmra.mrb[8].mxu0 %v2868_v8 }
 0x38b   :  { %4552 = vmatpush1.bf16.msra.mxu0 %v8140_v28  ;;  %v8136_v28 = vld [vmem:[#allocation7 + $0xec] ss:$16 sps:$4 sm:$0xff]  }
 0x38c   :  { %4553 = vmatprep.subr.bf16.mxu0 %v8148_v30  ;;  %v8139_v30 = vld [vmem:[#allocation9 + $0x4] ss:$16 sps:$4 sm:$0xff]  }
 0x38f   :  { %4554 = vmatpush1.bf16.msra.mxu0 %v8146_v31  ;;  %v8137_v31 = vld [vmem:[#allocation9] ss:$16 sps:$4 sm:$0xff]  }
 0x390   :  { %4555 = vmatprep.subr.bf16.mxu0 %v8154_v32  ;;  %v8145_v32 = vld [vmem:[#allocation9 + $0x24] ss:$16 sps:$4 sm:$0xff]  }
 0x393   :  { %4556 = vmatpush1.bf16.msra.mxu0 %v8152_v33  ;;  %v8143_v33 = vld [vmem:[#allocation9 + $0x20] ss:$16 sps:$4 sm:$0xff]  }
 0x394   :  { %4557 = vmatprep.subr.bf16.mxu0 %v8160_v4  ;;  %v8151_v4 = vld [vmem:[#allocation9 + $0x44] ss:$16 sps:$4 sm:$0xff]  }
 0x397   :  { %4558 = vmatpush1.bf16.msra.mxu0 %v8158_v34  ;;  %v8149_v34 = vld [vmem:[#allocation9 + $0x40] ss:$16 sps:$4 sm:$0xff]  }
 0x398   :  { %4559 = vmatprep.subr.bf16.mxu0 %v8166_v35  ;;  %v8157_v35 = vld [vmem:[#allocation9 + $0x64] ss:$16 sps:$4 sm:$0xff]  }
 0x39b   :  { %4560 = vmatpush1.bf16.msra.mxu0 %v8164_v36  ;;  %v8155_v36 = vld [vmem:[#allocation9 + $0x60] ss:$16 sps:$4 sm:$0xff]  }
 0x39c   :  { %4561 = vmatprep.subr.bf16.mxu0 %v8172_v37  ;;  %v8163_v37 = vld [vmem:[#allocation9 + $0x84] ss:$16 sps:$4 sm:$0xff]  }
 0x39f   :  { %4562 = vmatpush1.bf16.msra.mxu0 %v8170_v38  ;;  %v8161_v38 = vld [vmem:[#allocation9 + $0x80] ss:$16 sps:$4 sm:$0xff]  }
 0x3a0   :  { %4563 = vmatprep.subr.bf16.mxu0 %v8178_v39  ;;  %v8169_v39 = vld [vmem:[#allocation9 + $0xa4] ss:$16 sps:$4 sm:$0xff]  }
 0x3a3   :  { %4564 = vmatpush1.bf16.msra.mxu0 %v8176_v40  ;;  %v8167_v40 = vld [vmem:[#allocation9 + $0xa0] ss:$16 sps:$4 sm:$0xff]  }
 0x3a4   :  { %4565 = vmatprep.subr.bf16.mxu0 %v8184_v41  ;;  %v8175_v41 = vld [vmem:[#allocation9 + $0xc4] ss:$16 sps:$4 sm:$0xff]  }
 0x3a7   :  { %4566 = vmatpush1.bf16.msra.mxu0 %v8182_v42  ;;  %v8173_v42 = vld [vmem:[#allocation9 + $0xc0] ss:$16 sps:$4 sm:$0xff]  }
 0x3a8   :  { %4567 = vmatprep.subr.bf16.mxu0 %v8190_v43  ;;  %v8181_v43 = vld [vmem:[#allocation9 + $0xe4] ss:$16 sps:$4 sm:$0xff]  }
 0x3ab   :  { %4568 = vmatpush1.bf16.msra.mxu0 %v8188_v44  ;;  %v8179_v44 = vld [vmem:[#allocation9 + $0xe0] ss:$16 sps:$4 sm:$0xff]  }
 0x3ac   :  { %4569 = vmatprep.subr.bf16.mxu0 %v8196_v45  ;;  %v8187_v45 = vld [vmem:[#allocation9 + $0x104] ss:$16 sps:$4 sm:$0xff]  }
 0x3af   :  { %4570 = vmatpush1.bf16.msra.mxu0 %v8194_v46  ;;  %v8185_v46 = vld [vmem:[#allocation9 + $0x100] ss:$16 sps:$4 sm:$0xff]  }
 0x3b0   :  { %4571 = vmatprep.subr.bf16.mxu0 %v8202_v52  ;;  %v8193_v52 = vld [vmem:[#allocation9 + $0x124] ss:$16 sps:$4 sm:$0xff]  }
 0x3b3   :  { %4572 = vmatpush1.bf16.msra.mxu0 %v8200_v53  ;;  %v8191_v53 = vld [vmem:[#allocation9 + $0x120] ss:$16 sps:$4 sm:$0xff]  }
 0x3b4   :  { %4573 = vmatprep.subr.bf16.mxu0 %v8208_v54  ;;  %v8199_v54 = vld [vmem:[#allocation9 + $0x144] ss:$16 sps:$4 sm:$0xff]  }
 0x3b7   :  { %4574 = vmatpush1.bf16.msra.mxu0 %v8206_v55  ;;  %v8197_v55 = vld [vmem:[#allocation9 + $0x140] ss:$16 sps:$4 sm:$0xff]  }
 0x3b8   :  { %4575 = vmatprep.subr.bf16.mxu0 %v8214_v57  ;;  %v8205_v57 = vld [vmem:[#allocation9 + $0x164] ss:$16 sps:$4 sm:$0xff]  }
 0x3bb   :  { %4576 = vmatpush1.bf16.msra.mxu0 %v8212_v58  ;;  %v8203_v58 = vld [vmem:[#allocation9 + $0x160] ss:$16 sps:$4 sm:$0xff]  }
 0x3bc   :  { %4577 = vmatprep.subr.bf16.mxu0 %v8220_v59  ;;  %v8211_v59 = vld [vmem:[#allocation9 + $0x184] ss:$16 sps:$4 sm:$0xff]  }
 0x3bf   :  { %4578 = vmatpush1.bf16.msra.mxu0 %v8218_v60  ;;  %v8209_v60 = vld [vmem:[#allocation9 + $0x180] ss:$16 sps:$4 sm:$0xff]  }
 0x45d   :  { %v3341_v63 = vpop.f32.mrb[8].mxu0 }
 0x45e   :  { %v3343_v0 = vpop.f32.mrb[9].mxu0  ;;  %v7369_v12 = vadd.f32 %v3341_v63, %v2939_v10  ;;  %v8225_v63 = vld [vmem:[#allocation9 + $0x1c4] ss:$16 sps:$4 sm:$0xff]  }
 0x45f   :  { %v7370_v1 = vadd.f32 %v3343_v0, %v2943_v62  ;;  %v3345_v2 = vpop.f32.mrb[10].mxu0  ;;  %v8215_v62 = vld [vmem:[#allocation9 + $0x1a0] ss:$16 sps:$4 sm:$0xff]   ;;  %v8228_v0 = vld [vmem:[#allocation9 + $0x1cc] ss:$16 sps:$4 sm:$0xff]  }
 0x460   :  { %v3346_v3 = vpop.f32.mrb[11].mxu0  ;;  %v3348_v16 = vmax.f32 %v7369_v12, 0.0  ;;  %v8226_v2 = vld [vmem:[#allocation9 + $0x1c8] ss:$16 sps:$4 sm:$0xff]   ;;  %4579 = vmatprep.subr.bf16.mxu0 %v8228_v0  ;;  %v8237_v10 = vld [vmem:[#allocation9 + $0x204] ss:$16 sps:$4 sm:$0xff]  }
 0x461   :  { %v3349_v5 = vmax.f32 %v7370_v1, 0.0  ;;  %v8223_v1 = vld [vmem:[#allocation9 + $0x1c0] ss:$16 sps:$4 sm:$0xff]   ;;  %4580 = vmatpush1.bf16.msra.mxu0 %v8226_v2  ;;  %v8231_v3 = vld [vmem:[#allocation9 + $0x1e4] ss:$16 sps:$4 sm:$0xff]  }
 0x462   :  { %v8240_v12 = vld [vmem:[#allocation9 + $0x20c] ss:$16 sps:$4 sm:$0xff]  }
 0x463   :  { %v3350_v7 = vmul.f32 0.5, %v3349_v5  ;;  %v8234_v5 = vld [vmem:[#allocation9 + $0x1ec] ss:$16 sps:$4 sm:$0xff]  }
 0x464   :  { %4581 = vmatprep.subr.bf16.mxu0 %v8234_v5 }
 0x465   :  { %v3351_v9 = vmul.f32 1.442695, %v3350_v7  ;;  %v8229_v7 = vld [vmem:[#allocation9 + $0x1e0] ss:$16 sps:$4 sm:$0xff]  }
 0x467   :  { %8657 = vpow2.f32 %v3351_v9  ;;  %v8232_v9 = vld [vmem:[#allocation9 + $0x1e8] ss:$16 sps:$4 sm:$0xff]  }
 0x468   :  { %4582 = vmatpush1.bf16.msra.mxu0 %v8232_v9  ;;  %v8282_v9 = vld [vmem:[#allocation9 + $0x2e8] ss:$16 sps:$4 sm:$0xff]  }
 0x469   :  { %4592 = vmatprep.subr.bf16.mxu0 %v8240_v12  ;;  %v8290_v12 = vld [vmem:[#allocation9 + $0x30c] ss:$16 sps:$4 sm:$0xff]  }
 0x471   :  { %v8658_v15 = vpop.eup %8657 }
 0x472   :  { %v3354_v17 = vmul.f32 %v8658_v15, %v3353_v13  ;;  %v9134_v13 = vld [vmem:[%s9261_s10] sm:$0xf] }
 0x473   :  { %v3394_v15 = vrot.slane %v9134_v13, %v9054_v48 }
 0x474   :  { %v3355_v8 = vadd.f32 %v3354_v17, %v3348_v16  ;;  %v3398_v16 = vrot.slane %v9134_v13, %v9062_v50 }
 0x476   :  { %v3356_v19 = vpack.c.bf16 %v3355_v8, %v3355_v8  ;;  %v141_v8 = vld [vmem:[%s9252_s1 + $0x20] sm:$0xff] }
 0x478   :  { %3604 = vmatmul.mubr.bf16.vlgmr.msra.gmra.mrb[8].mxu1 %v3356_v19 }
 0x479   :  { %3613 = vmatpush1.bf16.msra.mxu1 %v8113_v18  ;;  %3644 = vmatprep.mubr.bf16.mxu1 %v8839_v22  ;;  %v8131_v22 = vld [vmem:[#allocation7 + $0xc8] ss:$16 sps:$4 sm:$0xff]  }
 0x47a   :  { %3614 = vmatprep.subr.bf16.mxu1 %v8118_v14 }
 0x47d   :  { %3615 = vmatpush1.bf16.msra.mxu1 %v8116_v20 }
 0x47e   :  { %3616 = vmatprep.subr.bf16.mxu1 %v8121_v21 }
 0x481   :  { %3617 = vmatpush1.bf16.msra.mxu1 %v8119_v11 }
 0x482   :  { %3618 = vmatprep.subr.bf16.mxu1 %v8124_v49 }
 0x485   :  { %3619 = vmatpush1.bf16.msra.mxu1 %v8122_v24  ;;  %v6951_v24 = vcombine.high %v141_v8, %v141_v8 }
 0x486   :  { %3620 = vmatprep.subr.bf16.mxu1 %v8127_v23 }
 0x489   :  { %3621 = vmatpush1.bf16.msra.mxu1 %v8125_v25  ;;  %v6950_v25 = vcombine.low %v141_v8, %v141_v8  ;;  %v8288_v8 = vld [vmem:[#allocation9 + $0x308] ss:$16 sps:$4 sm:$0xff]  }
 0x48a   :  { %3622 = vmatprep.subr.bf16.mxu1 %v8130_v26 }
 0x48d   :  { %3623 = vmatpush1.bf16.msra.mxu1 %v8128_v56 }
 0x48e   :  { %3624 = vmatprep.subr.bf16.mxu1 %v8133_v27  ;;  %v8235_v27 = vld [vmem:[#allocation9 + $0x200] ss:$16 sps:$4 sm:$0xff]  }
 0x491   :  { %3625 = vmatpush1.bf16.msra.mxu1 %v8131_v22  ;;  %v8238_v22 = vld [vmem:[#allocation9 + $0x208] ss:$16 sps:$4 sm:$0xff]  }
 0x492   :  { %3626 = vmatprep.subr.bf16.mxu1 %v8136_v28 }
 0x495   :  { %3627 = vmatpush1.bf16.msra.mxu1 %v8134_v29  ;;  %v8243_v29 = vld [vmem:[#allocation9 + $0x224] ss:$16 sps:$4 sm:$0xff]  }
 0x496   :  { %4469 = vmatprep.subr.bf16.mxu1 %v8139_v30  ;;  %v8246_v30 = vld [vmem:[#allocation9 + $0x22c] ss:$16 sps:$4 sm:$0xff]  }
 0x498   :  { %3645 = vmatmul.mubr.bf16.vlgmr.msra.gmra.mrb[12].mxu1 %v3356_v19 }
 0x499   :  { %4470 = vmatpush1.bf16.msra.mxu1 %v8137_v31  ;;  %v8241_v31 = vld [vmem:[#allocation9 + $0x220] ss:$16 sps:$4 sm:$0xff]  }
 0x49a   :  { %4471 = vmatprep.subr.bf16.mxu1 %v8145_v32  ;;  %v8244_v32 = vld [vmem:[#allocation9 + $0x228] ss:$16 sps:$4 sm:$0xff]  }
 0x49d   :  { %4472 = vmatpush1.bf16.msra.mxu1 %v8143_v33  ;;  %v8249_v33 = vld [vmem:[#allocation9 + $0x244] ss:$16 sps:$4 sm:$0xff]  }
 0x49e   :  { %4473 = vmatprep.subr.bf16.mxu1 %v8151_v4  ;;  %v8252_v4 = vld [vmem:[#allocation9 + $0x24c] ss:$16 sps:$4 sm:$0xff]  }
 0x4a1   :  { %4474 = vmatpush1.bf16.msra.mxu1 %v8149_v34  ;;  %v8247_v34 = vld [vmem:[#allocation9 + $0x240] ss:$16 sps:$4 sm:$0xff]  }
 0x4a2   :  { %4475 = vmatprep.subr.bf16.mxu1 %v8157_v35  ;;  %v8250_v35 = vld [vmem:[#allocation9 + $0x248] ss:$16 sps:$4 sm:$0xff]  }
 0x4a5   :  { %4476 = vmatpush1.bf16.msra.mxu1 %v8155_v36  ;;  %v8255_v36 = vld [vmem:[#allocation9 + $0x264] ss:$16 sps:$4 sm:$0xff]  }
 0x4a6   :  { %4477 = vmatprep.subr.bf16.mxu1 %v8163_v37  ;;  %v8258_v37 = vld [vmem:[#allocation9 + $0x26c] ss:$16 sps:$4 sm:$0xff]  }
 0x4a9   :  { %4478 = vmatpush1.bf16.msra.mxu1 %v8161_v38  ;;  %v8253_v38 = vld [vmem:[#allocation9 + $0x260] ss:$16 sps:$4 sm:$0xff]  }
 0x4aa   :  { %4479 = vmatprep.subr.bf16.mxu1 %v8169_v39  ;;  %v8256_v39 = vld [vmem:[#allocation9 + $0x268] ss:$16 sps:$4 sm:$0xff]  }
 0x4ad   :  { %4480 = vmatpush1.bf16.msra.mxu1 %v8167_v40  ;;  %v8261_v40 = vld [vmem:[#allocation9 + $0x284] ss:$16 sps:$4 sm:$0xff]  }
 0x4ae   :  { %4481 = vmatprep.subr.bf16.mxu1 %v8175_v41  ;;  %v8264_v41 = vld [vmem:[#allocation9 + $0x28c] ss:$16 sps:$4 sm:$0xff]  }
 0x4b1   :  { %4482 = vmatpush1.bf16.msra.mxu1 %v8173_v42  ;;  %v8259_v42 = vld [vmem:[#allocation9 + $0x280] ss:$16 sps:$4 sm:$0xff]  }
 0x4b2   :  { %4483 = vmatprep.subr.bf16.mxu1 %v8181_v43  ;;  %v8262_v43 = vld [vmem:[#allocation9 + $0x288] ss:$16 sps:$4 sm:$0xff]  }
 0x4b5   :  { %4484 = vmatpush1.bf16.msra.mxu1 %v8179_v44  ;;  %v8267_v44 = vld [vmem:[#allocation9 + $0x2a4] ss:$16 sps:$4 sm:$0xff]  }
 0x4b6   :  { %4485 = vmatprep.subr.bf16.mxu1 %v8187_v45  ;;  %v8270_v45 = vld [vmem:[#allocation9 + $0x2ac] ss:$16 sps:$4 sm:$0xff]  }
 0x4b9   :  { %4486 = vmatpush1.bf16.msra.mxu1 %v8185_v46  ;;  %v8265_v46 = vld [vmem:[#allocation9 + $0x2a0] ss:$16 sps:$4 sm:$0xff]  }
 0x4ba   :  { %4487 = vmatprep.subr.bf16.mxu1 %v8193_v52  ;;  %v8268_v52 = vld [vmem:[#allocation9 + $0x2a8] ss:$16 sps:$4 sm:$0xff]  }
 0x4bd   :  { %4488 = vmatpush1.bf16.msra.mxu1 %v8191_v53  ;;  %v8275_v53 = vld [vmem:[#allocation9 + $0x2c4] ss:$16 sps:$4 sm:$0xff]  }
 0x4be   :  { %4489 = vmatprep.subr.bf16.mxu1 %v8199_v54  ;;  %v8278_v54 = vld [vmem:[#allocation9 + $0x2cc] ss:$16 sps:$4 sm:$0xff]  }
 0x4c1   :  { %4490 = vmatpush1.bf16.msra.mxu1 %v8197_v55  ;;  %v3406_v55 = vrot.slane %v9134_v13, %v9065_v51 }
 0x4c2   :  { %4491 = vmatprep.subr.bf16.mxu1 %v8205_v57 }
 0x4c5   :  { %4492 = vmatpush1.bf16.msra.mxu1 %v8203_v58  ;;  %v8273_v58 = vld [vmem:[#allocation9 + $0x2c0] ss:$16 sps:$4 sm:$0xff]  }
 0x4c6   :  { %4493 = vmatprep.subr.bf16.mxu1 %v8211_v59  ;;  %v8276_v59 = vld [vmem:[#allocation9 + $0x2c8] ss:$16 sps:$4 sm:$0xff]  }
 0x4c9   :  { %4494 = vmatpush1.bf16.msra.mxu1 %v8209_v60  ;;  %v9150_v60 = vld [vmem:[%s9252_s1 + $0x28] sm:$0xff] }
 0x4ca   :  { %4495 = vmatprep.subr.bf16.mxu1 %v8217_v61  ;;  %v6953_v5 = vcombine.high %v9150_v60, %v9150_v60 }
 0x4cd   :  { %4496 = vmatpush1.bf16.msra.mxu1 %v8215_v62  ;;  %v8281_v62 = vld [vmem:[#allocation9 + $0x2e4] ss:$16 sps:$4 sm:$0xff]  }
 0x4ce   :  { %4497 = vmatprep.subr.bf16.mxu1 %v8225_v63  ;;  %v8284_v63 = vld [vmem:[#allocation9 + $0x2ec] ss:$16 sps:$4 sm:$0xff]  }
 0x4d1   :  { %4498 = vmatpush1.bf16.msra.mxu1 %v8223_v1 }
 0x4d2   :  { %4499 = vmatprep.subr.bf16.mxu1 %v8231_v3 }
 0x4d5   :  { %4500 = vmatpush1.bf16.msra.mxu1 %v8229_v7  ;;  %v8279_v7 = vld [vmem:[#allocation9 + $0x2e0] ss:$16 sps:$4 sm:$0xff]  }
 0x4d6   :  { %4510 = vmatprep.subr.bf16.mxu1 %v8237_v10  ;;  %v8287_v10 = vld [vmem:[#allocation9 + $0x304] ss:$16 sps:$4 sm:$0xff]  }
 0x54b   :  { %v3605_v17 = vpop.f32.mrb[8].mxu1 }
 0x54c   :  { %v3606_v18 = vadd.f32 %v3605_v17, %v3394_v15  ;;  %v3607_v19 = vpop.f32.mrb[9].mxu1  ;;  %v8285_v17 = vld [vmem:[#allocation9 + $0x300] ss:$16 sps:$4 sm:$0xff]  }
 0x54d   :  { %v3608_v14 = vadd.f32 %v3607_v19, %v3398_v16  ;;  %v3609_v20 = vpop.f32.mrb[10].mxu1  ;;  %v8296_v19 = vld [vmem:[#allocation9 + $0x32c] ss:$16 sps:$4 sm:$0xff]  }
 0x54e   :  { %v3653_v21 = vmax.f32 %v3606_v18, 0.0  ;;  %v3610_v11 = vpop.f32.mrb[11].mxu1  ;;  %v8293_v18 = vld [vmem:[#allocation9 + $0x324] ss:$16 sps:$4 sm:$0xff]   ;;  %v8294_v20 = vld [vmem:[#allocation9 + $0x328] ss:$16 sps:$4 sm:$0xff]  }
 0x54f   :  { %v3654_v49 = vmax.f32 %v3608_v14, 0.0  ;;  %v8291_v14 = vld [vmem:[#allocation9 + $0x320] ss:$16 sps:$4 sm:$0xff]   ;;  %v8302_v11 = vld [vmem:[#allocation9 + $0x34c] ss:$16 sps:$4 sm:$0xff]  }
 0x550   :  { %v3657_v23 = vpack.c.bf16 %v3653_v21, %v3653_v21  ;;  %v8299_v21 = vld [vmem:[#allocation9 + $0x344] ss:$16 sps:$4 sm:$0xff]  }
 0x551   :  { %v3658_v26 = vpack.c.bf16 %v3654_v49, %v3654_v49  ;;  %v8297_v49 = vld [vmem:[#allocation9 + $0x340] ss:$16 sps:$4 sm:$0xff]  }
 0x552   :  { %v3675_v28 = vmul.bf16 %v6950_v25, %v3657_v23  ;;  %v8305_v23 = vld [vmem:[#allocation9 + $0x364] ss:$16 sps:$4 sm:$0xff]   ;;  %v8308_v25 = vld [vmem:[#allocation9 + $0x36c] ss:$16 sps:$4 sm:$0xff]  }
 0x553   :  { %v3676_v56 = vmul.bf16 %v6951_v24, %v3658_v26  ;;  %v8300_v24 = vld [vmem:[#allocation9 + $0x348] ss:$16 sps:$4 sm:$0xff]   ;;  %v8303_v26 = vld [vmem:[#allocation9 + $0x360] ss:$16 sps:$4 sm:$0xff]  }
 0x555   :  { %4501 = vmatprep.mubr.bf16.mxu1 %v3676_v56  ;;  %4583 = vmatprep.mubr.bf16.mxu0 %v3676_v56  ;;  %v8306_v56 = vld [vmem:[#allocation9 + $0x368] ss:$16 sps:$4 sm:$0xff]  }
 0x556   :  { %4502 = vmatmul.mubr.bf16.vlgmr.msra.gmra.mrb[16].mxu1 %v3675_v28  ;;  %4584 = vmatmul.mubr.bf16.vlgmr.msra.gmra.mrb[12].mxu0 %v3675_v28  ;;  %v8309_v28 = vld [vmem:[#allocation9 + $0x380] ss:$16 sps:$4 sm:$0xff]  }
 0x557   :  { %4511 = vmatpush1.bf16.msra.mxu1 %v8235_v27  ;;  %4593 = vmatpush1.bf16.msra.mxu0 %v8238_v22  ;;  %v8311_v27 = vld [vmem:[#allocation9 + $0x384] ss:$16 sps:$4 sm:$0xff]   ;;  %v8314_v22 = vld [vmem:[#allocation9 + $0x38c] ss:$16 sps:$4 sm:$0xff]  }
 0x558   :  { %4512 = vmatprep.subr.bf16.mxu1 %v8243_v29  ;;  %4594 = vmatprep.subr.bf16.mxu0 %v8246_v30  ;;  %v8312_v29 = vld [vmem:[#allocation9 + $0x388] ss:$16 sps:$4 sm:$0xff]   ;;  %v3402_v30 = vrot.slane %v9134_v13, %v9086_v6  ;;  %v8329_v13 = vld [vmem:[#allocation9 + $0x3e4] ss:$16 sps:$4 sm:$0xff]  }
 0x55b   :  { %4513 = vmatpush1.bf16.msra.mxu1 %v8241_v31  ;;  %4595 = vmatpush1.bf16.msra.mxu0 %v8244_v32  ;;  %v8317_v31 = vld [vmem:[#allocation9 + $0x3a4] ss:$16 sps:$4 sm:$0xff]   ;;  %v8320_v32 = vld [vmem:[#allocation9 + $0x3ac] ss:$16 sps:$4 sm:$0xff]  }
 0x55c   :  { %4514 = vmatprep.subr.bf16.mxu1 %v8249_v33  ;;  %4596 = vmatprep.subr.bf16.mxu0 %v8252_v4  ;;  %v8315_v33 = vld [vmem:[#allocation9 + $0x3a0] ss:$16 sps:$4 sm:$0xff]   ;;  %v8318_v4 = vld [vmem:[#allocation9 + $0x3a8] ss:$16 sps:$4 sm:$0xff]  }
 0x55f   :  { %4515 = vmatpush1.bf16.msra.mxu1 %v8247_v34  ;;  %4597 = vmatpush1.bf16.msra.mxu0 %v8250_v35  ;;  %v8323_v35 = vld [vmem:[#allocation9 + $0x3c4] ss:$16 sps:$4 sm:$0xff]  }
 0x560   :  { %4516 = vmatprep.subr.bf16.mxu1 %v8255_v36  ;;  %4598 = vmatprep.subr.bf16.mxu0 %v8258_v37  ;;  %v8326_v36 = vld [vmem:[#allocation9 + $0x3cc] ss:$16 sps:$4 sm:$0xff]   ;;  %v8321_v37 = vld [vmem:[#allocation9 + $0x3c0] ss:$16 sps:$4 sm:$0xff]  }
 0x563   :  { %4517 = vmatpush1.bf16.msra.mxu1 %v8253_v38  ;;  %4599 = vmatpush1.bf16.msra.mxu0 %v8256_v39  ;;  %v8324_v38 = vld [vmem:[#allocation9 + $0x3c8] ss:$16 sps:$4 sm:$0xff]  }
 0x564   :  { %4518 = vmatprep.subr.bf16.mxu1 %v8261_v40  ;;  %4600 = vmatprep.subr.bf16.mxu0 %v8264_v41  ;;  %v8332_v40 = vld [vmem:[#allocation9 + $0x3ec] ss:$16 sps:$4 sm:$0xff]   ;;  %v8327_v41 = vld [vmem:[#allocation9 + $0x3e0] ss:$16 sps:$4 sm:$0xff]  }
 0x567   :  { %4519 = vmatpush1.bf16.msra.mxu1 %v8259_v42  ;;  %4601 = vmatpush1.bf16.msra.mxu0 %v8262_v43  ;;  %v8330_v42 = vld [vmem:[#allocation9 + $0x3e8] ss:$16 sps:$4 sm:$0xff]  }
 0x568   :  { %4520 = vmatprep.subr.bf16.mxu1 %v8267_v44  ;;  %4602 = vmatprep.subr.bf16.mxu0 %v8270_v45  ;;  %v6952_v44 = vcombine.low %v9150_v60, %v9150_v60  ;;  %v8335_v45 = vld [vmem:[#allocation10 + $0x4] ss:$28 sps:$4 sm:$0xff]   ;;  %v8347_v60 = vld [vmem:[#allocation10 + $0x74] ss:$28 sps:$4 sm:$0xff]  }
 0x56b   :  { %v9145_v57 = vpop.f32.mrb[12].mxu1  ;;  %4521 = vmatpush1.bf16.msra.mxu1 %v8265_v46  ;;  %4603 = vmatpush1.bf16.msra.mxu0 %v8268_v52  ;;  %v8338_v46 = vld [vmem:[#allocation10 + $0xc] ss:$28 sps:$4 sm:$0xff]   ;;  %v8333_v52 = vld [vmem:[#allocation10] ss:$28 sps:$4 sm:$0xff]  }
 0x56c   :  { %v3648_v61 = vpop.f32.mrb[13].mxu1  ;;  %4522 = vmatprep.subr.bf16.mxu1 %v8275_v53  ;;  %4604 = vmatprep.subr.bf16.mxu0 %v8278_v54  ;;  %v3647_v34 = vadd.f32 %v9145_v57, %v3402_v30  ;;  %v8336_v53 = vld [vmem:[#allocation10 + $0x8] ss:$28 sps:$4 sm:$0xff]   ;;  %v8398_v30 = vld [vmem:[#allocation10 + $0x23c] ss:$28 sps:$4 sm:$0xff]  }
 0x56d   :  { %v3649_v0 = vadd.f32 %v3648_v61, %v3406_v55  ;;  %v3650_v1 = vpop.f32.mrb[14].mxu1  ;;  %v8341_v55 = vld [vmem:[#allocation10 + $0x3c] ss:$28 sps:$4 sm:$0xff]   ;;  %v8344_v57 = vld [vmem:[#allocation10 + $0x44] ss:$28 sps:$4 sm:$0xff]  }
 0x56e   :  { %v3651_v2 = vpop.f32.mrb[15].mxu1  ;;  %v3655_v39 = vmax.f32 %v3647_v34, 0.0  ;;  %v8350_v61 = vld [vmem:[#allocation10 + $0x7c] ss:$28 sps:$4 sm:$0xff]   ;;  %v8356_v1 = vld [vmem:[#allocation10 + $0xb4] ss:$28 sps:$4 sm:$0xff]  }
 0x56f   :  { %v3656_v3 = vmax.f32 %v3649_v0, 0.0  ;;  %4523 = vmatpush1.bf16.msra.mxu1 %v8273_v58  ;;  %4605 = vmatpush1.bf16.msra.mxu0 %v8276_v59  ;;  %v8339_v58 = vld [vmem:[#allocation10 + $0x38] ss:$28 sps:$4 sm:$0xff]   ;;  %v8342_v59 = vld [vmem:[#allocation10 + $0x40] ss:$28 sps:$4 sm:$0xff]  }
 0x570   :  { %4524 = vmatprep.subr.bf16.mxu1 %v8281_v62  ;;  %4606 = vmatprep.subr.bf16.mxu0 %v8284_v63  ;;  %v3659_v43 = vpack.c.bf16 %v3655_v39, %v3655_v39  ;;  %v8345_v62 = vld [vmem:[#allocation10 + $0x70] ss:$28 sps:$4 sm:$0xff]   ;;  %v8348_v63 = vld [vmem:[#allocation10 + $0x78] ss:$28 sps:$4 sm:$0xff]   ;;  %v8351_v2 = vld [vmem:[#allocation10 + $0xa8] ss:$28 sps:$4 sm:$0xff]  }
 0x571   :  { %v3660_v15 = vpack.c.bf16 %v3656_v3, %v3656_v3  ;;  %v8353_v0 = vld [vmem:[#allocation10 + $0xac] ss:$28 sps:$4 sm:$0xff]  }
 0x572   :  { %v3677_v54 = vmul.bf16 %v6952_v44, %v3659_v43  ;;  %v8354_v3 = vld [vmem:[#allocation10 + $0xb0] ss:$28 sps:$4 sm:$0xff]   ;;  %v8399_v34 = vld [vmem:[#allocation10 + $0x268] ss:$28 sps:$4 sm:$0xff]   ;;  %v8426_v44 = vld [vmem:[#allocation10 + $0x31c] ss:$28 sps:$4 sm:$0xff]  }
 0x573   :  { %v3678_v16 = vmul.bf16 %v6953_v5, %v3660_v15  ;;  %4525 = vmatpush1.bf16.msra.mxu1 %v8279_v7  ;;  %4607 = vmatpush1.bf16.msra.mxu0 %v8282_v9  ;;  %v8359_v5 = vld [vmem:[#allocation10 + $0xe4] ss:$28 sps:$4 sm:$0xff]   ;;  %v8362_v7 = vld [vmem:[#allocation10 + $0xec] ss:$28 sps:$4 sm:$0xff]   ;;  %v8423_v43 = vld [vmem:[#allocation10 + $0x314] ss:$28 sps:$4 sm:$0xff]  }
 0x574   :  { %4526 = vmatprep.subr.bf16.mxu1 %v8287_v10  ;;  %4608 = vmatprep.subr.bf16.mxu0 %v8290_v12  ;;  %v8357_v9 = vld [vmem:[#allocation10 + $0xe0] ss:$28 sps:$4 sm:$0xff]   ;;  %v8360_v10 = vld [vmem:[#allocation10 + $0xe8] ss:$28 sps:$4 sm:$0xff]  }
 0x575   :  { %4542 = vmatprep.mubr.bf16.mxu1 %v3678_v16  ;;  %4624 = vmatprep.mubr.bf16.mxu0 %v3678_v16  ;;  %v8365_v12 = vld [vmem:[#allocation10 + $0x11c] ss:$28 sps:$4 sm:$0xff]   ;;  %v8368_v15 = vld [vmem:[#allocation10 + $0x124] ss:$28 sps:$4 sm:$0xff]  }
 0x576   :  { %v8363_v16 = vld [vmem:[#allocation10 + $0x118] ss:$28 sps:$4 sm:$0xff]   ;;  %v8408_v39 = vld [vmem:[#allocation10 + $0x2a8] ss:$28 sps:$4 sm:$0xff]  }
 0x577   :  { %4527 = vmatpush1.bf16.msra.mxu1 %v8285_v17  ;;  %4609 = vmatpush1.bf16.msra.mxu0 %v8288_v8  ;;  %v8366_v17 = vld [vmem:[#allocation10 + $0x120] ss:$28 sps:$4 sm:$0xff]   ;;  %v8371_v8 = vld [vmem:[#allocation10 + $0x154] ss:$28 sps:$4 sm:$0xff]  }
 0x578   :  { %4528 = vmatprep.subr.bf16.mxu1 %v8293_v18  ;;  %4610 = vmatprep.subr.bf16.mxu0 %v8296_v19  ;;  %v8374_v18 = vld [vmem:[#allocation10 + $0x15c] ss:$28 sps:$4 sm:$0xff]   ;;  %v8369_v19 = vld [vmem:[#allocation10 + $0x150] ss:$28 sps:$4 sm:$0xff]  }
 0x57b   :  { %4529 = vmatpush1.bf16.msra.mxu1 %v8291_v14  ;;  %4611 = vmatpush1.bf16.msra.mxu0 %v8294_v20  ;;  %v8372_v14 = vld [vmem:[#allocation10 + $0x158] ss:$28 sps:$4 sm:$0xff]   ;;  %v8377_v20 = vld [vmem:[#allocation10 + $0x18c] ss:$28 sps:$4 sm:$0xff]  }
 0x57c   :  { %4530 = vmatprep.subr.bf16.mxu1 %v8299_v21  ;;  %4612 = vmatprep.subr.bf16.mxu0 %v8302_v11  ;;  %v8380_v21 = vld [vmem:[#allocation10 + $0x194] ss:$28 sps:$4 sm:$0xff]   ;;  %v8375_v11 = vld [vmem:[#allocation10 + $0x188] ss:$28 sps:$4 sm:$0xff]  }
 0x57f   :  { %4531 = vmatpush1.bf16.msra.mxu1 %v8297_v49  ;;  %4613 = vmatpush1.bf16.msra.mxu0 %v8300_v24  ;;  %v8378_v49 = vld [vmem:[#allocation10 + $0x190] ss:$28 sps:$4 sm:$0xff]   ;;  %v8383_v24 = vld [vmem:[#allocation10 + $0x1c4] ss:$28 sps:$4 sm:$0xff]  }
 0x580   :  { %4532 = vmatprep.subr.bf16.mxu1 %v8305_v23  ;;  %4614 = vmatprep.subr.bf16.mxu0 %v8308_v25  ;;  %v8386_v23 = vld [vmem:[#allocation10 + $0x1cc] ss:$28 sps:$4 sm:$0xff]   ;;  %v8381_v25 = vld [vmem:[#allocation10 + $0x1c0] ss:$28 sps:$4 sm:$0xff]  }
 0x583   :  { %4533 = vmatpush1.bf16.msra.mxu1 %v8303_v26  ;;  %4615 = vmatpush1.bf16.msra.mxu0 %v8306_v56  ;;  %v8384_v26 = vld [vmem:[#allocation10 + $0x1c8] ss:$28 sps:$4 sm:$0xff]   ;;  %v8389_v56 = vld [vmem:[#allocation10 + $0x1fc] ss:$28 sps:$4 sm:$0xff]  }
 0x584   :  { %4534 = vmatprep.subr.bf16.mxu1 %v8311_v27  ;;  %4616 = vmatprep.subr.bf16.mxu0 %v8314_v22  ;;  %v8392_v27 = vld [vmem:[#allocation10 + $0x204] ss:$28 sps:$4 sm:$0xff]   ;;  %v8387_v22 = vld [vmem:[#allocation10 + $0x1f8] ss:$28 sps:$4 sm:$0xff]  }
 0x587   :  { %4535 = vmatpush1.bf16.msra.mxu1 %v8309_v28  ;;  %4617 = vmatpush1.bf16.msra.mxu0 %v8312_v29  ;;  %v8390_v28 = vld [vmem:[#allocation10 + $0x200] ss:$28 sps:$4 sm:$0xff]   ;;  %v8395_v29 = vld [vmem:[#allocation10 + $0x234] ss:$28 sps:$4 sm:$0xff]  }
 0x588   :  { %4536 = vmatprep.subr.bf16.mxu1 %v8317_v31  ;;  %4618 = vmatprep.subr.bf16.mxu0 %v8320_v32  ;;  %v8393_v31 = vld [vmem:[#allocation10 + $0x230] ss:$28 sps:$4 sm:$0xff]   ;;  %v8396_v32 = vld [vmem:[#allocation10 + $0x238] ss:$28 sps:$4 sm:$0xff]  }
 0x58b   :  { %4537 = vmatpush1.bf16.msra.mxu1 %v8315_v33  ;;  %4619 = vmatpush1.bf16.msra.mxu0 %v8318_v4  ;;  %v8401_v33 = vld [vmem:[#allocation10 + $0x26c] ss:$28 sps:$4 sm:$0xff]   ;;  %v8404_v4 = vld [vmem:[#allocation10 + $0x274] ss:$28 sps:$4 sm:$0xff]  }
 0x58c   :  { %4538 = vmatprep.subr.bf16.mxu1 %v8323_v35  ;;  %4620 = vmatprep.subr.bf16.mxu0 %v8326_v36  ;;  %v8402_v35 = vld [vmem:[#allocation10 + $0x270] ss:$28 sps:$4 sm:$0xff]   ;;  %v8407_v36 = vld [vmem:[#allocation10 + $0x2a4] ss:$28 sps:$4 sm:$0xff]  }
 0x58f   :  { %4539 = vmatpush1.bf16.msra.mxu1 %v8321_v37  ;;  %4621 = vmatpush1.bf16.msra.mxu0 %v8324_v38  ;;  %v8410_v37 = vld [vmem:[#allocation10 + $0x2ac] ss:$28 sps:$4 sm:$0xff]   ;;  %v8405_v38 = vld [vmem:[#allocation10 + $0x2a0] ss:$28 sps:$4 sm:$0xff]  }
 0x590   :  { %4540 = vmatprep.subr.bf16.mxu1 %v8329_v13  ;;  %4622 = vmatprep.subr.bf16.mxu0 %v8332_v40  ;;  %v8413_v13 = vld [vmem:[#allocation10 + $0x2dc] ss:$28 sps:$4 sm:$0xff]   ;;  %v8416_v40 = vld [vmem:[#allocation10 + $0x2e4] ss:$28 sps:$4 sm:$0xff]  }
 0x593   :  { %4541 = vmatpush1.bf16.msra.mxu1 %v8327_v41  ;;  %4623 = vmatpush1.bf16.msra.mxu0 %v8330_v42  ;;  %v8411_v41 = vld [vmem:[#allocation10 + $0x2d8] ss:$28 sps:$4 sm:$0xff]   ;;  %v8414_v42 = vld [vmem:[#allocation10 + $0x2e0] ss:$28 sps:$4 sm:$0xff]  }
 0x594   :  { %6104 = vmatprep.subr.bf16.mxu1 %v8335_v45  ;;  %6186 = vmatprep.subr.bf16.mxu0 %v8338_v46  ;;  %v8421_v45 = vld [vmem:[#allocation10 + $0x310] ss:$28 sps:$4 sm:$0xff]   ;;  %v8424_v46 = vld [vmem:[#allocation10 + $0x318] ss:$28 sps:$4 sm:$0xff]  }
 0x596   :  { %4543 = vmatmul.mubr.bf16.vlgmr.msra.gmra.mrb[16].mxu1 %v3677_v54  ;;  %4625 = vmatmul.mubr.bf16.vlgmr.msra.gmra.mrb[12].mxu0 %v3677_v54  ;;  %v8427_v54 = vld [vmem:[#allocation10 + $0x348] ss:$28 sps:$4 sm:$0xff]  }
 0x597   :  { %6105 = vmatpush1.bf16.msra.mxu1 %v8333_v52  ;;  %6187 = vmatpush1.bf16.msra.mxu0 %v8336_v53  ;;  %v8429_v52 = vld [vmem:[#allocation10 + $0x34c] ss:$28 sps:$4 sm:$0xff]   ;;  %v8432_v53 = vld [vmem:[#allocation10 + $0x354] ss:$28 sps:$4 sm:$0xff]  }
 0x598   :  { %6106 = vmatprep.subr.bf16.mxu1 %v8341_v55  ;;  %6188 = vmatprep.subr.bf16.mxu0 %v8344_v57  ;;  %v8430_v55 = vld [vmem:[#allocation10 + $0x350] ss:$28 sps:$4 sm:$0xff]   ;;  %v8435_v57 = vld [vmem:[#allocation10 + $0x384] ss:$28 sps:$4 sm:$0xff]  }
 0x59b   :  { %6107 = vmatpush1.bf16.msra.mxu1 %v8339_v58  ;;  %6189 = vmatpush1.bf16.msra.mxu0 %v8342_v59  ;;  %v8438_v58 = vld [vmem:[#allocation10 + $0x38c] ss:$28 sps:$4 sm:$0xff]   ;;  %v9162_v59 = vld [vmem:[%s9263_s12] sm:$0xf] }
 0x59c   :  { %6108 = vmatprep.subr.bf16.mxu1 %v8347_v60  ;;  %6190 = vmatprep.subr.bf16.mxu0 %v8350_v61  ;;  %v3812_v60 = vrot.slane %v9162_v59, %v9054_v48  ;;  %v3816_v61 = vrot.slane %v9162_v59, %v9062_v50 }
 0x59f   :  { %6109 = vmatpush1.bf16.msra.mxu1 %v8345_v62  ;;  %6191 = vmatpush1.bf16.msra.mxu0 %v8348_v63  ;;  %v3824_v62 = vrot.slane %v9162_v59, %v9065_v51 }
 0x5a0   :  { %6110 = vmatprep.subr.bf16.mxu1 %v8353_v0  ;;  %6192 = vmatprep.subr.bf16.mxu0 %v8356_v1  ;;  %v143_v1 = vld [vmem:[%s9252_s1 + $0x30] sm:$0xff] }
 0x5a3   :  { %6111 = vmatpush1.bf16.msra.mxu1 %v8351_v2  ;;  %6193 = vmatpush1.bf16.msra.mxu0 %v8354_v3 }
 0x5a4   :  { %6112 = vmatprep.subr.bf16.mxu1 %v8359_v5  ;;  %6194 = vmatprep.subr.bf16.mxu0 %v8362_v7 }
 0x5a7   :  { %6113 = vmatpush1.bf16.msra.mxu1 %v8357_v9  ;;  %6195 = vmatpush1.bf16.msra.mxu0 %v8360_v10 }
 0x5a8   :  { %6114 = vmatprep.subr.bf16.mxu1 %v8365_v12  ;;  %6196 = vmatprep.subr.bf16.mxu0 %v8368_v15 }
 0x5ab   :  { %6115 = vmatpush1.bf16.msra.mxu1 %v8363_v16  ;;  %6197 = vmatpush1.bf16.msra.mxu0 %v8366_v17 }
 0x5ac   :  { %6116 = vmatprep.subr.bf16.mxu1 %v8371_v8  ;;  %6198 = vmatprep.subr.bf16.mxu0 %v8374_v18  ;;  %v9178_v8 = vld [vmem:[%s9252_s1 + $0x38] sm:$0xff] }
 0x5af   :  { %6117 = vmatpush1.bf16.msra.mxu1 %v8369_v19  ;;  %6199 = vmatpush1.bf16.msra.mxu0 %v8372_v14  ;;  %v7083_v19 = vcombine.high %v143_v1, %v143_v1 }
 0x5b0   :  { %6118 = vmatprep.subr.bf16.mxu1 %v8377_v20  ;;  %6200 = vmatprep.subr.bf16.mxu0 %v8380_v21  ;;  %v7082_v21 = vcombine.low %v143_v1, %v143_v1  ;;  %v8489_v1 = vld [vmem:[#allocation10 + $0x57c] ss:$28 sps:$4 sm:$0xff]  }
 0x5b3   :  { %6119 = vmatpush1.bf16.msra.mxu1 %v8375_v11  ;;  %6201 = vmatpush1.bf16.msra.mxu0 %v8378_v49 }
 0x5b4   :  { %6120 = vmatprep.subr.bf16.mxu1 %v8383_v24  ;;  %6202 = vmatprep.subr.bf16.mxu0 %v8386_v23  ;;  %v7085_v24 = vcombine.high %v9178_v8, %v9178_v8 }
 0x5b7   :  { %6121 = vmatpush1.bf16.msra.mxu1 %v8381_v25  ;;  %6203 = vmatpush1.bf16.msra.mxu0 %v8384_v26  ;;  %v8433_v25 = vld [vmem:[#allocation10 + $0x380] ss:$28 sps:$4 sm:$0xff]   ;;  %v8436_v26 = vld [vmem:[#allocation10 + $0x388] ss:$28 sps:$4 sm:$0xff]  }
 0x5b8   :  { %6122 = vmatprep.subr.bf16.mxu1 %v8389_v56  ;;  %6204 = vmatprep.subr.bf16.mxu0 %v8392_v27  ;;  %v8441_v27 = vld [vmem:[#allocation10 + $0x3bc] ss:$28 sps:$4 sm:$0xff]  }
 0x5bb   :  { %6123 = vmatpush1.bf16.msra.mxu1 %v8387_v22  ;;  %6205 = vmatpush1.bf16.msra.mxu0 %v8390_v28  ;;  %v8444_v22 = vld [vmem:[#allocation10 + $0x3c4] ss:$28 sps:$4 sm:$0xff]  }
 0x5bc   :  { %6124 = vmatprep.subr.bf16.mxu1 %v8395_v29  ;;  %6206 = vmatprep.subr.bf16.mxu0 %v8398_v30  ;;  %v8439_v29 = vld [vmem:[#allocation10 + $0x3b8] ss:$28 sps:$4 sm:$0xff]   ;;  %v8442_v30 = vld [vmem:[#allocation10 + $0x3c0] ss:$28 sps:$4 sm:$0xff]  }
 0x5bf   :  { %6125 = vmatpush1.bf16.msra.mxu1 %v8393_v31  ;;  %6207 = vmatpush1.bf16.msra.mxu0 %v8396_v32  ;;  %v8447_v31 = vld [vmem:[#allocation10 + $0x3f4] ss:$28 sps:$4 sm:$0xff]   ;;  %v8450_v32 = vld [vmem:[#allocation10 + $0x3fc] ss:$28 sps:$4 sm:$0xff]  }
 0x5c0   :  { %6126 = vmatprep.subr.bf16.mxu1 %v8401_v33  ;;  %6208 = vmatprep.subr.bf16.mxu0 %v8404_v4  ;;  %v8445_v33 = vld [vmem:[#allocation10 + $0x3f0] ss:$28 sps:$4 sm:$0xff]   ;;  %v8448_v4 = vld [vmem:[#allocation10 + $0x3f8] ss:$28 sps:$4 sm:$0xff]  }
 0x5c3   :  { %6127 = vmatpush1.bf16.msra.mxu1 %v8399_v34  ;;  %6209 = vmatpush1.bf16.msra.mxu0 %v8402_v35  ;;  %v8453_v34 = vld [vmem:[#allocation10 + $0x42c] ss:$28 sps:$4 sm:$0xff]   ;;  %v8456_v35 = vld [vmem:[#allocation10 + $0x434] ss:$28 sps:$4 sm:$0xff]  }
 0x5c4   :  { %6128 = vmatprep.subr.bf16.mxu1 %v8407_v36  ;;  %6210 = vmatprep.subr.bf16.mxu0 %v8410_v37  ;;  %v8451_v36 = vld [vmem:[#allocation10 + $0x428] ss:$28 sps:$4 sm:$0xff]   ;;  %v8454_v37 = vld [vmem:[#allocation10 + $0x430] ss:$28 sps:$4 sm:$0xff]  }
 0x5c7   :  { %6129 = vmatpush1.bf16.msra.mxu1 %v8405_v38  ;;  %6211 = vmatpush1.bf16.msra.mxu0 %v8408_v39  ;;  %v8459_v38 = vld [vmem:[#allocation10 + $0x464] ss:$28 sps:$4 sm:$0xff]   ;;  %v8462_v39 = vld [vmem:[#allocation10 + $0x46c] ss:$28 sps:$4 sm:$0xff]  }
 0x5c8   :  { %6130 = vmatprep.subr.bf16.mxu1 %v8413_v13  ;;  %6212 = vmatprep.subr.bf16.mxu0 %v8416_v40  ;;  %v8457_v13 = vld [vmem:[#allocation10 + $0x460] ss:$28 sps:$4 sm:$0xff]   ;;  %v8460_v40 = vld [vmem:[#allocation10 + $0x468] ss:$28 sps:$4 sm:$0xff]  }
 0x5cb   :  { %6131 = vmatpush1.bf16.msra.mxu1 %v8411_v41  ;;  %6213 = vmatpush1.bf16.msra.mxu0 %v8414_v42  ;;  %v8465_v41 = vld [vmem:[#allocation10 + $0x49c] ss:$28 sps:$4 sm:$0xff]   ;;  %v8468_v42 = vld [vmem:[#allocation10 + $0x4a4] ss:$28 sps:$4 sm:$0xff]  }
 0x5cc   :  { %6132 = vmatprep.subr.bf16.mxu1 %v8423_v43  ;;  %6214 = vmatprep.subr.bf16.mxu0 %v8426_v44  ;;  %v8463_v43 = vld [vmem:[#allocation10 + $0x498] ss:$28 sps:$4 sm:$0xff]   ;;  %v8466_v44 = vld [vmem:[#allocation10 + $0x4a0] ss:$28 sps:$4 sm:$0xff]  }
 0x5cf   :  { %6133 = vmatpush1.bf16.msra.mxu1 %v8421_v45  ;;  %6215 = vmatpush1.bf16.msra.mxu0 %v8424_v46  ;;  %v8471_v45 = vld [vmem:[#allocation10 + $0x4d4] ss:$28 sps:$4 sm:$0xff]   ;;  %v8474_v46 = vld [vmem:[#allocation10 + $0x4dc] ss:$28 sps:$4 sm:$0xff]  }
 0x5d0   :  { %6134 = vmatprep.subr.bf16.mxu1 %v8429_v52  ;;  %6216 = vmatprep.subr.bf16.mxu0 %v8432_v53  ;;  %v8469_v52 = vld [vmem:[#allocation10 + $0x4d0] ss:$28 sps:$4 sm:$0xff]   ;;  %v8472_v53 = vld [vmem:[#allocation10 + $0x4d8] ss:$28 sps:$4 sm:$0xff]  }
 0x5d3   :  { %6135 = vmatpush1.bf16.msra.mxu1 %v8427_v54  ;;  %6217 = vmatpush1.bf16.msra.mxu0 %v8430_v55  ;;  %v8477_v54 = vld [vmem:[#allocation10 + $0x50c] ss:$28 sps:$4 sm:$0xff]   ;;  %v8480_v55 = vld [vmem:[#allocation10 + $0x514] ss:$28 sps:$4 sm:$0xff]  }
 0x5d4   :  { %6145 = vmatprep.subr.bf16.mxu1 %v8435_v57  ;;  %6227 = vmatprep.subr.bf16.mxu0 %v8438_v58  ;;  %v8475_v57 = vld [vmem:[#allocation10 + $0x508] ss:$28 sps:$4 sm:$0xff]   ;;  %v8478_v58 = vld [vmem:[#allocation10 + $0x510] ss:$28 sps:$4 sm:$0xff]  }
 0x669   :  { %v4544_v63 = vpop.f32.mrb[16].mxu1  ;;  %v9170_v0 = vpop.f32.mrb[12].mxu0 }
 0x66a   :  { %v7371_v2 = vadd.f32 %v4544_v63, %v3812_v60  ;;  %v4546_v3 = vpop.f32.mrb[17].mxu1  ;;  %v4628_v5 = vpop.f32.mrb[13].mxu0  ;;  %v8483_v60 = vld [vmem:[#allocation10 + $0x544] ss:$28 sps:$4 sm:$0xff]  }
 0x66b   :  { %v7372_v7 = vadd.f32 %v4546_v3, %v3816_v61  ;;  %v7374_v9 = vadd.f32 %v4628_v5, %v3824_v62  ;;  %v4548_v10 = vpop.f32.mrb[18].mxu1  ;;  %v4630_v12 = vpop.f32.mrb[14].mxu0  ;;  %v8486_v61 = vld [vmem:[#allocation10 + $0x54c] ss:$28 sps:$4 sm:$0xff]   ;;  %v8481_v62 = vld [vmem:[#allocation10 + $0x540] ss:$28 sps:$4 sm:$0xff]  }
 0x66c   :  { %v4633_v15 = vmax.f32 %v7371_v2, 0.0  ;;  %v4549_v16 = vpop.f32.mrb[19].mxu1  ;;  %v4631_v17 = vpop.f32.mrb[15].mxu0  ;;  %v8484_v63 = vld [vmem:[#allocation10 + $0x548] ss:$28 sps:$4 sm:$0xff]  }
 0x66d   :  { %v4634_v18 = vmax.f32 %v7372_v7, 0.0  ;;  %v4636_v14 = vmax.f32 %v7374_v9, 0.0  ;;  %v8492_v2 = vld [vmem:[#allocation10 + $0x584] ss:$28 sps:$4 sm:$0xff]   ;;  %v8487_v3 = vld [vmem:[#allocation10 + $0x578] ss:$28 sps:$4 sm:$0xff]  }
 0x66e   :  { %v4637_v20 = vpack.c.bf16 %v4633_v15, %v4633_v15  ;;  %v8490_v5 = vld [vmem:[#allocation10 + $0x580] ss:$28 sps:$4 sm:$0xff]   ;;  %v8495_v7 = vld [vmem:[#allocation10 + $0x5b4] ss:$28 sps:$4 sm:$0xff]   ;;  %v8501_v15 = vld [vmem:[#allocation10 + $0x5ec] ss:$28 sps:$4 sm:$0xff]  }
 0x66f   :  { %v4638_v11 = vpack.c.bf16 %v4634_v18, %v4634_v18  ;;  %v4640_v49 = vpack.c.bf16 %v4636_v14, %v4636_v14  ;;  %v8498_v9 = vld [vmem:[#allocation10 + $0x5bc] ss:$28 sps:$4 sm:$0xff]   ;;  %v8493_v10 = vld [vmem:[#allocation10 + $0x5b0] ss:$28 sps:$4 sm:$0xff]   ;;  %v8499_v17 = vld [vmem:[#allocation10 + $0x5e8] ss:$28 sps:$4 sm:$0xff]  }
 0x670   :  { %v9184_v56 = vmul.bf16 %v7082_v21, %v4637_v20  ;;  %v8496_v12 = vld [vmem:[#allocation10 + $0x5b8] ss:$28 sps:$4 sm:$0xff]   ;;  %v8502_v18 = vld [vmem:[#allocation10 + $0x5f0] ss:$28 sps:$4 sm:$0xff]   ;;  %v8505_v20 = vld [vmem:[#allocation10 + $0x620] ss:$28 sps:$4 sm:$0xff]  }
 0x671   :  { %v9182_v23 = vmul.bf16 %v7083_v19, %v4638_v11  ;;  %v9188_v28 = vmul.bf16 %v7085_v24, %v4640_v49  ;;  %v8504_v16 = vld [vmem:[#allocation10 + $0x5f4] ss:$28 sps:$4 sm:$0xff]   ;;  %v8507_v19 = vld [vmem:[#allocation10 + $0x624] ss:$28 sps:$4 sm:$0xff]   ;;  %v8510_v14 = vld [vmem:[#allocation10 + $0x62c] ss:$28 sps:$4 sm:$0xff]   ;;  %v3820_v11 = vrot.slane %v9162_v59, %v9086_v6 }
 0x672   :  { %v8508_v21 = vld [vmem:[#allocation10 + $0x628] ss:$28 sps:$4 sm:$0xff]   ;;  %v8513_v49 = vld [vmem:[#allocation10 + $0x65c] ss:$28 sps:$4 sm:$0xff]  }
 0x673   :  { %6136 = vmatprep.mubr.bf16.mxu1 %v9182_v23  ;;  %6218 = vmatprep.mubr.bf16.mxu0 %v9182_v23  ;;  %v8516_v24 = vld [vmem:[#allocation10 + $0x664] ss:$28 sps:$4 sm:$0xff]   ;;  %v8525_v59 = vld [vmem:[#allocation10 + $0x6cc] ss:$28 sps:$4 sm:$0xff]  }
 0x674   :  { %6137 = vmatmul.mubr.bf16.vlgmr.msra.gmra.mrb[20].mxu1 %v9184_v56  ;;  %6219 = vmatmul.mubr.bf16.vlgmr.msra.gmra.mrb[16].mxu0 %v9184_v56 }
 0x675   :  { %6146 = vmatpush1.bf16.msra.mxu1 %v8433_v25  ;;  %6228 = vmatpush1.bf16.msra.mxu0 %v8436_v26  ;;  %v8511_v25 = vld [vmem:[#allocation10 + $0x658] ss:$28 sps:$4 sm:$0xff]   ;;  %v8514_v26 = vld [vmem:[#allocation10 + $0x660] ss:$28 sps:$4 sm:$0xff]  }
 0x676   :  { %6177 = vmatprep.mubr.bf16.mxu1 %v9188_v28  ;;  %6259 = vmatprep.mubr.bf16.mxu0 %v9188_v28 }
 0x677   :  { %6147 = vmatprep.subr.bf16.mxu1 %v8441_v27  ;;  %6229 = vmatprep.subr.bf16.mxu0 %v8444_v22  ;;  %v7373_v27 = vadd.f32 %v9170_v0, %v3820_v11  ;;  %v8519_v22 = vld [vmem:[#allocation10 + $0x694] ss:$28 sps:$4 sm:$0xff]   ;;  %v7084_v0 = vcombine.low %v9178_v8, %v9178_v8  ;;  %v8534_v8 = vld [vmem:[#allocation10 + $0x48] ss:$28 sps:$4 sm:$0xff]  }
 0x678   :  { %v8578_v11 = vld [vmem:[#allocation10 + $0x3d0] ss:$28 sps:$4 sm:$0xff]  }
 0x679   :  { %6148 = vmatpush1.bf16.msra.mxu1 %v8439_v29  ;;  %6230 = vmatpush1.bf16.msra.mxu0 %v8442_v30  ;;  %v8522_v29 = vld [vmem:[#allocation10 + $0x69c] ss:$28 sps:$4 sm:$0xff]   ;;  %v8517_v30 = vld [vmem:[#allocation10 + $0x690] ss:$28 sps:$4 sm:$0xff]  }
 0x67a   :  { %6149 = vmatprep.subr.bf16.mxu1 %v8447_v31  ;;  %6231 = vmatprep.subr.bf16.mxu0 %v8450_v32  ;;  %v8520_v31 = vld [vmem:[#allocation10 + $0x698] ss:$28 sps:$4 sm:$0xff]   ;;  %v4635_v32 = vmax.f32 %v7373_v27, 0.0 }
 0x67b   :  { %v8586_v27 = vld [vmem:[#allocation10 + $0x27c] ss:$28 sps:$4 sm:$0xff]  }
 0x67d   :  { %6150 = vmatpush1.bf16.msra.mxu1 %v8445_v33  ;;  %6232 = vmatpush1.bf16.msra.mxu0 %v8448_v4  ;;  %v8528_v33 = vld [vmem:[#allocation10 + $0x6d4] ss:$28 sps:$4 sm:$0xff]   ;;  %v8523_v4 = vld [vmem:[#allocation10 + $0x6c8] ss:$28 sps:$4 sm:$0xff]  }
 0x67e   :  { %6151 = vmatprep.subr.bf16.mxu1 %v8453_v34  ;;  %6233 = vmatprep.subr.bf16.mxu0 %v8456_v35  ;;  %v8526_v34 = vld [vmem:[#allocation10 + $0x6d0] ss:$28 sps:$4 sm:$0xff]   ;;  %v4639_v35 = vpack.c.bf16 %v4635_v32, %v4635_v32  ;;  %v8592_v32 = vld [vmem:[#allocation10 + $0x638] ss:$28 sps:$4 sm:$0xff]  }
 0x681   :  { %6152 = vmatpush1.bf16.msra.mxu1 %v8451_v36  ;;  %6234 = vmatpush1.bf16.msra.mxu0 %v8454_v37  ;;  %v8531_v36 = vld [vmem:[#allocation10 + $0x14] ss:$28 sps:$4 sm:$0xff]  }
 0x682   :  { %6153 = vmatprep.subr.bf16.mxu1 %v8459_v38  ;;  %6235 = vmatprep.subr.bf16.mxu0 %v8462_v39  ;;  %v8532_v37 = vld [vmem:[#allocation10 + $0x1d8] ss:$28 sps:$4 sm:$0xff]   ;;  %v8529_v38 = vld [vmem:[#allocation10 + $0x10] ss:$28 sps:$4 sm:$0xff]   ;;  %v9199_v39 = vmul.bf16 %v7084_v0, %v4639_v35  ;;  %v8594_v35 = vld [vmem:[#allocation10 + $0x2e8] ss:$28 sps:$4 sm:$0xff]  }
 0x683   :  { %v8598_v0 = vld [vmem:[#allocation10 + $0x4b0] ss:$28 sps:$4 sm:$0xff]  }
 0x685   :  { %6154 = vmatpush1.bf16.msra.mxu1 %v8457_v13  ;;  %6236 = vmatpush1.bf16.msra.mxu0 %v8460_v40  ;;  %v8533_v13 = vld [vmem:[#allocation10 + $0x18] ss:$28 sps:$4 sm:$0xff]   ;;  %v8536_v40 = vld [vmem:[#allocation10 + $0x4c] ss:$28 sps:$4 sm:$0xff]  }
 0x686   :  { %6155 = vmatprep.subr.bf16.mxu1 %v8465_v41  ;;  %6237 = vmatprep.subr.bf16.mxu0 %v8468_v42  ;;  %v8537_v41 = vld [vmem:[#allocation10 + $0x210] ss:$28 sps:$4 sm:$0xff]  }
 0x687   :  { %v8538_v42 = vld [vmem:[#allocation10 + $0x50] ss:$28 sps:$4 sm:$0xff]  }
 0x689   :  { %6156 = vmatpush1.bf16.msra.mxu1 %v8463_v43  ;;  %6238 = vmatpush1.bf16.msra.mxu0 %v8466_v44  ;;  %v8541_v43 = vld [vmem:[#allocation10 + $0x84] ss:$28 sps:$4 sm:$0xff]  }
 0x68a   :  { %6157 = vmatprep.subr.bf16.mxu1 %v8471_v45  ;;  %6239 = vmatprep.subr.bf16.mxu0 %v8474_v46  ;;  %v8542_v44 = vld [vmem:[#allocation10 + $0x248] ss:$28 sps:$4 sm:$0xff]   ;;  %v8539_v45 = vld [vmem:[#allocation10 + $0x80] ss:$28 sps:$4 sm:$0xff]  }
 0x68b   :  { %v8543_v46 = vld [vmem:[#allocation10 + $0x88] ss:$28 sps:$4 sm:$0xff]  }
 0x68d   :  { %6158 = vmatpush1.bf16.msra.mxu1 %v8469_v52  ;;  %6240 = vmatpush1.bf16.msra.mxu0 %v8472_v53  ;;  %v8546_v52 = vld [vmem:[#allocation10 + $0xbc] ss:$28 sps:$4 sm:$0xff]  }
 0x68e   :  { %6159 = vmatprep.subr.bf16.mxu1 %v8477_v54  ;;  %6241 = vmatprep.subr.bf16.mxu0 %v8480_v55  ;;  %v8547_v53 = vld [vmem:[#allocation10 + $0x280] ss:$28 sps:$4 sm:$0xff]   ;;  %v8544_v54 = vld [vmem:[#allocation10 + $0xb8] ss:$28 sps:$4 sm:$0xff]  }
 0x68f   :  { %v8548_v55 = vld [vmem:[#allocation10 + $0xc0] ss:$28 sps:$4 sm:$0xff]  }
 0x691   :  { %6160 = vmatpush1.bf16.msra.mxu1 %v8475_v57  ;;  %6242 = vmatpush1.bf16.msra.mxu0 %v8478_v58  ;;  %v8551_v57 = vld [vmem:[#allocation10 + $0xf4] ss:$28 sps:$4 sm:$0xff]  }
 0x692   :  { %6161 = vmatprep.subr.bf16.mxu1 %v8483_v60  ;;  %6243 = vmatprep.subr.bf16.mxu0 %v8486_v61  ;;  %v8549_v58 = vld [vmem:[#allocation10 + $0xf0] ss:$28 sps:$4 sm:$0xff]   ;;  %v8553_v60 = vld [vmem:[#allocation10 + $0xf8] ss:$28 sps:$4 sm:$0xff]  }
 0x693   :  { %v8556_v61 = vld [vmem:[#allocation10 + $0x12c] ss:$28 sps:$4 sm:$0xff]  }
 0x695   :  { %6162 = vmatpush1.bf16.msra.mxu1 %v8481_v62  ;;  %6244 = vmatpush1.bf16.msra.mxu0 %v8484_v63  ;;  %v8557_v62 = vld [vmem:[#allocation10 + $0x2f0] ss:$28 sps:$4 sm:$0xff]   ;;  %v8554_v63 = vld [vmem:[#allocation10 + $0x128] ss:$28 sps:$4 sm:$0xff]  }
 0x696   :  { %6163 = vmatprep.subr.bf16.mxu1 %v8489_v1  ;;  %6245 = vmatprep.subr.bf16.mxu0 %v8492_v2  ;;  %v8558_v1 = vld [vmem:[#allocation10 + $0x130] ss:$28 sps:$4 sm:$0xff]   ;;  %v8561_v2 = vld [vmem:[#allocation10 + $0x164] ss:$28 sps:$4 sm:$0xff]  }
 0x699   :  { %6164 = vmatpush1.bf16.msra.mxu1 %v8487_v3  ;;  %6246 = vmatpush1.bf16.msra.mxu0 %v8490_v5  ;;  %v8562_v3 = vld [vmem:[#allocation10 + $0x328] ss:$28 sps:$4 sm:$0xff]   ;;  %v8559_v5 = vld [vmem:[#allocation10 + $0x160] ss:$28 sps:$4 sm:$0xff]  }
 0x69a   :  { %6165 = vmatprep.subr.bf16.mxu1 %v8495_v7  ;;  %6247 = vmatprep.subr.bf16.mxu0 %v8498_v9  ;;  %v8563_v7 = vld [vmem:[#allocation10 + $0x168] ss:$28 sps:$4 sm:$0xff]   ;;  %v8566_v9 = vld [vmem:[#allocation10 + $0x19c] ss:$28 sps:$4 sm:$0xff]  }
 0x69d   :  { %6166 = vmatpush1.bf16.msra.mxu1 %v8493_v10  ;;  %6248 = vmatpush1.bf16.msra.mxu0 %v8496_v12  ;;  %v8567_v10 = vld [vmem:[#allocation10 + $0x360] ss:$28 sps:$4 sm:$0xff]   ;;  %v8564_v12 = vld [vmem:[#allocation10 + $0x198] ss:$28 sps:$4 sm:$0xff]  }
 0x69e   :  { %6167 = vmatprep.subr.bf16.mxu1 %v8501_v15  ;;  %6249 = vmatprep.subr.bf16.mxu0 %v8504_v16  ;;  %v8568_v15 = vld [vmem:[#allocation10 + $0x1a0] ss:$28 sps:$4 sm:$0xff]   ;;  %v8571_v16 = vld [vmem:[#allocation10 + $0x1d4] ss:$28 sps:$4 sm:$0xff]  }
 0x6a1   :  { %6168 = vmatpush1.bf16.msra.mxu1 %v8499_v17  ;;  %6250 = vmatpush1.bf16.msra.mxu0 %v8502_v18  ;;  %v8572_v17 = vld [vmem:[#allocation10 + $0x558] ss:$28 sps:$4 sm:$0xff]   ;;  %v8569_v18 = vld [vmem:[#allocation10 + $0x1d0] ss:$28 sps:$4 sm:$0xff]  }
 0x6a2   :  { %6169 = vmatprep.subr.bf16.mxu1 %v8507_v19  ;;  %6251 = vmatprep.subr.bf16.mxu0 %v8510_v14  ;;  %v8573_v19 = vld [vmem:[#allocation10 + $0x398] ss:$28 sps:$4 sm:$0xff]   ;;  %v8576_v14 = vld [vmem:[#allocation10 + $0x20c] ss:$28 sps:$4 sm:$0xff]  }
 0x6a5   :  { %6170 = vmatpush1.bf16.msra.mxu1 %v8505_v20  ;;  %6252 = vmatpush1.bf16.msra.mxu0 %v8508_v21  ;;  %v8577_v20 = vld [vmem:[#allocation10 + $0x590] ss:$28 sps:$4 sm:$0xff]   ;;  %v8574_v21 = vld [vmem:[#allocation10 + $0x208] ss:$28 sps:$4 sm:$0xff]  }
 0x6a6   :  { %6171 = vmatprep.subr.bf16.mxu1 %v8513_v49  ;;  %6253 = vmatprep.subr.bf16.mxu0 %v8516_v24  ;;  %v8581_v49 = vld [vmem:[#allocation10 + $0x244] ss:$28 sps:$4 sm:$0xff]  }
 0x6a7   :  { %v8582_v24 = vld [vmem:[#allocation10 + $0x5c8] ss:$28 sps:$4 sm:$0xff]  }
 0x6a9   :  { %6172 = vmatpush1.bf16.msra.mxu1 %v8511_v25  ;;  %6254 = vmatpush1.bf16.msra.mxu0 %v8514_v26  ;;  %v8579_v25 = vld [vmem:[#allocation10 + $0x240] ss:$28 sps:$4 sm:$0xff]   ;;  %v8583_v26 = vld [vmem:[#allocation10 + $0x408] ss:$28 sps:$4 sm:$0xff]  }
 0x6aa   :  { %6173 = vmatprep.subr.bf16.mxu1 %v8519_v22  ;;  %6255 = vmatprep.subr.bf16.mxu0 %v8522_v29  ;;  %v8587_v22 = vld [vmem:[#allocation10 + $0x600] ss:$28 sps:$4 sm:$0xff]   ;;  %v8584_v29 = vld [vmem:[#allocation10 + $0x278] ss:$28 sps:$4 sm:$0xff]  }
 0x6ad   :  { %6174 = vmatpush1.bf16.msra.mxu1 %v8517_v30  ;;  %6256 = vmatpush1.bf16.msra.mxu0 %v8520_v31  ;;  %v8588_v30 = vld [vmem:[#allocation10 + $0x440] ss:$28 sps:$4 sm:$0xff]   ;;  %v8591_v31 = vld [vmem:[#allocation10 + $0x2b4] ss:$28 sps:$4 sm:$0xff]  }
 0x6ae   :  { %6175 = vmatprep.subr.bf16.mxu1 %v8525_v59  ;;  %6257 = vmatprep.subr.bf16.mxu0 %v8528_v33  ;;  %v8589_v59 = vld [vmem:[#allocation10 + $0x2b0] ss:$28 sps:$4 sm:$0xff]   ;;  %v8593_v33 = vld [vmem:[#allocation10 + $0x478] ss:$28 sps:$4 sm:$0xff]  }
 0x6b1   :  { %6176 = vmatpush1.bf16.msra.mxu1 %v8523_v4  ;;  %6258 = vmatpush1.bf16.msra.mxu0 %v8526_v34  ;;  %v8596_v4 = vld [vmem:[#allocation10 + $0x2ec] ss:$28 sps:$4 sm:$0xff]  }
 0x6b2   :  { %6268 = vmatprep.subr.bf16.mxu1 %v8531_v36  ;;  %7317 = vmatprep.subr.bf16.mxu0 %v8532_v37  ;;  %v8597_v34 = vld [vmem:[#allocation10 + $0x670] ss:$28 sps:$4 sm:$0xff]   ;;  %v8601_v36 = vld [vmem:[#allocation10 + $0x324] ss:$28 sps:$4 sm:$0xff]  }
 0x6b3   :  { %v8602_v37 = vld [vmem:[#allocation10 + $0x6a8] ss:$28 sps:$4 sm:$0xff]  }
 0x6b4   :  { %6178 = vmatmul.mubr.bf16.vlgmr.msra.gmra.mrb[20].mxu1 %v9199_v39  ;;  %6260 = vmatmul.mubr.bf16.vlgmr.msra.gmra.mrb[16].mxu0 %v9199_v39 }
 0x6b5   :  { %6269 = vmatpush1.bf16.msra.mxu1 %v8529_v38  ;;  %6300 = vmatprep.mubr.bf16.mxu1 %v9182_v23  ;;  %v8599_v38 = vld [vmem:[#allocation10 + $0x320] ss:$28 sps:$4 sm:$0xff]  }
 0x6b6   :  { %7318 = vmatpush3.bf16.msra.mxu0 %v8533_v13  ;;  %6382 = vmatprep.mubr.bf16.mxu0 %v9182_v23  ;;  %v8552_v23 = vld [vmem:[#allocation10 + $0x2b8] ss:$28 sps:$4 sm:$0xff]   ;;  %v8603_v13 = vld [vmem:[#allocation10 + $0x4e8] ss:$28 sps:$4 sm:$0xff]  }
 0x6b7   :  { %6270 = vmatprep.subr.bf16.mxu1 %v8536_v40  ;;  %7319 = vmatprep.subr.bf16.mxu0 %v8537_v41  ;;  %v8606_v40 = vld [vmem:[#allocation10 + $0x35c] ss:$28 sps:$4 sm:$0xff]  }
 0x6b8   :  { %v8607_v41 = vld [vmem:[#allocation10 + $0x6e0] ss:$28 sps:$4 sm:$0xff]  }
 0x6b9   :  { %6271 = vmatpush1.bf16.msra.mxu1 %v8534_v8  ;;  %v8604_v8 = vld [vmem:[#allocation10 + $0x358] ss:$28 sps:$4 sm:$0xff]  }
 0x6ba   :  { %7320 = vmatpush3.bf16.msra.mxu0 %v8538_v42  ;;  %6272 = vmatprep.subr.bf16.mxu1 %v8541_v43  ;;  %v8608_v42 = vld [vmem:[#allocation10 + $0x520] ss:$28 sps:$4 sm:$0xff]   ;;  %v8611_v43 = vld [vmem:[#allocation10 + $0x394] ss:$28 sps:$4 sm:$0xff]  }
 0x6bb   :  { %7321 = vmatprep.subr.bf16.mxu0 %v8542_v44  ;;  %v8609_v44 = vld [vmem:[#allocation10 + $0x390] ss:$28 sps:$4 sm:$0xff]  }
 0x6bd   :  { %6273 = vmatpush1.bf16.msra.mxu1 %v8539_v45  ;;  %v8614_v45 = vld [vmem:[#allocation10 + $0x3cc] ss:$28 sps:$4 sm:$0xff]  }
 0x6be   :  { %7322 = vmatpush3.bf16.msra.mxu0 %v8543_v46  ;;  %6274 = vmatprep.subr.bf16.mxu1 %v8546_v52  ;;  %v8612_v46 = vld [vmem:[#allocation10 + $0x3c8] ss:$28 sps:$4 sm:$0xff]  }
 0x6bf   :  { %7323 = vmatprep.subr.bf16.mxu0 %v8547_v53  ;;  %v8617_v52 = vld [vmem:[#allocation10 + $0x404] ss:$28 sps:$4 sm:$0xff]  }
 0x6c0   :  { %v8615_v53 = vld [vmem:[#allocation10 + $0x400] ss:$28 sps:$4 sm:$0xff]  }
 0x6c1   :  { %6275 = vmatpush1.bf16.msra.mxu1 %v8544_v54  ;;  %v8620_v54 = vld [vmem:[#allocation10 + $0x43c] ss:$28 sps:$4 sm:$0xff]  }
 0x6c2   :  { %7324 = vmatpush3.bf16.msra.mxu0 %v8548_v55  ;;  %6276 = vmatprep.subr.bf16.mxu1 %v8551_v57  ;;  %v8618_v55 = vld [vmem:[#allocation10 + $0x438] ss:$28 sps:$4 sm:$0xff]  }
 0x6c3   :  { %7325 = vmatprep.subr.bf16.mxu0 %v8552_v23  ;;  %v8623_v57 = vld [vmem:[#allocation10 + $0x474] ss:$28 sps:$4 sm:$0xff]  }
 0x6c4   :  { %v8621_v23 = vld [vmem:[#allocation10 + $0x470] ss:$28 sps:$4 sm:$0xff]  }
 0x6c5   :  { %6277 = vmatpush1.bf16.msra.mxu1 %v8549_v58  ;;  %v8624_v58 = vld [vmem:[#allocation10 + $0x4a8] ss:$28 sps:$4 sm:$0xff]  }
 0x6c6   :  { %7326 = vmatpush3.bf16.msra.mxu0 %v8553_v60  ;;  %6278 = vmatprep.subr.bf16.mxu1 %v8556_v61  ;;  %v8629_v60 = vld [vmem:[#allocation10 + $0x4e4] ss:$28 sps:$4 sm:$0xff]   ;;  %v8632_v61 = vld [vmem:[#allocation10 + $0x51c] ss:$28 sps:$4 sm:$0xff]  }
 0x6c7   :  { %7327 = vmatprep.subr.bf16.mxu0 %v8557_v62  ;;  %v8630_v62 = vld [vmem:[#allocation10 + $0x518] ss:$28 sps:$4 sm:$0xff]  }
 0x6c9   :  { %6279 = vmatpush1.bf16.msra.mxu1 %v8554_v63  ;;  %v8635_v63 = vld [vmem:[#allocation10 + $0x554] ss:$28 sps:$4 sm:$0xff]  }
 0x6ca   :  { %7328 = vmatpush3.bf16.msra.mxu0 %v8558_v1  ;;  %6280 = vmatprep.subr.bf16.mxu1 %v8561_v2  ;;  %v8633_v1 = vld [vmem:[#allocation10 + $0x550] ss:$28 sps:$4 sm:$0xff]  }
 0x6cb   :  { %7329 = vmatprep.subr.bf16.mxu0 %v8562_v3  ;;  %v8638_v2 = vld [vmem:[#allocation10 + $0x58c] ss:$28 sps:$4 sm:$0xff]  }
 0x6cc   :  { %v8636_v3 = vld [vmem:[#allocation10 + $0x588] ss:$28 sps:$4 sm:$0xff]  }
 0x6cd   :  { %6281 = vmatpush1.bf16.msra.mxu1 %v8559_v5  ;;  %v8641_v5 = vld [vmem:[#allocation10 + $0x5c4] ss:$28 sps:$4 sm:$0xff]  }
 0x6ce   :  { %7330 = vmatpush3.bf16.msra.mxu0 %v8563_v7  ;;  %6282 = vmatprep.subr.bf16.mxu1 %v8566_v9  ;;  %v8639_v7 = vld [vmem:[#allocation10 + $0x5c0] ss:$28 sps:$4 sm:$0xff]  }
 0x6cf   :  { %7331 = vmatprep.subr.bf16.mxu0 %v8567_v10  ;;  %v8644_v9 = vld [vmem:[#allocation10 + $0x5fc] ss:$28 sps:$4 sm:$0xff]  }
 0x6d0   :  { %v8642_v10 = vld [vmem:[#allocation10 + $0x5f8] ss:$28 sps:$4 sm:$0xff]  }
 0x6d1   :  { %6283 = vmatpush1.bf16.msra.mxu1 %v8564_v12  ;;  %v8647_v12 = vld [vmem:[#allocation10 + $0x634] ss:$28 sps:$4 sm:$0xff]  }
 0x6d2   :  { %7332 = vmatpush3.bf16.msra.mxu0 %v8568_v15  ;;  %6284 = vmatprep.subr.bf16.mxu1 %v8571_v16  ;;  %v8645_v15 = vld [vmem:[#allocation10 + $0x630] ss:$28 sps:$4 sm:$0xff]  }
 0x6d3   :  { %7339 = vmatprep.subr.bf16.mxu0 %v8572_v17  ;;  %v8650_v16 = vld [vmem:[#allocation10 + $0x66c] ss:$28 sps:$4 sm:$0xff]  }
 0x6d4   :  { %v8648_v17 = vld [vmem:[#allocation10 + $0x668] ss:$28 sps:$4 sm:$0xff]  }
 0x6d5   :  { %6383 = vmatmul.mubr.bf16.vlgmr.msra.gmra.mrb[20].mxu0 %v9184_v56  ;;  %6285 = vmatpush1.bf16.msra.mxu1 %v8569_v18  ;;  %v8653_v18 = vld [vmem:[#allocation10 + $0x6a4] ss:$28 sps:$4 sm:$0xff]  }
 0x6d6   :  { %7340 = vmatpush3.bf16.msra.mxu0 %v8573_v19  ;;  %6422 = vmatprep.mubr.bf16.mxu0 %v9188_v28  ;;  %v8651_v19 = vld [vmem:[#allocation10 + $0x6a0] ss:$28 sps:$4 sm:$0xff]  }
 0x6d7   :  { %6286 = vmatprep.subr.bf16.mxu1 %v8576_v14  ;;  %7341 = vmatprep.subr.bf16.mxu0 %v8577_v20  ;;  %v8656_v14 = vld [vmem:[#allocation10 + $0x6dc] ss:$28 sps:$4 sm:$0xff]  }
 0x6d8   :  { %v8654_v20 = vld [vmem:[#allocation10 + $0x6d8] ss:$28 sps:$4 sm:$0xff]  }
 0x6d9   :  { %6287 = vmatpush1.bf16.msra.mxu1 %v8574_v21  ;;  %v9214_v21 = vld [vmem:[%s9265_s14] sm:$0xff] }
 0x6da   :  { %7342 = vmatpush3.bf16.msra.mxu0 %v8578_v11  ;;  %6288 = vmatprep.subr.bf16.mxu1 %v8581_v49  ;;  %v4920_v11 = vrot.slane %v9214_v21, %v9054_v48  ;;  %v4928_v49 = vrot.slane %v9214_v21, %v9086_v6 }
 0x6db   :  { %7343 = vmatprep.subr.bf16.mxu0 %v8582_v24  ;;  %v4924_v24 = vrot.slane %v9214_v21, %v9062_v50 }
 0x6dd   :  { %6289 = vmatpush1.bf16.msra.mxu1 %v8579_v25  ;;  %v4932_v25 = vrot.slane %v9214_v21, %v9065_v51 }
 0x6de   :  { %7344 = vmatpush3.bf16.msra.mxu0 %v8583_v26  ;;  %6290 = vmatprep.subr.bf16.mxu1 %v8586_v27 }
 0x6df   :  { %7345 = vmatprep.subr.bf16.mxu0 %v8587_v22 }
 0x6e1   :  { %6291 = vmatpush1.bf16.msra.mxu1 %v8584_v29 }
 0x6e2   :  { %7346 = vmatpush3.bf16.msra.mxu0 %v8588_v30  ;;  %6292 = vmatprep.subr.bf16.mxu1 %v8591_v31 }
 0x6e3   :  { %7347 = vmatprep.subr.bf16.mxu0 %v8592_v32 }
 0x6e5   :  { %6293 = vmatpush1.bf16.msra.mxu1 %v8589_v59 }
 0x6e6   :  { %7348 = vmatpush3.bf16.msra.mxu0 %v8593_v33  ;;  %6294 = vmatprep.subr.bf16.mxu1 %v8596_v4 }
 0x6e7   :  { %7349 = vmatprep.subr.bf16.mxu0 %v8597_v34 }
 0x6e9   :  { %6295 = vmatpush1.bf16.msra.mxu1 %v8594_v35 }
 0x6ea   :  { %7350 = vmatpush3.bf16.msra.mxu0 %v8598_v0  ;;  %6296 = vmatprep.subr.bf16.mxu1 %v8601_v36 }
 0x6eb   :  { %7351 = vmatprep.subr.bf16.mxu0 %v8602_v37 }
 0x6ed   :  { %6297 = vmatpush1.bf16.msra.mxu1 %v8599_v38 }
 0x6ee   :  { %7352 = vmatpush3.bf16.msra.mxu0 %v8603_v13  ;;  %6298 = vmatprep.subr.bf16.mxu1 %v8606_v40 }
 0x6ef   :  { %7353 = vmatprep.subr.bf16.mxu0 %v8607_v41 }
 0x6f1   :  { %6299 = vmatpush1.bf16.msra.mxu1 %v8604_v8 }
 0x6f2   :  { %7354 = vmatpush3.bf16.msra.mxu0 %v8608_v42  ;;  %6309 = vmatprep.subr.bf16.mxu1 %v8611_v43 }
 0x6f4   :  { %6301 = vmatmul.mubr.bf16.vlgmr.msra.gmra.mrb[24].mxu1 %v9184_v56  ;;  %v8626_v56 = vld [vmem:[#allocation10 + $0x4ac] ss:$28 sps:$4 sm:$0xff]  }
 0x6f5   :  { %6423 = vmatmul.mubr.bf16.vlgmr.msra.gmra.mrb[24].mxu0 %v9199_v39  ;;  %6310 = vmatpush1.bf16.msra.mxu1 %v8609_v44 }
 0x6f6   :  { %6341 = vmatprep.mubr.bf16.mxu1 %v9188_v28  ;;  %6311 = vmatprep.subr.bf16.mxu1 %v8614_v45  ;;  %v8627_v28 = vld [vmem:[#allocation10 + $0x4e0] ss:$28 sps:$4 sm:$0xff]  }
 0x6f9   :  { %6312 = vmatpush1.bf16.msra.mxu1 %v8612_v46 }
 0x6fa   :  { %6313 = vmatprep.subr.bf16.mxu1 %v8617_v52 }
 0x6fd   :  { %6314 = vmatpush1.bf16.msra.mxu1 %v8615_v53 }
 0x6fe   :  { %6315 = vmatprep.subr.bf16.mxu1 %v8620_v54 }
 0x701   :  { %6316 = vmatpush1.bf16.msra.mxu1 %v8618_v55  ;;  %v4943_v55 = vsub.s32 6, %v9051_v47 }
 0x702   :  { %6317 = vmatprep.subr.bf16.mxu1 %v8623_v57 }
 0x703   :  { %v4944_v57 = vrot.slane %v9214_v21, %v4943_v55 }
 0x705   :  { %6318 = vmatpush1.bf16.msra.mxu1 %v8621_v23 }
 0x706   :  { %6319 = vmatprep.subr.bf16.mxu1 %v8626_v56 }
 0x709   :  { %6320 = vmatpush1.bf16.msra.mxu1 %v8624_v58 }
 0x70a   :  { %6321 = vmatprep.subr.bf16.mxu1 %v8629_v60 }
 0x70d   :  { %6322 = vmatpush1.bf16.msra.mxu1 %v8627_v28 }
 0x70e   :  { %6323 = vmatprep.subr.bf16.mxu1 %v8632_v61 }
 0x711   :  { %6324 = vmatpush1.bf16.msra.mxu1 %v8630_v62 }
 0x712   :  { %6325 = vmatprep.subr.bf16.mxu1 %v8635_v63 }
 0x715   :  { %6326 = vmatpush1.bf16.msra.mxu1 %v8633_v1 }
 0x716   :  { %6327 = vmatprep.subr.bf16.mxu1 %v8638_v2 }
 0x719   :  { %6328 = vmatpush1.bf16.msra.mxu1 %v8636_v3 }
 0x71a   :  { %6329 = vmatprep.subr.bf16.mxu1 %v8641_v5  ;;  %v4935_v5 = vsub.s32 4, %v9051_v47 }
 0x71d   :  { %6330 = vmatpush1.bf16.msra.mxu1 %v8639_v7  ;;  %v4939_v7 = vsub.s32 5, %v9051_v47 }
 0x71e   :  { %6331 = vmatprep.subr.bf16.mxu1 %v8644_v9  ;;  %v4936_v9 = vrot.slane %v9214_v21, %v4935_v5 }
 0x721   :  { %6332 = vmatpush1.bf16.msra.mxu1 %v8642_v10  ;;  %v4940_v10 = vrot.slane %v9214_v21, %v4939_v7 }
 0x722   :  { %6333 = vmatprep.subr.bf16.mxu1 %v8647_v12 }
 0x725   :  { %6334 = vmatpush1.bf16.msra.mxu1 %v8645_v15 }
 0x726   :  { %6335 = vmatprep.subr.bf16.mxu1 %v8650_v16 }
 0x729   :  { %6336 = vmatpush1.bf16.msra.mxu1 %v8648_v17 }
 0x72a   :  { %6337 = vmatprep.subr.bf16.mxu1 %v8653_v18 }
 0x72d   :  { %6338 = vmatpush1.bf16.msra.mxu1 %v8651_v19 }
 0x72e   :  { %6339 = vmatprep.subr.bf16.mxu1 %v8656_v14 }
 0x731   :  { %6340 = vmatpush1.bf16.msra.mxu1 %v8654_v20 }
 0x734   :  { %6342 = vmatmul.mubr.bf16.vlgmr.msra.gmra.mrb[24].mxu1 %v9199_v39 }
 0x787   :  { %v6179_v26 = vpop.f32.mrb[20].mxu1  ;;  %v6261_v27 = vpop.f32.mrb[16].mxu0 }
 0x788   :  { %v7375_v39 = vadd.f32 %v6179_v26, %v4920_v11  ;;  %v7377_v22 = vadd.f32 %v6261_v27, %v4928_v49  ;;  %v6181_v29 = vpop.f32.mrb[21].mxu1  ;;  %v6263_v30 = vpop.f32.mrb[17].mxu0 }
 0x789   :  { %v7376_v31 = vadd.f32 %v6181_v29, %v4924_v24  ;;  %v7378_v32 = vadd.f32 %v6263_v30, %v4932_v25  ;;  %v6183_v59 = vpop.f32.mrb[22].mxu1  ;;  %v6265_v33 = vpop.f32.mrb[18].mxu0 }
 0x78a   :  { %v7310_v48 = vmul.f32 -1.442695, %v7375_v39  ;;  %v7312_v4 = vmul.f32 -1.442695, %v7377_v22  ;;  %v6184_v34 = vpop.f32.mrb[23].mxu1  ;;  %v6266_v6 = vpop.f32.mrb[19].mxu0 }
 0x78b   :  { %v7311_v35 = vmul.f32 -1.442695, %v7376_v31  ;;  %v7313_v0 = vmul.f32 -1.442695, %v7378_v32 }
 0x78c   :  { %8659 = vpow2.f32 %v7310_v48 }
 0x78d   :  { %8661 = vpow2.f32 %v7312_v4 }
 0x78e   :  { %8663 = vpow2.f32 %v7311_v35 }
 0x78f   :  { %8665 = vpow2.f32 %v7313_v0 }
 0x796   :  { %v8660_v50 = vpop.eup %8659 }
 0x797   :  { %v8662_v51 = vpop.eup %8661  ;;  %v6451_v36 = vadd.f32 1.0, %v8660_v50 }
 0x798   :  { %v8664_v37 = vpop.eup %8663  ;;  %v6453_v38 = vadd.f32 1.0, %v8662_v51 }
 0x799   :  { %v8666_v13 = vpop.eup %8665  ;;  %8667 = vrcp.f32 %v6451_v36  ;;  %v6452_v40 = vadd.f32 1.0, %v8664_v37 }
 0x79a   :  { %8669 = vrcp.f32 %v6453_v38  ;;  %v6454_v41 = vadd.f32 1.0, %v8666_v13 }
 0x79b   :  { %8671 = vrcp.f32 %v6452_v40 }
 0x79c   :  { %8673 = vrcp.f32 %v6454_v41 }
 0x7a3   :  { %v8668_v8 = vpop.eup %8667 }
 0x7a4   :  { %v8670_v42 = vpop.eup %8669  ;;  %6472 = vst [vmem:[%s9266_s15] sm:$0xff] %v8668_v8 }
 0x7a5   :  { %v8672_v43 = vpop.eup %8671  ;;  %6474 = vst [vmem:[%s9266_s15 + $0x10] sm:$0xff] %v8670_v42 }
 0x7a6   :  { %v8674_v44 = vpop.eup %8673  ;;  %6473 = vst [vmem:[%s9266_s15 + $0x8] sm:$0xff] %v8672_v43 }
 0x7a7   :  { %6475 = vst [vmem:[%s9266_s15 + $0x18] sm:$0xff] %v8674_v44 }
 0x7a8   :  { %v7333_v45 = vpop.f32.mrb[20].mxu0 }
 0x7a9   :  { %v7334_v46 = vpop.f32.mrb[21].mxu0 }
 0x7aa   :  { %v7335_v52 = vadd.f32 %v7334_v46, %v7333_v45  ;;  %v7336_v53 = vpop.f32.mrb[22].mxu0 }
 0x7ab   :  { %v7337_v54 = vpop.f32.mrb[23].mxu0 }
 0x7ac   :  { %v6385_v58 = vadd.f32 %v7335_v52, %v4944_v57 }
 0x7c8   :  { %v7355_v23 = vpop.f32.mrb[24].mxu0 }
 0x7c9   :  { %v7356_v56 = vpop.f32.mrb[25].mxu0 }
 0x7ca   :  { %v7357_v60 = vadd.f32 %v7356_v56, %v7355_v23  ;;  %v7358_v28 = vpop.f32.mrb[26].mxu0 }
 0x7cb   :  { %v7359_v61 = vpop.f32.mrb[27].mxu0 }
 0x7cc   :  { %v6425_v62 = vadd.f32 %v7357_v60, %v6385_v58 }
 0x7ce   :  { %v7316_v63 = vmul.f32 -1.442695, %v6425_v62 }
 0x7d0   :  { %8675 = vpow2.f32 %v7316_v63 }
 0x7da   :  { %v8676_v1 = vpop.eup %8675 }
 0x7db   :  { %v6457_v2 = vadd.f32 1.0, %v8676_v1 }
 0x7dd   :  { %8677 = vrcp.f32 %v6457_v2 }
 0x7e7   :  { %v8678_v3 = vpop.eup %8677 }
 0x7e8   :  { %6478 = vst [vmem:[%s9266_s15 + $0x30] sm:$0xff] %v8678_v3 }
 0x807   :  { %v6343_v12 = vpop.f32.mrb[24].mxu1 }
 0x808   :  { %v7379_v15 = vadd.f32 %v6343_v12, %v4936_v9  ;;  %v6345_v16 = vpop.f32.mrb[25].mxu1 }
 0x809   :  { %v7380_v17 = vadd.f32 %v6345_v16, %v4940_v10  ;;  %v6347_v18 = vpop.f32.mrb[26].mxu1 }
 0x80a   :  { %v7314_v19 = vmul.f32 -1.442695, %v7379_v15  ;;  %v6348_v14 = vpop.f32.mrb[27].mxu1 }
 0x80b   :  { %v7315_v20 = vmul.f32 -1.442695, %v7380_v17 }
 0x80c   :  { %8679 = vpow2.f32 %v7314_v19 }
 0x80d   :  { %8681 = vpow2.f32 %v7315_v20 }
 0x816   :  { %v8680_v11 = vpop.eup %8679 }
 0x817   :  { %v8682_v49 = vpop.eup %8681  ;;  %v6455_v24 = vadd.f32 1.0, %v8680_v11 }
 0x818   :  { %v6456_v25 = vadd.f32 1.0, %v8682_v49 }
 0x819   :  { %8683 = vrcp.f32 %v6455_v24 }
 0x81a   :  { %8685 = vrcp.f32 %v6456_v25 }
 0x823   :  { %v8684_v47 = vpop.eup %8683 }
 0x824   :  { %v8686_v26 = vpop.eup %8685  ;;  %6476 = vst [vmem:[%s9266_s15 + $0x20] sm:$0xff] %v8684_v47 }
 0x825   :  { %6477 = vst [vmem:[%s9266_s15 + $0x28] sm:$0xff] %v8686_v26 }
 0x826   :  { %6483 = vsyncpa [#allocation3], 1 }
 0x827   :  { %6484 = vsyncpa [#allocation5], 1 }
 0x828   :  { %6485 = vsyncpa [#allocation8], 1 }
 0x829   :  { %6486 = vsyncpa [#allocation11], 1 }

</bundles_post_ra>
